<compile_context>
chip_gen: v5e
topology: v5e:2x2
jax: 0.10.0
libtpu: 0.0.40
codegen_flags: <defaults>
</compile_context>

<pallas_src>
import functools
import math

import jax
import jax.numpy as jnp
from jax.experimental import pallas as pl

EMBED_DIM = 32
NUM_HEADS = 4
HEAD_DIM = EMBED_DIM // NUM_HEADS
FFN_DIM = 64
NUM_DET_QUERIES = 8
LN_EPS = 1e-5


# ----------------------------------------------------------------------------
# In-kernel helpers
# ----------------------------------------------------------------------------
def _layernorm(x, gamma, beta):
    mean = jnp.mean(x, axis=-1, keepdims=True)
    var = jnp.mean((x - mean) ** 2, axis=-1, keepdims=True)
    return (x - mean) * jax.lax.rsqrt(var + LN_EPS) * gamma + beta


def _split_heads(x2d, n):
    # (n, D) -> (H, n, hd); softmax scale (if any) is already folded into the weights.
    return x2d.reshape(n, NUM_HEADS, HEAD_DIM).transpose(1, 0, 2)


def _mha_core(Qh, Kh, Vh, wo_r, bo, mask):
    """Heads-batched attention. Qh/Kh/Vh: (H, N, hd); wo_r: (H, hd, D); returns (Nq, D)."""
    s = jnp.einsum("hqd,hkd->hqk", Qh, Kh, preferred_element_type=jnp.float32)
    if mask is not None:
        s = s + mask[None]
    s = s - jnp.max(s, axis=-1, keepdims=True)
    p = jnp.exp(s)
    p = p * pl.reciprocal(jnp.sum(p, axis=-1, keepdims=True), approx=True)
    oh = jnp.einsum("hqk,hkd->hqd", p, Vh, preferred_element_type=jnp.float32)
    # Output projection folded per head (no concat): sum_h oh[h] @ wo_r[h].
    o = jnp.einsum("hqd,hdo->hqo", oh, wo_r, preferred_element_type=jnp.float32)
    return jnp.sum(o, axis=0) + bo


# ----------------------------------------------------------------------------
# Fused kernel: single program, whole layer, whole batch
# ----------------------------------------------------------------------------
def _fused_layer_kernel(
    # activations, B folded into rows
    q_ref, k_ref, v_ref, qpos_ref, kpos_ref,
    # self-attention weights (Wq|Wk packed, scale folded into the Wq/bq half)
    sa_wqk_ref, sa_bqk_ref, sa_wv_ref, sa_bv_ref, sa_wo_ref, sa_bo_ref,
    # cross-attention weights (scale folded into Wq/bq)
    ca_wq_ref, ca_bq_ref, ca_wk_ref, ca_bk_ref, ca_wv_ref, ca_bv_ref, ca_wo_ref, ca_bo_ref,
    # layer norms, stacked (3, D)
    ln_g_ref, ln_b_ref,
    # packed det|track FFN
    f_w1_ref, f_b1_ref, f_w2_ref, f_b2_ref,
    # output
    o_ref,
    *, batch, nq, nk, num_det, use_track_mask,
):
    x = q_ref[...]          # (B*Nq, D)
    key = k_ref[...]        # (B*Nk, D)
    val = v_ref[...]        # (B*Nk, D)
    qpos = qpos_ref[...]    # (B*Nq, D)
    kpos = kpos_ref[...]    # (B*Nk, D)
    ln_g = ln_g_ref[...]    # (3, D)
    ln_b = ln_b_ref[...]    # (3, D)

    # ---------------- self-attention (residual = x, the pre-pos query) ----------------
    qk_in = x + qpos
    QK = jnp.dot(qk_in, sa_wqk_ref[...], preferred_element_type=jnp.float32) + sa_bqk_ref[...]
    V = jnp.dot(x, sa_wv_ref[...], preferred_element_type=jnp.float32) + sa_bv_ref[...]

    if use_track_mask:
        row = jax.lax.broadcasted_iota(jnp.int32, (nq, nq), 0)
        col = jax.lax.broadcasted_iota(jnp.int32, (nq, nq), 1)
        mask = jnp.where((row < num_det) & (col >= num_det), -1e9, 0.0).astype(jnp.float32)
    else:
        mask = None

    sa_wo = sa_wo_ref[...]   # (H, hd, D)
    sa_bo = sa_bo_ref[...]   # (1, D)
    rows = []
    for b in range(batch):   # B=2: unrolled, attention stays per-batch-block
        qk_b = QK[b * nq:(b + 1) * nq]                                       # (Nq, 2D)
        # (Nq, 2H, hd) -> (2H, Nq, hd): heads 0..H-1 are Q heads, H..2H-1 are K heads.
        qk_h = qk_b.reshape(nq, 2 * NUM_HEADS, HEAD_DIM).transpose(1, 0, 2)
        Qh = qk_h[:NUM_HEADS]
        Kh = qk_h[NUM_HEADS:]
        Vh = _split_heads(V[b * nq:(b + 1) * nq], nq)
        rows.append(_mha_core(Qh, Kh, Vh, sa_wo, sa_bo, mask))
    attn = jnp.concatenate(rows, axis=0) if batch > 1 else rows[0]           # (B*Nq, D)
    x1 = _layernorm(attn + x, ln_g[0:1], ln_b[0:1])

    # ---------------- cross-attention (residual = x1) ----------------
    Qc = jnp.dot(x1 + qpos, ca_wq_ref[...], preferred_element_type=jnp.float32) + ca_bq_ref[...]
    Kc = jnp.dot(key + kpos, ca_wk_ref[...], preferred_element_type=jnp.float32) + ca_bk_ref[...]
    Vc = jnp.dot(val, ca_wv_ref[...], preferred_element_type=jnp.float32) + ca_bv_ref[...]
    ca_wo = ca_wo_ref[...]
    ca_bo = ca_bo_ref[...]
    rows = []
    for b in range(batch):
        Qh = _split_heads(Qc[b * nq:(b + 1) * nq], nq)
        Kh = _split_heads(Kc[b * nk:(b + 1) * nk], nk)
        Vh = _split_heads(Vc[b * nk:(b + 1) * nk], nk)
        rows.append(_mha_core(Qh, Kh, Vh, ca_wo, ca_bo, None))
    attn_c = jnp.concatenate(rows, axis=0) if batch > 1 else rows[0]
    x2 = _layernorm(attn_c + x1, ln_g[1:2], ln_b[1:2])

    # ---------------- det / track FFN (residual = x2), packed lane-dense ----------------
    bn = batch * nq
    h = jnp.maximum(
        jnp.dot(x2, f_w1_ref[...], preferred_element_type=jnp.float32) + f_b1_ref[...], 0.0)
    # Zero the "wrong" FFN half per row (row-within-batch < num_det -> det half),
    # then one block-stacked (BN, 2F) @ (2F, D) dot does both FFNs.
    row_q = jax.lax.broadcasted_iota(jnp.int32, (bn, 2 * FFN_DIM), 0) % nq
    col = jax.lax.broadcasted_iota(jnp.int32, (bn, 2 * FFN_DIM), 1)
    is_det = row_q < num_det
    det_col = col < FFN_DIM
    keep = (is_det & det_col) | (jnp.logical_not(is_det) & jnp.logical_not(det_col))
    h_sel = jnp.where(keep, h, 0.0)
    ffn = jnp.dot(h_sel, f_w2_ref[...], preferred_element_type=jnp.float32)  # (BN, D)
    f_b2 = f_b2_ref[...]                                                     # (2, D)
    row_qd = jax.lax.broadcasted_iota(jnp.int32, (bn, EMBED_DIM), 0) % nq
    b2 = jnp.where(row_qd < num_det, f_b2[0:1], f_b2[1:2])
    out = ffn + b2 + x2

    # ---------------- final norm ----------------
    o_ref[...] = _layernorm(out, ln_g[2:3], ln_b[2:3])


# ----------------------------------------------------------------------------
# One-time parameter packing (hoisted out of the per-call path)
# ----------------------------------------------------------------------------
def prepare_params(params):
    scale = 1.0 / math.sqrt(HEAD_DIM)
    sa, ca = params["self_attn"], params["cross_attn"]
    f, tf = params["ffn"], params["track_ffn"]
    return dict(
        # self-attn: Wq|Wk packed (same input) with softmax scale folded into the Q half
        sa_wqk=jnp.concatenate([sa["wq"] * scale, sa["wk"]], axis=1),        # (D, 2D)
        sa_bqk=jnp.concatenate([sa["bq"] * scale, sa["bk"]], axis=1),        # (1, 2D)
        sa_wv=sa["wv"], sa_bv=sa["bv"],
        sa_wo=sa["wo"].reshape(NUM_HEADS, HEAD_DIM, EMBED_DIM), sa_bo=sa["bo"],
        # cross-attn: scale folded into Wq/bq
        ca_wq=ca["wq"] * scale, ca_bq=ca["bq"] * scale,
        ca_wk=ca["wk"], ca_bk=ca["bk"], ca_wv=ca["wv"], ca_bv=ca["bv"],
        ca_wo=ca["wo"].reshape(NUM_HEADS, HEAD_DIM, EMBED_DIM), ca_bo=ca["bo"],
        # three LayerNorms stacked
        ln_g=jnp.concatenate([params["norm0"]["gamma"], params["norm1"]["gamma"],
                              params["norm2"]["gamma"]], axis=0),            # (3, D)
        ln_b=jnp.concatenate([params["norm0"]["beta"], params["norm1"]["beta"],
                              params["norm2"]["beta"]], axis=0),             # (3, D)
        # det|track FFN packed: layer-1 side-by-side (lane-dense), layer-2 block-stacked
        f_w1=jnp.concatenate([f["w1"], tf["w1"]], axis=1),                   # (D, 2F)
        f_b1=jnp.concatenate([f["b1"], tf["b1"]], axis=1),                   # (1, 2F)
        f_w2=jnp.concatenate([f["w2"], tf["w2"]], axis=0),                   # (2F, D)
        f_b2=jnp.concatenate([f["b2"], tf["b2"]], axis=0),                   # (2, D)
    )


# ----------------------------------------------------------------------------
# Wrapper: one pallas_call (single program, whole batch) for the whole layer
# ----------------------------------------------------------------------------
def trans_motion_decoder_layer(query, key, value, query_pos, key_pos, prepared,
                               num_det_queries=NUM_DET_QUERIES, mask_track2det=True):
    B, Nq, D = query.shape
    Nk = key.shape[1]
    assert D == EMBED_DIM

    use_track_mask = bool(mask_track2det and Nq > num_det_queries)
    kernel = functools.partial(_fused_layer_kernel, batch=B, nq=Nq, nk=Nk,
                               num_det=num_det_queries, use_track_mask=use_track_mask)

    p = prepared
    out2d = pl.pallas_call(
        kernel,
        out_shape=jax.ShapeDtypeStruct((B * Nq, D), jnp.float32),
    )(query.reshape(B * Nq, D), key.reshape(B * Nk, D), value.reshape(B * Nk, D),
      query_pos.reshape(B * Nq, D), key_pos.reshape(B * Nk, D),
      p["sa_wqk"], p["sa_bqk"], p["sa_wv"], p["sa_bv"], p["sa_wo"], p["sa_bo"],
      p["ca_wq"], p["ca_bq"], p["ca_wk"], p["ca_bk"], p["ca_wv"], p["ca_bv"],
      p["ca_wo"], p["ca_bo"],
      p["ln_g"], p["ln_b"],
      p["f_w1"], p["f_b1"], p["f_w2"], p["f_b2"])
    return out2d.reshape(B, Nq, D)


# ----------------------------------------------------------------------------
# Deterministic parameter init (shapes from module __init__; eval-mode dropout)
# ----------------------------------------------------------------------------
def init_params(key):
    keys = jax.random.split(key, 4)

    def w(k, shape, scale=0.02):
        return (scale * jax.random.normal(k, shape)).astype(jnp.float32)

    def attn_params(k):
        ks = jax.random.split(k, 8)
        return dict(
            wq=w(ks[0], (EMBED_DIM, EMBED_DIM)), bq=w(ks[1], (1, EMBED_DIM)),
            wk=w(ks[2], (EMBED_DIM, EMBED_DIM)), bk=w(ks[3], (1, EMBED_DIM)),
            wv=w(ks[4], (EMBED_DIM, EMBED_DIM)), bv=w(ks[5], (1, EMBED_DIM)),
            wo=w(ks[6], (EMBED_DIM, EMBED_DIM)), bo=w(ks[7], (1, EMBED_DIM)),
        )

    def ffn_params(k):
        ks = jax.random.split(k, 4)
        return dict(
            w1=w(ks[0], (EMBED_DIM, FFN_DIM)), b1=w(ks[1], (1, FFN_DIM)),
            w2=w(ks[2], (FFN_DIM, EMBED_DIM)), b2=w(ks[3], (1, EMBED_DIM)),
        )

    def ln_params():
        return dict(gamma=jnp.ones((1, EMBED_DIM), jnp.float32),
                    beta=jnp.zeros((1, EMBED_DIM), jnp.float32))

    return dict(
        self_attn=attn_params(keys[0]),
        cross_attn=attn_params(keys[1]),
        ffn=ffn_params(keys[2]),
        track_ffn=ffn_params(keys[3]),
        norm0=ln_params(), norm1=ln_params(), norm2=ln_params(),
    )


# ----------------------------------------------------------------------------
# Pure-JAX reference (mirrors the PyTorch forward, eval mode) for a sanity check
# ----------------------------------------------------------------------------
def _reference(query, key, value, qpos, kpos, params, num_det, mask_track2det=True):
    def ln(x, p):
        m = x.mean(-1, keepdims=True)
        v = ((x - m) ** 2).mean(-1, keepdims=True)
        return (x - m) / jnp.sqrt(v + LN_EPS) * p["gamma"] + p["beta"]

    def mha(qi, ki, vi, idn, p, mask):
        Q = qi @ p["wq"] + p["bq"]
        K = ki @ p["wk"] + p["bk"]
        V = vi @ p["wv"] + p["bv"]
        B, Nq, D = Q.shape
        Nk = K.shape[1]
        Qh = Q.reshape(B, Nq, NUM_HEADS, HEAD_DIM).transpose(0, 2, 1, 3)
        Kh = K.reshape(B, Nk, NUM_HEADS, HEAD_DIM).transpose(0, 2, 1, 3)
        Vh = V.reshape(B, Nk, NUM_HEADS, HEAD_DIM).transpose(0, 2, 1, 3)
        s = jnp.einsum("bhqd,bhkd->bhqk", Qh, Kh) / math.sqrt(HEAD_DIM)
        if mask is not None:
            s = s + mask[None, None]
        a = jax.nn.softmax(s, axis=-1)
        o = jnp.einsum("bhqk,bhkd->bhqd", a, Vh).transpose(0, 2, 1, 3).reshape(B, Nq, D)
        return o @ p["wo"] + p["bo"] + idn

    def ffn(x, idn, p):
        return jnp.maximum(x @ p["w1"] + p["b1"], 0.0) @ p["w2"] + p["b2"] + idn

    B, Nq, D = query.shape
    mask = None
    if mask_track2det and Nq > num_det:
        mask = jnp.zeros((Nq, Nq), jnp.float32).at[:num_det, num_det:].set(-1e9)
    x = mha(query + qpos, query + qpos, query, query, params["self_attn"], mask)
    x = ln(x, params["norm0"])
    x = mha(x + qpos, key + kpos, value, x, params["cross_attn"], None)
    x = ln(x, params["norm1"])
    if Nq > num_det:
        det = ffn(x[:, :num_det], x[:, :num_det], params["ffn"])
        trk = ffn(x[:, num_det:], x[:, num_det:], params["track_ffn"])
        x = jnp.concatenate([det, trk], axis=1)
    else:
        x = ffn(x, x, params["ffn"])
    return ln(x, params["norm2"])


if __name__ == "__main__":
    B = 2
    NQ = 16          # 8 det queries + 8 track queries (exercises mask + split-FFN paths)
    NK = 24          # memory / encoder tokens

    root = jax.random.PRNGKey(0)
    k_p, k_q, k_k, k_v, k_qp, k_kp = jax.random.split(root, 6)

    params = init_params(k_p)
    prepared = prepare_params(params)       # one-time packing, outside the per-call path

    query = jax.random.normal(k_q, (B, NQ, EMBED_DIM), jnp.float32)
    key = jax.random.normal(k_k, (B, NK, EMBED_DIM), jnp.float32)
    value = jax.random.normal(k_v, (B, NK, EMBED_DIM), jnp.float32)
    query_pos = jax.random.normal(k_qp, (B, NQ, EMBED_DIM), jnp.float32)
    key_pos = jax.random.normal(k_kp, (B, NK, EMBED_DIM), jnp.float32)

    out = trans_motion_decoder_layer(query, key, value, query_pos, key_pos, prepared)
    out = jax.block_until_ready(out)
    assert out.shape == (B, NQ, EMBED_DIM)

    ref = jax.block_until_ready(
        _reference(query, key, value, query_pos, key_pos, params, NUM_DET_QUERIES))
    max_err = float(jnp.max(jnp.abs(out - ref)))
    assert max_err < 2e-2, f"mismatch vs reference: {max_err}"

    print("KERNEL_OK")
</pallas_src>

<mosaic_0001>
module attributes {stable_mosaic.version = 11 : i64} {
  func.func @_fused_layer_kernel(%arg0: memref<32x32xf32, #tpu.memory_space<vmem>>, %arg1: memref<48x32xf32, #tpu.memory_space<vmem>>, %arg2: memref<48x32xf32, #tpu.memory_space<vmem>>, %arg3: memref<32x32xf32, #tpu.memory_space<vmem>>, %arg4: memref<48x32xf32, #tpu.memory_space<vmem>>, %arg5: memref<32x64xf32, #tpu.memory_space<vmem>>, %arg6: memref<1x64xf32, #tpu.memory_space<vmem>>, %arg7: memref<32x32xf32, #tpu.memory_space<vmem>>, %arg8: memref<1x32xf32, #tpu.memory_space<vmem>>, %arg9: memref<4x8x32xf32, #tpu.memory_space<vmem>>, %arg10: memref<1x32xf32, #tpu.memory_space<vmem>>, %arg11: memref<32x32xf32, #tpu.memory_space<vmem>>, %arg12: memref<1x32xf32, #tpu.memory_space<vmem>>, %arg13: memref<32x32xf32, #tpu.memory_space<vmem>>, %arg14: memref<1x32xf32, #tpu.memory_space<vmem>>, %arg15: memref<32x32xf32, #tpu.memory_space<vmem>>, %arg16: memref<1x32xf32, #tpu.memory_space<vmem>>, %arg17: memref<4x8x32xf32, #tpu.memory_space<vmem>>, %arg18: memref<1x32xf32, #tpu.memory_space<vmem>>, %arg19: memref<3x32xf32, #tpu.memory_space<vmem>>, %arg20: memref<3x32xf32, #tpu.memory_space<vmem>>, %arg21: memref<32x128xf32, #tpu.memory_space<vmem>>, %arg22: memref<1x128xf32, #tpu.memory_space<vmem>>, %arg23: memref<128x32xf32, #tpu.memory_space<vmem>>, %arg24: memref<2x32xf32, #tpu.memory_space<vmem>>, %arg25: memref<32x32xf32, #tpu.memory_space<vmem>>) attributes {dimension_semantics = [], scalar_prefetch = 0 : i64, scratch_operands = 0 : i64, tpu.core_type = #tpu.core_type<tc>} {
    %c0 = arith.constant 0 : index
    %c0_0 = arith.constant 0 : index
    %0 = vector.load %arg0[%c0, %c0_0] : memref<32x32xf32, #tpu.memory_space<vmem>>, vector<32x32xf32>
    %c0_1 = arith.constant 0 : index
    %c0_2 = arith.constant 0 : index
    %1 = vector.load %arg1[%c0_1, %c0_2] : memref<48x32xf32, #tpu.memory_space<vmem>>, vector<48x32xf32>
    %c0_3 = arith.constant 0 : index
    %c0_4 = arith.constant 0 : index
    %2 = vector.load %arg2[%c0_3, %c0_4] : memref<48x32xf32, #tpu.memory_space<vmem>>, vector<48x32xf32>
    %c0_5 = arith.constant 0 : index
    %c0_6 = arith.constant 0 : index
    %3 = vector.load %arg3[%c0_5, %c0_6] : memref<32x32xf32, #tpu.memory_space<vmem>>, vector<32x32xf32>
    %c0_7 = arith.constant 0 : index
    %c0_8 = arith.constant 0 : index
    %4 = vector.load %arg4[%c0_7, %c0_8] : memref<48x32xf32, #tpu.memory_space<vmem>>, vector<48x32xf32>
    %c0_9 = arith.constant 0 : index
    %c0_10 = arith.constant 0 : index
    %5 = vector.load %arg19[%c0_9, %c0_10] : memref<3x32xf32, #tpu.memory_space<vmem>>, vector<3x32xf32>
    %c0_11 = arith.constant 0 : index
    %c0_12 = arith.constant 0 : index
    %6 = vector.load %arg20[%c0_11, %c0_12] : memref<3x32xf32, #tpu.memory_space<vmem>>, vector<3x32xf32>
    %7 = arith.addf %0, %3 : vector<32x32xf32>
    %c0_13 = arith.constant 0 : index
    %c0_14 = arith.constant 0 : index
    %8 = vector.load %arg5[%c0_13, %c0_14] : memref<32x64xf32, #tpu.memory_space<vmem>>, vector<32x64xf32>
    %cst = arith.constant dense<0.000000e+00> : vector<32x64xf32>
    %9 = tpu.matmul %7, %8, %cst {dimension_numbers = #tpu.dot_dimension_numbers<[1], [0], [0], [1], [0, 0, 1, 1], [], []>} : vector<32x32xf32>, vector<32x64xf32>, vector<32x64xf32> -> vector<32x64xf32>
    %c0_15 = arith.constant 0 : index
    %c0_16 = arith.constant 0 : index
    %10 = vector.load %arg6[%c0_15, %c0_16] : memref<1x64xf32, #tpu.memory_space<vmem>>, vector<1x64xf32>
    %11 = vector.broadcast %10 : vector<1x64xf32> to vector<32x64xf32>
    %12 = arith.addf %9, %11 : vector<32x64xf32>
    %c0_17 = arith.constant 0 : index
    %c0_18 = arith.constant 0 : index
    %13 = vector.load %arg7[%c0_17, %c0_18] : memref<32x32xf32, #tpu.memory_space<vmem>>, vector<32x32xf32>
    %cst_19 = arith.constant dense<0.000000e+00> : vector<32x32xf32>
    %14 = tpu.matmul %0, %13, %cst_19 {dimension_numbers = #tpu.dot_dimension_numbers<[1], [0], [0], [1], [0, 0, 1, 1], [], []>} : vector<32x32xf32>, vector<32x32xf32>, vector<32x32xf32> -> vector<32x32xf32>
    %c0_20 = arith.constant 0 : index
    %c0_21 = arith.constant 0 : index
    %15 = vector.load %arg8[%c0_20, %c0_21] : memref<1x32xf32, #tpu.memory_space<vmem>>, vector<1x32xf32>
    %16 = vector.broadcast %15 : vector<1x32xf32> to vector<32x32xf32>
    %17 = arith.addf %14, %16 : vector<32x32xf32>
    %18 = tpu.iota {dimensions = array<i32: 0>} : vector<16x16xi32>
    %19 = tpu.iota {dimensions = array<i32: 1>} : vector<16x16xi32>
    %c8_i32 = arith.constant 8 : i32
    %20 = vector.broadcast %c8_i32 : i32 to vector<16x16xi32>
    %21 = arith.cmpi slt, %18, %20 : vector<16x16xi32>
    %c8_i32_22 = arith.constant 8 : i32
    %22 = vector.broadcast %c8_i32_22 : i32 to vector<16x16xi32>
    %23 = arith.cmpi sge, %19, %22 : vector<16x16xi32>
    %24 = arith.andi %21, %23 : vector<16x16xi1>
    %cst_23 = arith.constant -1.000000e+09 : f32
    %cst_24 = arith.constant 0.000000e+00 : f32
    %25 = vector.broadcast %cst_23 : f32 to vector<16x16xf32>
    %26 = vector.broadcast %cst_24 : f32 to vector<16x16xf32>
    %27 = arith.select %24, %25, %26 : vector<16x16xi1>, vector<16x16xf32>
    %c0_25 = arith.constant 0 : index
    %c0_26 = arith.constant 0 : index
    %c0_27 = arith.constant 0 : index
    %28 = vector.load %arg9[%c0_25, %c0_26, %c0_27] : memref<4x8x32xf32, #tpu.memory_space<vmem>>, vector<4x8x32xf32>
    %c0_28 = arith.constant 0 : index
    %c0_29 = arith.constant 0 : index
    %29 = vector.load %arg10[%c0_28, %c0_29] : memref<1x32xf32, #tpu.memory_space<vmem>>, vector<1x32xf32>
    %30 = vector.extract_strided_slice %12 {offsets = [0, 0], sizes = [16, 64], strides = [1, 1]} : vector<32x64xf32> to vector<16x64xf32>
    %31 = vector.shape_cast %30 : vector<16x64xf32> to vector<16x8x8xf32>
    %32 = tpu.transpose %31, [1, 0, 2] : vector<16x8x8xf32> -> vector<8x16x8xf32>
    %33 = vector.extract_strided_slice %32 {offsets = [0, 0, 0], sizes = [4, 16, 8], strides = [1, 1, 1]} : vector<8x16x8xf32> to vector<4x16x8xf32>
    %34 = vector.extract_strided_slice %32 {offsets = [4, 0, 0], sizes = [4, 16, 8], strides = [1, 1, 1]} : vector<8x16x8xf32> to vector<4x16x8xf32>
    %35 = vector.extract_strided_slice %17 {offsets = [0, 0], sizes = [16, 32], strides = [1, 1]} : vector<32x32xf32> to vector<16x32xf32>
    %36 = vector.shape_cast %35 : vector<16x32xf32> to vector<16x4x8xf32>
    %37 = tpu.transpose %36, [1, 0, 2] : vector<16x4x8xf32> -> vector<4x16x8xf32>
    "tpu.trace_start"() <{level = 10 : i32, message = "hqd,hkd->hqk"}> : () -> ()
    %cst_30 = arith.constant dense<0.000000e+00> : vector<4x16x16xf32>
    %38 = tpu.matmul %33, %34, %cst_30 {dimension_numbers = #tpu.dot_dimension_numbers<[2], [2], [1], [1], [0, 0, 0, 1, 1, 1], [0], [0]>} : vector<4x16x8xf32>, vector<4x16x8xf32>, vector<4x16x16xf32> -> vector<4x16x16xf32>
    "tpu.trace_stop"() : () -> ()
    %39 = vector.shape_cast %27 : vector<16x16xf32> to vector<1x16x16xf32>
    %40 = vector.broadcast %39 : vector<1x16x16xf32> to vector<4x16x16xf32>
    %41 = arith.addf %38, %40 : vector<4x16x16xf32>
    %cst_31 = arith.constant dense<0xFF800000> : vector<4x16xf32>
    %42 = vector.multi_reduction <maximumf>, %41, %cst_31 [2] : vector<4x16x16xf32> to vector<4x16xf32>
    %43 = vector.shape_cast %42 : vector<4x16xf32> to vector<4x16x1xf32>
    %44 = vector.broadcast %43 : vector<4x16x1xf32> to vector<4x16x16xf32>
    %45 = arith.subf %41, %44 : vector<4x16x16xf32>
    %46 = math.exp %45 : vector<4x16x16xf32>
    %cst_32 = arith.constant dense<0.000000e+00> : vector<4x16xf32>
    %47 = vector.multi_reduction <add>, %46, %cst_32 [2] : vector<4x16x16xf32> to vector<4x16xf32>
    %48 = vector.shape_cast %47 : vector<4x16xf32> to vector<4x16x1xf32>
    %49 = tpu.reciprocal %48 {approx = true} : vector<4x16x1xf32> -> vector<4x16x1xf32>
    %50 = vector.broadcast %49 : vector<4x16x1xf32> to vector<4x16x16xf32>
    %51 = arith.mulf %46, %50 : vector<4x16x16xf32>
    "tpu.trace_start"() <{level = 10 : i32, message = "hqk,hkd->hqd"}> : () -> ()
    %cst_33 = arith.constant dense<0.000000e+00> : vector<4x16x8xf32>
    %52 = tpu.matmul %51, %37, %cst_33 {dimension_numbers = #tpu.dot_dimension_numbers<[2], [1], [1], [2], [0, 0, 0, 1, 1, 2], [0], [0]>} : vector<4x16x16xf32>, vector<4x16x8xf32>, vector<4x16x8xf32> -> vector<4x16x8xf32>
    "tpu.trace_stop"() : () -> ()
    "tpu.trace_start"() <{level = 10 : i32, message = "hqd,hdo->hqo"}> : () -> ()
    %cst_34 = arith.constant dense<0.000000e+00> : vector<4x16x32xf32>
    %53 = tpu.matmul %52, %28, %cst_34 {dimension_numbers = #tpu.dot_dimension_numbers<[2], [1], [1], [2], [0, 0, 0, 1, 1, 2], [0], [0]>} : vector<4x16x8xf32>, vector<4x8x32xf32>, vector<4x16x32xf32> -> vector<4x16x32xf32>
    "tpu.trace_stop"() : () -> ()
    %cst_35 = arith.constant dense<0.000000e+00> : vector<16x32xf32>
    %54 = vector.multi_reduction <add>, %53, %cst_35 [0] : vector<4x16x32xf32> to vector<16x32xf32>
    %55 = vector.broadcast %29 : vector<1x32xf32> to vector<16x32xf32>
    %56 = arith.addf %54, %55 : vector<16x32xf32>
    %57 = vector.extract_strided_slice %12 {offsets = [16, 0], sizes = [16, 64], strides = [1, 1]} : vector<32x64xf32> to vector<16x64xf32>
    %58 = vector.shape_cast %57 : vector<16x64xf32> to vector<16x8x8xf32>
    %59 = tpu.transpose %58, [1, 0, 2] : vector<16x8x8xf32> -> vector<8x16x8xf32>
    %60 = vector.extract_strided_slice %59 {offsets = [0, 0, 0], sizes = [4, 16, 8], strides = [1, 1, 1]} : vector<8x16x8xf32> to vector<4x16x8xf32>
    %61 = vector.extract_strided_slice %59 {offsets = [4, 0, 0], sizes = [4, 16, 8], strides = [1, 1, 1]} : vector<8x16x8xf32> to vector<4x16x8xf32>
    %62 = vector.extract_strided_slice %17 {offsets = [16, 0], sizes = [16, 32], strides = [1, 1]} : vector<32x32xf32> to vector<16x32xf32>
    %63 = vector.shape_cast %62 : vector<16x32xf32> to vector<16x4x8xf32>
    %64 = tpu.transpose %63, [1, 0, 2] : vector<16x4x8xf32> -> vector<4x16x8xf32>
    "tpu.trace_start"() <{level = 10 : i32, message = "hqd,hkd->hqk"}> : () -> ()
    %cst_36 = arith.constant dense<0.000000e+00> : vector<4x16x16xf32>
    %65 = tpu.matmul %60, %61, %cst_36 {dimension_numbers = #tpu.dot_dimension_numbers<[2], [2], [1], [1], [0, 0, 0, 1, 1, 1], [0], [0]>} : vector<4x16x8xf32>, vector<4x16x8xf32>, vector<4x16x16xf32> -> vector<4x16x16xf32>
    "tpu.trace_stop"() : () -> ()
    %66 = vector.shape_cast %27 : vector<16x16xf32> to vector<1x16x16xf32>
    %67 = vector.broadcast %66 : vector<1x16x16xf32> to vector<4x16x16xf32>
    %68 = arith.addf %65, %67 : vector<4x16x16xf32>
    %cst_37 = arith.constant dense<0xFF800000> : vector<4x16xf32>
    %69 = vector.multi_reduction <maximumf>, %68, %cst_37 [2] : vector<4x16x16xf32> to vector<4x16xf32>
    %70 = vector.shape_cast %69 : vector<4x16xf32> to vector<4x16x1xf32>
    %71 = vector.broadcast %70 : vector<4x16x1xf32> to vector<4x16x16xf32>
    %72 = arith.subf %68, %71 : vector<4x16x16xf32>
    %73 = math.exp %72 : vector<4x16x16xf32>
    %cst_38 = arith.constant dense<0.000000e+00> : vector<4x16xf32>
    %74 = vector.multi_reduction <add>, %73, %cst_38 [2] : vector<4x16x16xf32> to vector<4x16xf32>
    %75 = vector.shape_cast %74 : vector<4x16xf32> to vector<4x16x1xf32>
    %76 = tpu.reciprocal %75 {approx = true} : vector<4x16x1xf32> -> vector<4x16x1xf32>
    %77 = vector.broadcast %76 : vector<4x16x1xf32> to vector<4x16x16xf32>
    %78 = arith.mulf %73, %77 : vector<4x16x16xf32>
    "tpu.trace_start"() <{level = 10 : i32, message = "hqk,hkd->hqd"}> : () -> ()
    %cst_39 = arith.constant dense<0.000000e+00> : vector<4x16x8xf32>
    %79 = tpu.matmul %78, %64, %cst_39 {dimension_numbers = #tpu.dot_dimension_numbers<[2], [1], [1], [2], [0, 0, 0, 1, 1, 2], [0], [0]>} : vector<4x16x16xf32>, vector<4x16x8xf32>, vector<4x16x8xf32> -> vector<4x16x8xf32>
    "tpu.trace_stop"() : () -> ()
    "tpu.trace_start"() <{level = 10 : i32, message = "hqd,hdo->hqo"}> : () -> ()
    %cst_40 = arith.constant dense<0.000000e+00> : vector<4x16x32xf32>
    %80 = tpu.matmul %79, %28, %cst_40 {dimension_numbers = #tpu.dot_dimension_numbers<[2], [1], [1], [2], [0, 0, 0, 1, 1, 2], [0], [0]>} : vector<4x16x8xf32>, vector<4x8x32xf32>, vector<4x16x32xf32> -> vector<4x16x32xf32>
    "tpu.trace_stop"() : () -> ()
    %cst_41 = arith.constant dense<0.000000e+00> : vector<16x32xf32>
    %81 = vector.multi_reduction <add>, %80, %cst_41 [0] : vector<4x16x32xf32> to vector<16x32xf32>
    %82 = vector.broadcast %29 : vector<1x32xf32> to vector<16x32xf32>
    %83 = arith.addf %81, %82 : vector<16x32xf32>
    %84 = tpu.concatenate %56, %83 in 0 : vector<16x32xf32>, vector<16x32xf32> -> vector<32x32xf32>
    %85 = arith.addf %84, %0 : vector<32x32xf32>
    %86 = vector.extract_strided_slice %5 {offsets = [0, 0], sizes = [1, 32], strides = [1, 1]} : vector<3x32xf32> to vector<1x32xf32>
    %87 = vector.extract_strided_slice %6 {offsets = [0, 0], sizes = [1, 32], strides = [1, 1]} : vector<3x32xf32> to vector<1x32xf32>
    %cst_42 = arith.constant dense<0.000000e+00> : vector<32xf32>
    %88 = vector.multi_reduction <add>, %85, %cst_42 [1] : vector<32x32xf32> to vector<32xf32>
    %89 = vector.shape_cast %88 : vector<32xf32> to vector<32x1xf32>
    %cst_43 = arith.constant 3.200000e+01 : f32
    %90 = vector.broadcast %cst_43 : f32 to vector<32x1xf32>
    %91 = arith.divf %89, %90 : vector<32x1xf32>
    %92 = vector.broadcast %91 : vector<32x1xf32> to vector<32x32xf32>
    %93 = arith.subf %85, %92 : vector<32x32xf32>
    %94 = arith.mulf %93, %93 : vector<32x32xf32>
    %cst_44 = arith.constant dense<0.000000e+00> : vector<32xf32>
    %95 = vector.multi_reduction <add>, %94, %cst_44 [1] : vector<32x32xf32> to vector<32xf32>
    %96 = vector.shape_cast %95 : vector<32xf32> to vector<32x1xf32>
    %cst_45 = arith.constant 3.200000e+01 : f32
    %97 = vector.broadcast %cst_45 : f32 to vector<32x1xf32>
    %98 = arith.divf %96, %97 : vector<32x1xf32>
    %99 = vector.broadcast %91 : vector<32x1xf32> to vector<32x32xf32>
    %100 = arith.subf %85, %99 : vector<32x32xf32>
    %cst_46 = arith.constant 9.99999974E-6 : f32
    %101 = vector.broadcast %cst_46 : f32 to vector<32x1xf32>
    %102 = arith.addf %98, %101 : vector<32x1xf32>
    %103 = math.rsqrt %102 : vector<32x1xf32>
    %104 = vector.broadcast %103 : vector<32x1xf32> to vector<32x32xf32>
    %105 = arith.mulf %100, %104 : vector<32x32xf32>
    %106 = vector.broadcast %86 : vector<1x32xf32> to vector<32x32xf32>
    %107 = arith.mulf %105, %106 : vector<32x32xf32>
    %108 = vector.broadcast %87 : vector<1x32xf32> to vector<32x32xf32>
    %109 = arith.addf %107, %108 : vector<32x32xf32>
    %110 = arith.addf %109, %3 : vector<32x32xf32>
    %c0_47 = arith.constant 0 : index
    %c0_48 = arith.constant 0 : index
    %111 = vector.load %arg11[%c0_47, %c0_48] : memref<32x32xf32, #tpu.memory_space<vmem>>, vector<32x32xf32>
    %cst_49 = arith.constant dense<0.000000e+00> : vector<32x32xf32>
    %112 = tpu.matmul %110, %111, %cst_49 {dimension_numbers = #tpu.dot_dimension_numbers<[1], [0], [0], [1], [0, 0, 1, 1], [], []>} : vector<32x32xf32>, vector<32x32xf32>, vector<32x32xf32> -> vector<32x32xf32>
    %c0_50 = arith.constant 0 : index
    %c0_51 = arith.constant 0 : index
    %113 = vector.load %arg12[%c0_50, %c0_51] : memref<1x32xf32, #tpu.memory_space<vmem>>, vector<1x32xf32>
    %114 = vector.broadcast %113 : vector<1x32xf32> to vector<32x32xf32>
    %115 = arith.addf %112, %114 : vector<32x32xf32>
    %116 = arith.addf %1, %4 : vector<48x32xf32>
    %c0_52 = arith.constant 0 : index
    %c0_53 = arith.constant 0 : index
    %117 = vector.load %arg13[%c0_52, %c0_53] : memref<32x32xf32, #tpu.memory_space<vmem>>, vector<32x32xf32>
    %cst_54 = arith.constant dense<0.000000e+00> : vector<48x32xf32>
    %118 = tpu.matmul %116, %117, %cst_54 {dimension_numbers = #tpu.dot_dimension_numbers<[1], [0], [0], [1], [0, 0, 1, 1], [], []>} : vector<48x32xf32>, vector<32x32xf32>, vector<48x32xf32> -> vector<48x32xf32>
    %c0_55 = arith.constant 0 : index
    %c0_56 = arith.constant 0 : index
    %119 = vector.load %arg14[%c0_55, %c0_56] : memref<1x32xf32, #tpu.memory_space<vmem>>, vector<1x32xf32>
    %120 = vector.broadcast %119 : vector<1x32xf32> to vector<48x32xf32>
    %121 = arith.addf %118, %120 : vector<48x32xf32>
    %c0_57 = arith.constant 0 : index
    %c0_58 = arith.constant 0 : index
    %122 = vector.load %arg15[%c0_57, %c0_58] : memref<32x32xf32, #tpu.memory_space<vmem>>, vector<32x32xf32>
    %cst_59 = arith.constant dense<0.000000e+00> : vector<48x32xf32>
    %123 = tpu.matmul %2, %122, %cst_59 {dimension_numbers = #tpu.dot_dimension_numbers<[1], [0], [0], [1], [0, 0, 1, 1], [], []>} : vector<48x32xf32>, vector<32x32xf32>, vector<48x32xf32> -> vector<48x32xf32>
    %c0_60 = arith.constant 0 : index
    %c0_61 = arith.constant 0 : index
    %124 = vector.load %arg16[%c0_60, %c0_61] : memref<1x32xf32, #tpu.memory_space<vmem>>, vector<1x32xf32>
    %125 = vector.broadcast %124 : vector<1x32xf32> to vector<48x32xf32>
    %126 = arith.addf %123, %125 : vector<48x32xf32>
    %c0_62 = arith.constant 0 : index
    %c0_63 = arith.constant 0 : index
    %c0_64 = arith.constant 0 : index
    %127 = vector.load %arg17[%c0_62, %c0_63, %c0_64] : memref<4x8x32xf32, #tpu.memory_space<vmem>>, vector<4x8x32xf32>
    %c0_65 = arith.constant 0 : index
    %c0_66 = arith.constant 0 : index
    %128 = vector.load %arg18[%c0_65, %c0_66] : memref<1x32xf32, #tpu.memory_space<vmem>>, vector<1x32xf32>
    %129 = vector.extract_strided_slice %115 {offsets = [0, 0], sizes = [16, 32], strides = [1, 1]} : vector<32x32xf32> to vector<16x32xf32>
    %130 = vector.shape_cast %129 : vector<16x32xf32> to vector<16x4x8xf32>
    %131 = tpu.transpose %130, [1, 0, 2] : vector<16x4x8xf32> -> vector<4x16x8xf32>
    %132 = vector.extract_strided_slice %121 {offsets = [0, 0], sizes = [24, 32], strides = [1, 1]} : vector<48x32xf32> to vector<24x32xf32>
    %133 = vector.shape_cast %132 : vector<24x32xf32> to vector<24x4x8xf32>
    %134 = tpu.transpose %133, [1, 0, 2] : vector<24x4x8xf32> -> vector<4x24x8xf32>
    %135 = vector.extract_strided_slice %126 {offsets = [0, 0], sizes = [24, 32], strides = [1, 1]} : vector<48x32xf32> to vector<24x32xf32>
    %136 = vector.shape_cast %135 : vector<24x32xf32> to vector<24x4x8xf32>
    %137 = tpu.transpose %136, [1, 0, 2] : vector<24x4x8xf32> -> vector<4x24x8xf32>
    "tpu.trace_start"() <{level = 10 : i32, message = "hqd,hkd->hqk"}> : () -> ()
    %cst_67 = arith.constant dense<0.000000e+00> : vector<4x16x24xf32>
    %138 = tpu.matmul %131, %134, %cst_67 {dimension_numbers = #tpu.dot_dimension_numbers<[2], [2], [1], [1], [0, 0, 0, 1, 1, 1], [0], [0]>} : vector<4x16x8xf32>, vector<4x24x8xf32>, vector<4x16x24xf32> -> vector<4x16x24xf32>
    "tpu.trace_stop"() : () -> ()
    %cst_68 = arith.constant dense<0xFF800000> : vector<4x16xf32>
    %139 = vector.multi_reduction <maximumf>, %138, %cst_68 [2] : vector<4x16x24xf32> to vector<4x16xf32>
    %140 = vector.shape_cast %139 : vector<4x16xf32> to vector<4x16x1xf32>
    %141 = vector.broadcast %140 : vector<4x16x1xf32> to vector<4x16x24xf32>
    %142 = arith.subf %138, %141 : vector<4x16x24xf32>
    %143 = math.exp %142 : vector<4x16x24xf32>
    %cst_69 = arith.constant dense<0.000000e+00> : vector<4x16xf32>
    %144 = vector.multi_reduction <add>, %143, %cst_69 [2] : vector<4x16x24xf32> to vector<4x16xf32>
    %145 = vector.shape_cast %144 : vector<4x16xf32> to vector<4x16x1xf32>
    %146 = tpu.reciprocal %145 {approx = true} : vector<4x16x1xf32> -> vector<4x16x1xf32>
    %147 = vector.broadcast %146 : vector<4x16x1xf32> to vector<4x16x24xf32>
    %148 = arith.mulf %143, %147 : vector<4x16x24xf32>
    "tpu.trace_start"() <{level = 10 : i32, message = "hqk,hkd->hqd"}> : () -> ()
    %cst_70 = arith.constant dense<0.000000e+00> : vector<4x16x8xf32>
    %149 = tpu.matmul %148, %137, %cst_70 {dimension_numbers = #tpu.dot_dimension_numbers<[2], [1], [1], [2], [0, 0, 0, 1, 1, 2], [0], [0]>} : vector<4x16x24xf32>, vector<4x24x8xf32>, vector<4x16x8xf32> -> vector<4x16x8xf32>
    "tpu.trace_stop"() : () -> ()
    "tpu.trace_start"() <{level = 10 : i32, message = "hqd,hdo->hqo"}> : () -> ()
    %cst_71 = arith.constant dense<0.000000e+00> : vector<4x16x32xf32>
    %150 = tpu.matmul %149, %127, %cst_71 {dimension_numbers = #tpu.dot_dimension_numbers<[2], [1], [1], [2], [0, 0, 0, 1, 1, 2], [0], [0]>} : vector<4x16x8xf32>, vector<4x8x32xf32>, vector<4x16x32xf32> -> vector<4x16x32xf32>
    "tpu.trace_stop"() : () -> ()
    %cst_72 = arith.constant dense<0.000000e+00> : vector<16x32xf32>
    %151 = vector.multi_reduction <add>, %150, %cst_72 [0] : vector<4x16x32xf32> to vector<16x32xf32>
    %152 = vector.broadcast %128 : vector<1x32xf32> to vector<16x32xf32>
    %153 = arith.addf %151, %152 : vector<16x32xf32>
    %154 = vector.extract_strided_slice %115 {offsets = [16, 0], sizes = [16, 32], strides = [1, 1]} : vector<32x32xf32> to vector<16x32xf32>
    %155 = vector.shape_cast %154 : vector<16x32xf32> to vector<16x4x8xf32>
    %156 = tpu.transpose %155, [1, 0, 2] : vector<16x4x8xf32> -> vector<4x16x8xf32>
    %157 = vector.extract_strided_slice %121 {offsets = [24, 0], sizes = [24, 32], strides = [1, 1]} : vector<48x32xf32> to vector<24x32xf32>
    %158 = vector.shape_cast %157 : vector<24x32xf32> to vector<24x4x8xf32>
    %159 = tpu.transpose %158, [1, 0, 2] : vector<24x4x8xf32> -> vector<4x24x8xf32>
    %160 = vector.extract_strided_slice %126 {offsets = [24, 0], sizes = [24, 32], strides = [1, 1]} : vector<48x32xf32> to vector<24x32xf32>
    %161 = vector.shape_cast %160 : vector<24x32xf32> to vector<24x4x8xf32>
    %162 = tpu.transpose %161, [1, 0, 2] : vector<24x4x8xf32> -> vector<4x24x8xf32>
    "tpu.trace_start"() <{level = 10 : i32, message = "hqd,hkd->hqk"}> : () -> ()
    %cst_73 = arith.constant dense<0.000000e+00> : vector<4x16x24xf32>
    %163 = tpu.matmul %156, %159, %cst_73 {dimension_numbers = #tpu.dot_dimension_numbers<[2], [2], [1], [1], [0, 0, 0, 1, 1, 1], [0], [0]>} : vector<4x16x8xf32>, vector<4x24x8xf32>, vector<4x16x24xf32> -> vector<4x16x24xf32>
    "tpu.trace_stop"() : () -> ()
    %cst_74 = arith.constant dense<0xFF800000> : vector<4x16xf32>
    %164 = vector.multi_reduction <maximumf>, %163, %cst_74 [2] : vector<4x16x24xf32> to vector<4x16xf32>
    %165 = vector.shape_cast %164 : vector<4x16xf32> to vector<4x16x1xf32>
    %166 = vector.broadcast %165 : vector<4x16x1xf32> to vector<4x16x24xf32>
    %167 = arith.subf %163, %166 : vector<4x16x24xf32>
    %168 = math.exp %167 : vector<4x16x24xf32>
    %cst_75 = arith.constant dense<0.000000e+00> : vector<4x16xf32>
    %169 = vector.multi_reduction <add>, %168, %cst_75 [2] : vector<4x16x24xf32> to vector<4x16xf32>
    %170 = vector.shape_cast %169 : vector<4x16xf32> to vector<4x16x1xf32>
    %171 = tpu.reciprocal %170 {approx = true} : vector<4x16x1xf32> -> vector<4x16x1xf32>
    %172 = vector.broadcast %171 : vector<4x16x1xf32> to vector<4x16x24xf32>
    %173 = arith.mulf %168, %172 : vector<4x16x24xf32>
    "tpu.trace_start"() <{level = 10 : i32, message = "hqk,hkd->hqd"}> : () -> ()
    %cst_76 = arith.constant dense<0.000000e+00> : vector<4x16x8xf32>
    %174 = tpu.matmul %173, %162, %cst_76 {dimension_numbers = #tpu.dot_dimension_numbers<[2], [1], [1], [2], [0, 0, 0, 1, 1, 2], [0], [0]>} : vector<4x16x24xf32>, vector<4x24x8xf32>, vector<4x16x8xf32> -> vector<4x16x8xf32>
    "tpu.trace_stop"() : () -> ()
    "tpu.trace_start"() <{level = 10 : i32, message = "hqd,hdo->hqo"}> : () -> ()
    %cst_77 = arith.constant dense<0.000000e+00> : vector<4x16x32xf32>
    %175 = tpu.matmul %174, %127, %cst_77 {dimension_numbers = #tpu.dot_dimension_numbers<[2], [1], [1], [2], [0, 0, 0, 1, 1, 2], [0], [0]>} : vector<4x16x8xf32>, vector<4x8x32xf32>, vector<4x16x32xf32> -> vector<4x16x32xf32>
    "tpu.trace_stop"() : () -> ()
    %cst_78 = arith.constant dense<0.000000e+00> : vector<16x32xf32>
    %176 = vector.multi_reduction <add>, %175, %cst_78 [0] : vector<4x16x32xf32> to vector<16x32xf32>
    %177 = vector.broadcast %128 : vector<1x32xf32> to vector<16x32xf32>
    %178 = arith.addf %176, %177 : vector<16x32xf32>
    %179 = tpu.concatenate %153, %178 in 0 : vector<16x32xf32>, vector<16x32xf32> -> vector<32x32xf32>
    %180 = arith.addf %179, %109 : vector<32x32xf32>
    %181 = vector.extract_strided_slice %5 {offsets = [1, 0], sizes = [1, 32], strides = [1, 1]} : vector<3x32xf32> to vector<1x32xf32>
    %182 = vector.extract_strided_slice %6 {offsets = [1, 0], sizes = [1, 32], strides = [1, 1]} : vector<3x32xf32> to vector<1x32xf32>
    %cst_79 = arith.constant dense<0.000000e+00> : vector<32xf32>
    %183 = vector.multi_reduction <add>, %180, %cst_79 [1] : vector<32x32xf32> to vector<32xf32>
    %184 = vector.shape_cast %183 : vector<32xf32> to vector<32x1xf32>
    %cst_80 = arith.constant 3.200000e+01 : f32
    %185 = vector.broadcast %cst_80 : f32 to vector<32x1xf32>
    %186 = arith.divf %184, %185 : vector<32x1xf32>
    %187 = vector.broadcast %186 : vector<32x1xf32> to vector<32x32xf32>
    %188 = arith.subf %180, %187 : vector<32x32xf32>
    %189 = arith.mulf %188, %188 : vector<32x32xf32>
    %cst_81 = arith.constant dense<0.000000e+00> : vector<32xf32>
    %190 = vector.multi_reduction <add>, %189, %cst_81 [1] : vector<32x32xf32> to vector<32xf32>
    %191 = vector.shape_cast %190 : vector<32xf32> to vector<32x1xf32>
    %cst_82 = arith.constant 3.200000e+01 : f32
    %192 = vector.broadcast %cst_82 : f32 to vector<32x1xf32>
    %193 = arith.divf %191, %192 : vector<32x1xf32>
    %194 = vector.broadcast %186 : vector<32x1xf32> to vector<32x32xf32>
    %195 = arith.subf %180, %194 : vector<32x32xf32>
    %cst_83 = arith.constant 9.99999974E-6 : f32
    %196 = vector.broadcast %cst_83 : f32 to vector<32x1xf32>
    %197 = arith.addf %193, %196 : vector<32x1xf32>
    %198 = math.rsqrt %197 : vector<32x1xf32>
    %199 = vector.broadcast %198 : vector<32x1xf32> to vector<32x32xf32>
    %200 = arith.mulf %195, %199 : vector<32x32xf32>
    %201 = vector.broadcast %181 : vector<1x32xf32> to vector<32x32xf32>
    %202 = arith.mulf %200, %201 : vector<32x32xf32>
    %203 = vector.broadcast %182 : vector<1x32xf32> to vector<32x32xf32>
    %204 = arith.addf %202, %203 : vector<32x32xf32>
    %c0_84 = arith.constant 0 : index
    %c0_85 = arith.constant 0 : index
    %205 = vector.load %arg21[%c0_84, %c0_85] : memref<32x128xf32, #tpu.memory_space<vmem>>, vector<32x128xf32>
    %cst_86 = arith.constant dense<0.000000e+00> : vector<32x128xf32>
    %206 = tpu.matmul %204, %205, %cst_86 {dimension_numbers = #tpu.dot_dimension_numbers<[1], [0], [0], [1], [0, 0, 1, 1], [], []>} : vector<32x32xf32>, vector<32x128xf32>, vector<32x128xf32> -> vector<32x128xf32>
    %c0_87 = arith.constant 0 : index
    %c0_88 = arith.constant 0 : index
    %207 = vector.load %arg22[%c0_87, %c0_88] : memref<1x128xf32, #tpu.memory_space<vmem>>, vector<1x128xf32>
    %208 = vector.broadcast %207 : vector<1x128xf32> to vector<32x128xf32>
    %209 = arith.addf %206, %208 : vector<32x128xf32>
    %cst_89 = arith.constant 0.000000e+00 : f32
    %210 = vector.broadcast %cst_89 : f32 to vector<32x128xf32>
    %211 = arith.maximumf %209, %210 : vector<32x128xf32>
    %212 = tpu.iota {dimensions = array<i32: 0>} : vector<32x128xi32>
    %c16_i32 = arith.constant 16 : i32
    %c0_i32 = arith.constant 0 : i32
    %213 = arith.cmpi eq, %c16_i32, %c0_i32 : i32
    %c1_i32 = arith.constant 1 : i32
    %214 = arith.select %213, %c1_i32, %c16_i32 : i32
    %215 = vector.broadcast %214 : i32 to vector<32x128xi32>
    %216 = arith.remsi %212, %215 : vector<32x128xi32>
    %c0_i32_90 = arith.constant 0 : i32
    %217 = vector.broadcast %c0_i32_90 : i32 to vector<32x128xi32>
    %218 = arith.cmpi ne, %216, %217 : vector<32x128xi32>
    %c0_i32_91 = arith.constant 0 : i32
    %219 = vector.broadcast %c0_i32_91 : i32 to vector<32x128xi32>
    %220 = arith.cmpi slt, %216, %219 : vector<32x128xi32>
    %c0_i32_92 = arith.constant 0 : i32
    %221 = arith.cmpi slt, %214, %c0_i32_92 : i32
    %222 = vector.broadcast %221 : i1 to vector<32x128xi1>
    %223 = vector.broadcast %222 : vector<32x128xi1> to vector<32x128xi1>
    %224 = arith.xori %220, %223 : vector<32x128xi1>
    %225 = arith.andi %224, %218 : vector<32x128xi1>
    %226 = vector.broadcast %214 : i32 to vector<32x128xi32>
    %227 = arith.addi %216, %226 : vector<32x128xi32>
    %228 = arith.select %225, %227, %216 : vector<32x128xi1>, vector<32x128xi32>
    %229 = tpu.iota {dimensions = array<i32: 1>} : vector<32x128xi32>
    %c8_i32_93 = arith.constant 8 : i32
    %230 = vector.broadcast %c8_i32_93 : i32 to vector<32x128xi32>
    %231 = arith.cmpi slt, %228, %230 : vector<32x128xi32>
    %c64_i32 = arith.constant 64 : i32
    %232 = vector.broadcast %c64_i32 : i32 to vector<32x128xi32>
    %233 = arith.cmpi slt, %229, %232 : vector<32x128xi32>
    %234 = arith.andi %231, %233 : vector<32x128xi1>
    %cst_94 = arith.constant dense<true> : vector<32x128xi1>
    %235 = arith.xori %231, %cst_94 : vector<32x128xi1>
    %cst_95 = arith.constant dense<true> : vector<32x128xi1>
    %236 = arith.xori %233, %cst_95 : vector<32x128xi1>
    %237 = arith.andi %235, %236 : vector<32x128xi1>
    %238 = arith.ori %234, %237 : vector<32x128xi1>
    %cst_96 = arith.constant 0.000000e+00 : f32
    %239 = vector.broadcast %cst_96 : f32 to vector<32x128xf32>
    %240 = arith.select %238, %211, %239 : vector<32x128xi1>, vector<32x128xf32>
    %c0_97 = arith.constant 0 : index
    %c0_98 = arith.constant 0 : index
    %241 = vector.load %arg23[%c0_97, %c0_98] : memref<128x32xf32, #tpu.memory_space<vmem>>, vector<128x32xf32>
    %cst_99 = arith.constant dense<0.000000e+00> : vector<32x32xf32>
    %242 = tpu.matmul %240, %241, %cst_99 {dimension_numbers = #tpu.dot_dimension_numbers<[1], [0], [0], [1], [0, 0, 1, 1], [], []>} : vector<32x128xf32>, vector<128x32xf32>, vector<32x32xf32> -> vector<32x32xf32>
    %c0_100 = arith.constant 0 : index
    %c0_101 = arith.constant 0 : index
    %243 = vector.load %arg24[%c0_100, %c0_101] : memref<2x32xf32, #tpu.memory_space<vmem>>, vector<2x32xf32>
    %244 = tpu.iota {dimensions = array<i32: 0>} : vector<32x32xi32>
    %c16_i32_102 = arith.constant 16 : i32
    %c0_i32_103 = arith.constant 0 : i32
    %245 = arith.cmpi eq, %c16_i32_102, %c0_i32_103 : i32
    %c1_i32_104 = arith.constant 1 : i32
    %246 = arith.select %245, %c1_i32_104, %c16_i32_102 : i32
    %247 = vector.broadcast %246 : i32 to vector<32x32xi32>
    %248 = arith.remsi %244, %247 : vector<32x32xi32>
    %c0_i32_105 = arith.constant 0 : i32
    %249 = vector.broadcast %c0_i32_105 : i32 to vector<32x32xi32>
    %250 = arith.cmpi ne, %248, %249 : vector<32x32xi32>
    %c0_i32_106 = arith.constant 0 : i32
    %251 = vector.broadcast %c0_i32_106 : i32 to vector<32x32xi32>
    %252 = arith.cmpi slt, %248, %251 : vector<32x32xi32>
    %c0_i32_107 = arith.constant 0 : i32
    %253 = arith.cmpi slt, %246, %c0_i32_107 : i32
    %254 = vector.broadcast %253 : i1 to vector<32x32xi1>
    %255 = vector.broadcast %254 : vector<32x32xi1> to vector<32x32xi1>
    %256 = arith.xori %252, %255 : vector<32x32xi1>
    %257 = arith.andi %256, %250 : vector<32x32xi1>
    %258 = vector.broadcast %246 : i32 to vector<32x32xi32>
    %259 = arith.addi %248, %258 : vector<32x32xi32>
    %260 = arith.select %257, %259, %248 : vector<32x32xi1>, vector<32x32xi32>
    %c8_i32_108 = arith.constant 8 : i32
    %261 = vector.broadcast %c8_i32_108 : i32 to vector<32x32xi32>
    %262 = arith.cmpi slt, %260, %261 : vector<32x32xi32>
    %263 = vector.extract_strided_slice %243 {offsets = [0, 0], sizes = [1, 32], strides = [1, 1]} : vector<2x32xf32> to vector<1x32xf32>
    %264 = vector.extract_strided_slice %243 {offsets = [1, 0], sizes = [1, 32], strides = [1, 1]} : vector<2x32xf32> to vector<1x32xf32>
    %265 = vector.shape_cast %263 : vector<1x32xf32> to vector<1x32xf32>
    %266 = vector.broadcast %265 : vector<1x32xf32> to vector<32x32xf32>
    %267 = vector.shape_cast %264 : vector<1x32xf32> to vector<1x32xf32>
    %268 = vector.broadcast %267 : vector<1x32xf32> to vector<32x32xf32>
    %269 = arith.select %262, %266, %268 : vector<32x32xi1>, vector<32x32xf32>
    %270 = arith.addf %242, %269 : vector<32x32xf32>
    %271 = arith.addf %270, %204 : vector<32x32xf32>
    %272 = vector.extract_strided_slice %5 {offsets = [2, 0], sizes = [1, 32], strides = [1, 1]} : vector<3x32xf32> to vector<1x32xf32>
    %273 = vector.extract_strided_slice %6 {offsets = [2, 0], sizes = [1, 32], strides = [1, 1]} : vector<3x32xf32> to vector<1x32xf32>
    %cst_109 = arith.constant dense<0.000000e+00> : vector<32xf32>
    %274 = vector.multi_reduction <add>, %271, %cst_109 [1] : vector<32x32xf32> to vector<32xf32>
    %275 = vector.shape_cast %274 : vector<32xf32> to vector<32x1xf32>
    %cst_110 = arith.constant 3.200000e+01 : f32
    %276 = vector.broadcast %cst_110 : f32 to vector<32x1xf32>
    %277 = arith.divf %275, %276 : vector<32x1xf32>
    %278 = vector.broadcast %277 : vector<32x1xf32> to vector<32x32xf32>
    %279 = arith.subf %271, %278 : vector<32x32xf32>
    %280 = arith.mulf %279, %279 : vector<32x32xf32>
    %cst_111 = arith.constant dense<0.000000e+00> : vector<32xf32>
    %281 = vector.multi_reduction <add>, %280, %cst_111 [1] : vector<32x32xf32> to vector<32xf32>
    %282 = vector.shape_cast %281 : vector<32xf32> to vector<32x1xf32>
    %cst_112 = arith.constant 3.200000e+01 : f32
    %283 = vector.broadcast %cst_112 : f32 to vector<32x1xf32>
    %284 = arith.divf %282, %283 : vector<32x1xf32>
    %285 = vector.broadcast %277 : vector<32x1xf32> to vector<32x32xf32>
    %286 = arith.subf %271, %285 : vector<32x32xf32>
    %cst_113 = arith.constant 9.99999974E-6 : f32
    %287 = vector.broadcast %cst_113 : f32 to vector<32x1xf32>
    %288 = arith.addf %284, %287 : vector<32x1xf32>
    %289 = math.rsqrt %288 : vector<32x1xf32>
    %290 = vector.broadcast %289 : vector<32x1xf32> to vector<32x32xf32>
    %291 = arith.mulf %286, %290 : vector<32x32xf32>
    %292 = vector.broadcast %272 : vector<1x32xf32> to vector<32x32xf32>
    %293 = arith.mulf %291, %292 : vector<32x32xf32>
    %294 = vector.broadcast %273 : vector<1x32xf32> to vector<32x32xf32>
    %295 = arith.addf %293, %294 : vector<32x32xf32>
    %c0_114 = arith.constant 0 : index
    %c0_115 = arith.constant 0 : index
    %296 = vector.load %arg25[%c0_114, %c0_115] : memref<32x32xf32, #tpu.memory_space<vmem>>, vector<32x32xf32>
    tpu.vector_store %arg25[%c0_114, %c0_115], %295 {strides = array<i32>} : memref<32x32xf32, #tpu.memory_space<vmem>>, vector<32x32xf32>,
    return
  }
}

</mosaic_0001>

<bundles_post_ra>
// kernel: tpu_custom_call.1
= control target key start
LH: loop header
LB: loop body
LE: loop exit
PB: predicated region body
PF: predicated region fallthrough
CT: control target
= control target key end

     0   :  { %s9856_s0 = inlined_call_operand.vmem [shape: f32[32,32], index: 0, kind: input, shape index: {}]   ;;  %s9857_s1 = inlined_call_operand.vmem [shape: f32[48,32], index: 1, kind: input, shape index: {}]   ;;  %s9858_s2 = inlined_call_operand.vmem [shape: f32[48,32], index: 2, kind: input, shape index: {}]   ;;  %s9859_s3 = inlined_call_operand.vmem [shape: f32[32,32], index: 3, kind: input, shape index: {}]   ;;  %s9860_s4 = inlined_call_operand.vmem [shape: f32[48,32], index: 4, kind: input, shape index: {}]   ;;  %s9861_s5 = inlined_call_operand.vmem [shape: f32[32,64], index: 5, kind: input, shape index: {}]   ;;  %s9862_s6 = inlined_call_operand.vmem [shape: f32[1,64], index: 6, kind: input, shape index: {}]   ;;  %s9863_s7 = inlined_call_operand.vmem [shape: f32[32,32], index: 7, kind: input, shape index: {}]   ;;  %s9864_s8 = inlined_call_operand.hbm [shape: f32[1,32], index: 8, kind: input, shape index: {}]   ;;  %s9865_s9 = inlined_call_operand.vmem [shape: f32[4,8,32], index: 9, kind: input, shape index: {}]   ;;  %s9866_s10 = inlined_call_operand.hbm [shape: f32[1,32], index: 10, kind: input, shape index: {}]   ;;  %s9867_s11 = inlined_call_operand.vmem [shape: f32[32,32], index: 11, kind: input, shape index: {}]   ;;  %s9868_s12 = inlined_call_operand.hbm [shape: f32[1,32], index: 12, kind: input, shape index: {}]   ;;  %s9869_s13 = inlined_call_operand.vmem [shape: f32[32,32], index: 13, kind: input, shape index: {}]   ;;  %s9870_s14 = inlined_call_operand.hbm [shape: f32[1,32], index: 14, kind: input, shape index: {}]   ;;  %s9871_s15 = inlined_call_operand.vmem [shape: f32[32,32], index: 15, kind: input, shape index: {}]   ;;  %s9872_s16 = inlined_call_operand.hbm [shape: f32[1,32], index: 16, kind: input, shape index: {}]   ;;  %s9873_s17 = inlined_call_operand.vmem [shape: f32[4,8,32], index: 17, kind: input, shape index: {}]   ;;  %s9874_s18 = inlined_call_operand.hbm [shape: f32[1,32], index: 18, kind: input, shape index: {}]   ;;  %s9875_s19 = inlined_call_operand.hbm [shape: f32[3,32], index: 19, kind: input, shape index: {}]   ;;  %s9876_s20 = inlined_call_operand.hbm [shape: f32[3,32], index: 20, kind: input, shape index: {}]   ;;  %s9877_s21 = inlined_call_operand.vmem [shape: f32[32,128], index: 21, kind: input, shape index: {}]   ;;  %s9878_s22 = inlined_call_operand.hbm [shape: f32[1,128], index: 22, kind: input, shape index: {}]   ;;  %s9879_s23 = inlined_call_operand.vmem [shape: f32[128,32], index: 23, kind: input, shape index: {}]   ;;  %s9880_s24 = inlined_call_operand.vmem [shape: f32[2,32], index: 24, kind: input, shape index: {}]   ;;  %s9881_s25 = inlined_call_operand.hbm [shape: f32[32,32], index: 25, kind: output, shape index: {}]  }
   0x1   :  { %9890 = sst [smem:[#allocation24_spill]] %s9856_s0 }
   0x2   :  { %9891 = sst [smem:[#allocation25_spill]] %s9857_s1 }
   0x3   :  { %9892 = sst [smem:[#allocation26_spill]] %s9858_s2 }
   0x4   :  { %9893 = sst [smem:[#allocation27_spill]] %s9859_s3 }
   0x5   :  { %9894 = sst [smem:[#allocation28_spill]] %s9860_s4 }
   0x6   :  { %9895 = sst [smem:[#allocation29_spill]] %s9861_s5 }
   0x7   :  { %9896 = sst [smem:[#allocation30_spill]] %s9862_s6 }
   0x8   :  { %9897 = sst [smem:[#allocation31_spill]] %s9863_s7 }
   0x9   :  { %9898 = sst [smem:[#allocation32_spill]] %s9864_s8 }
   0xa   :  { %9899 = sst [smem:[#allocation33_spill]] %s9865_s9 }
   0xb   :  { %30 = vsyncpa [#allocation3], 0 }
   0xc   :  { %31 = vsyncpa [#allocation6], 0 }
   0xd   :  { %32 = vsyncpa [#allocation9], 0 }
   0xe   :  { %33 = vsyncpa [#allocation12], 0 }
   0xf   :  { %34 = vsyncpa [#allocation15], 0  ;;  %s70_s6 = sshll.u32 %s9866_s10, 4  ;;  %s71_s6 = int_to_ptr.hbm [resolvable:$true] %s70_s6 }
  0x10   :  { %35 = vsyncpa [#allocation4], 0  ;;  %s7069_s30 = smov [#allocation5]   ;;  %s96_s1 = sshll.u32 %s9870_s14, 4  ;;  %s97_s1 = int_to_ptr.hbm [resolvable:$true] %s96_s1 }
  0x11   :  { %s72_s7 = sshll.u32 %s7069_s30, 4  ;;  %s7070_s8 = smov [#allocation8]   ;;  %s73_s7 = int_to_ptr.vmem [resolvable:$true] %s72_s7 }
  0x12   :  { %75 = dma.hbm_to_vmem [thread:$0]  %s71_s6, 16, %s73_s7, [#allocation6]  }
  0x13   :  { %s98_s27 = sshll.u32 %s7070_s8, 4  ;;  %s122_s9 = sshll.u32 %s9874_s18, 4  ;;  %s99_s27 = int_to_ptr.vmem [resolvable:$true] %s98_s27  ;;  %s123_s9 = int_to_ptr.hbm [resolvable:$true] %s122_s9 }
  0x14   :  { %101 = dma.hbm_to_vmem [thread:$0]  %s97_s1, 16, %s99_s27, [#allocation9]  }
  0x15   :  { %s144_s0 = sshll.u32 %s9876_s20, 4  ;;  %s7071_s29 = smov [#allocation11]   ;;  %s145_s0 = int_to_ptr.hbm [resolvable:$true] %s144_s0 }
  0x16   :  { %s124_s2 = sshll.u32 %s7071_s29, 4  ;;  %s7072_s14 = smov [#allocation14]   ;;  %s125_s2 = int_to_ptr.vmem [resolvable:$true] %s124_s2 }
  0x17   :  { %127 = dma.hbm_to_vmem [thread:$0]  %s123_s9, 16, %s125_s2, [#allocation12]  }
  0x18   :  { %s146_s6 = sshll.u32 %s7072_s14, 4  ;;  %s9900_s3 = sld [smem:[#allocation32_spill]]  ;;  %s147_s6 = int_to_ptr.vmem [resolvable:$true] %s146_s6 }
  0x19   :  { %149 = dma.hbm_to_vmem [thread:$0]  %s145_s0, 64, %s147_s6, [#allocation15]  }
  0x1a   :  { %s83_s8 = sshll.u32 %s9868_s12, 4  ;;  %s7073_s27 = smov [#allocation2]   ;;  %s84_s8 = int_to_ptr.hbm [resolvable:$true] %s83_s8 }
  0x1b   :  { %s59_s20 = sshll.u32 %s7073_s27, 4  ;;  %s7074_s4 = smov [#allocation7]   ;;  %s60_s20 = int_to_ptr.vmem [resolvable:$true] %s59_s20 }
  0x1c   :  { %s85_s28 = sshll.u32 %s7074_s4, 4  ;;  %s109_s5 = sshll.u32 %s9872_s16, 4  ;;  %s86_s28 = int_to_ptr.vmem [resolvable:$true] %s85_s28  ;;  %s110_s5 = int_to_ptr.hbm [resolvable:$true] %s109_s5 }
  0x1d   :  { %88 = dma.hbm_to_vmem [thread:$0]  %s84_s8, 16, %s86_s28, [#allocation6]  }
  0x1e   :  { %s57_s26 = sshll.u32 %s9900_s3, 4  ;;  %s133_s2 = sshll.u32 %s9875_s19, 4  ;;  %s58_s26 = int_to_ptr.hbm [resolvable:$true] %s57_s26  ;;  %s134_s2 = int_to_ptr.hbm [resolvable:$true] %s133_s2 }
  0x1f   :  { %62 = dma.hbm_to_vmem [thread:$0]  %s58_s26, 16, %s60_s20, [#allocation3]  }
  0x20   :  { %s7075_s14 = smov [#allocation10]   ;;  %s7076_s6 = smov [#allocation13]  }
  0x21   :  { %s111_s12 = sshll.u32 %s7075_s14, 4  ;;  %s135_s30 = sshll.u32 %s7076_s6, 4  ;;  %s112_s12 = int_to_ptr.vmem [resolvable:$true] %s111_s12  ;;  %s136_s30 = int_to_ptr.vmem [resolvable:$true] %s135_s30 }
  0x22   :  { %114 = dma.hbm_to_vmem [thread:$0]  %s110_s5, 16, %s112_s12, [#allocation9]  }
  0x23   :  { %s157_s26 = sshll.u32 %s9878_s22, 4  ;;  %s7077_s16 = smov [#allocation16]   ;;  %s158_s26 = int_to_ptr.hbm [resolvable:$true] %s157_s26 }
  0x24   :  { %138 = dma.hbm_to_vmem [thread:$0]  %s134_s2, 64, %s136_s30, [#allocation12]  }
  0x25   :  { %s159_s18 = sshll.u32 %s7077_s16, 4  ;;  %s160_s18 = int_to_ptr.vmem [resolvable:$true] %s159_s18 }
  0x26   :  { %162 = dma.hbm_to_vmem [thread:$0]  %s158_s26, 16, %s160_s18, [#allocation15]  }
  0x27   :  { %7057 = dma.done.wait [#allocation3], 16  }
  0x28   :  { %7058 = vsyncadd [#allocation3], 4294967280 }
  0x29   :  { %7059 = dma.done.wait [#allocation6], 32  }
  0x2a   :  { %7060 = vsyncadd [#allocation6], 4294967264 }
  0x2b   :  { %7061 = dma.done.wait [#allocation9], 32  }
  0x2c   :  { %7062 = vsyncadd [#allocation9], 4294967264 }
  0x2d   :  { %7063 = dma.done.wait [#allocation12], 80  }
  0x2e   :  { %7064 = vsyncadd [#allocation12], 4294967216 }
  0x2f   :  { %7065 = dma.done.wait [#allocation15], 80  }
  0x30   :  { %7066 = vsyncadd [#allocation15], 4294967216  ;;  %s9901_s22 = sld [smem:[#allocation29_spill]]  ;;  %vm243_vm0 = vcmask 261120   ;;  %s7078_s18 = smov 88   ;;  %vm396_vm1 = vcmask 1047556  }
  0x31   :  { %s9902_s28 = sld [smem:[#allocation24_spill]]  ;;  %s7079_s19 = smov 120   ;;  %v7085_v24 = vmov 1983009808   ;;  %v7086_v42 = vmov 1934713408  }
  0x32   :  { %s9903_s5 = sld [smem:[#allocation27_spill]]  ;;  %s7080_s1 = smov 112   ;;  %v401_v25 = vunpack.c.l.s4 %v7085_v24  ;;  %v449_v43 = vunpack.c.l.s4 %v7086_v42  ;;  %vm1084_vm2 = vcmask 64512   ;;  %vm1225_vm4 = vcmask 130048  }
  0x33   :  { %s9904_s16 = sld [smem:[#allocation30_spill]]  ;;  %s7082_s8 = smov 96   ;;  %vm4180_vm12 = vcmask 195584  }
  0x34   :  { %s7083_s27 = smov 72   ;;  %s7084_s20 = smov 80   ;;  %v7329_v29 = vunpack.c.0.s8 %v401_v25  ;;  %v7350_v59 = vunpack.c.0.s8 %v449_v43 }
  0x35   :  { %s9905_s10 = sld [smem:[#allocation31_spill]]  ;;  %s6363_s3 = sshll.u32 %s9881_s25, 4  ;;  %s6364_s3 = int_to_ptr.hbm [resolvable:$true] %s6363_s3 }
  0x36   :  { %v238_v0 = vld [vmem:[%s9901_s22 + $0x18] sm:$0xff]  ;;  %v237_v1 = vld [vmem:[%s9901_s22 + $0x10] sm:$0xff]  ;;  %v236_v4 = vld [vmem:[%s9901_s22 + $0x8] sm:$0xff]  ;;  %s9909_s0 = sld [smem:[#allocation26_spill]]  ;;  %s7091_s26 = smov 128  }
  0x37   :  { %268 = vmatpush.msra.mxu0 %v238_v0  ;;  %v203_v2 = vld [vmem:[%s9902_s28] sm:$0xff]  ;;  %v204_v7 = vld [vmem:[%s9902_s28 + $0x8] sm:$0xff]  ;;  %v7325_v27 = vld [vmem:[%s9902_s28 + $0x10] sm:$0xff] }
  0x38   :  { %v219_v3 = vld [vmem:[%s9903_s5] sm:$0xff]  ;;  %v220_v8 = vld [vmem:[%s9903_s5 + $0x8] sm:$0xff] }
  0x39   :  { %269 = vmatpush.msra.mxu0 %v237_v1  ;;  %v235_v5 = vld [vmem:[%s9901_s22] sm:$0xff]  ;;  %v231_v6 = vadd.f32 %v219_v3, %v203_v2  ;;  %v232_v9 = vadd.f32 %v220_v8, %v204_v7  ;;  %s7081_s22 = smov 104  }
  0x3a   :  { %v7279_v10 = vld [vmem:[%s9904_s16] ss:$0 sm:$0xff]  ;;  %s7092_s16 = smov 8  }
  0x3b   :  { %270 = vmatpush.msra.mxu0 %v236_v4  ;;  %v288_v15 = vld [vmem:[%s9905_s10 + $0x18] sm:$0xff]  ;;  %v287_v17 = vld [vmem:[%s9905_s10 + $0x10] sm:$0xff]  ;;  %v286_v19 = vld [vmem:[%s9905_s10 + $0x8] sm:$0xff] }
  0x3c   :  { %6548 = vmatpush.msra.mxu2 %v288_v15  ;;  %317 = vmatpush.msra.mxu1 %v288_v15  ;;  %v285_v20 = vld [vmem:[%s9905_s10] sm:$0xff]  ;;  %v7367_v15 = vld [vmem:[%s9902_s28 + $0x18] sm:$0xff] }
  0x3d   :  { %271 = vmatpush.msra.mxu0 %v235_v5 }
  0x3e   :  { %6380 = vmatmul.msk.f32.vlgmr.msra.gmra.mxu0 %vm243_vm0, %v231_v6  ;;  %6549 = vmatpush.msra.mxu2 %v287_v17 }
  0x3f   :  { %318 = vmatpush.msra.mxu1 %v287_v17 }
  0x40   :  { %6550 = vmatpush.msra.mxu2 %v286_v19 }
  0x41   :  { %319 = vmatpush.msra.mxu1 %v286_v19 }
  0x42   :  { %6551 = vmatpush.msra.mxu2 %v285_v20 }
  0x43   :  { %320 = vmatpush.msra.mxu1 %v285_v20  ;;  %6385 = vmatmul.msk.f32.vlgmr.msra.gmra.mxu2 %vm243_vm0, %v204_v7 }
  0x44   :  { %6384 = vmatmul.msk.f32.vlgmr.msra.gmra.mxu1 %vm243_vm0, %v203_v2 }
  0x46   :  { %6381 = vmatmul.msk.f32.gmra.mxu0 %vm243_vm0, %v232_v9 }
  0x4b   :  { %6386 = vmatmul.msk.f32.gmra.mxu2 %vm243_vm0, %v7325_v27 }
  0x53   :  { %6387 = vmatmul.msk.f32.gmra.mxu2 %vm243_vm0, %v7367_v15 }
  0xbb   :  { %v273_v11 = vpop.f32.mrf.mxu0 }
  0xbc   :  { %v7282_v12 = vadd.f32 %v7279_v10, %v273_v11 }
  0xbe   :  { %377 = vrot.lane.b32.xlu2 %v7282_v12, %s7078_s18  ;;  %353 = vrot.lane.b32.xlu1 %v7282_v12, %s7079_s19  ;;  %v398_v39 = vrot.slane %v7282_v12, 4 }
  0xc3   :  { %v276_v13 = vpop.f32.mrf.mxu0 }
  0xc4   :  { %v277_v14 = vadd.f32 %v7279_v10, %v276_v13 }
  0xc6   :  { %355 = vrot.lane.b32.xlu0 %v277_v14, %s7079_s19  ;;  %361 = vrot.lane.b32.xlu2 %v277_v14, %s7080_s1  ;;  %v510_v28 = vrot.slane %v277_v14, 4 }
  0xc7   :  { %365 = vrot.lane.b32.xlu1 %v7282_v12, %s7081_s22 }
  0xce   :  { %367 = vrot.lane.b32.xlu0 %v277_v14, %s7081_s22  ;;  %373 = vrot.lane.b32.xlu2 %v277_v14, %s7082_s8 }
  0xcf   :  { %359 = vrot.lane.b32.xlu1 %v7282_v12, %s7080_s1 }
  0xd6   :  { %391 = vrot.lane.b32.xlu0 %v277_v14, %s7083_s27  ;;  %371 = vrot.lane.b32.xlu2 %v7282_v12, %s7082_s8 }
  0xd7   :  { %379 = vrot.lane.b32.xlu1 %v277_v14, %s7078_s18 }
  0xde   :  { %385 = vrot.lane.b32.xlu0 %v277_v14, %s7084_s20 }
  0xdf   :  { %383 = vrot.lane.b32.xlu1 %v7282_v12, %s7084_s20 }
  0xe6   :  { %389 = vrot.lane.b32.xlu0 %v7282_v12, %s7083_s27 }
 0x118   :  { %v7309_v16 = vpop.permute.xlu2 %377 }
 0x120   :  { %v362_v21 = vpop.permute.xlu2 %361 }
 0x121   :  { %v508_v26 = vrot.slane %v362_v21, 4  ;;  %v511_v30 = vsel %vm396_vm1, %v362_v21, %v510_v28  ;;  %v434_v21 = vrot.slane %v7309_v16, 4 }
 0x122   :  { %v519_v40 = vperm.slane %v511_v30, %v7329_v29 }
 0x123   :  { %v509_v32 = vsel %vm396_vm1, %v508_v26, %v277_v14 }
 0x124   :  { %v515_v46 = vperm.slane %v509_v32, %v7329_v29  ;;  %v570_v53 = vrot.slane %v519_v40, 4 }
 0x126   :  { %v558_v57 = vrot.slane %v515_v46, 4 }
 0x128   :  { %v7336_v41 = vpop.permute.xlu2 %373 }
 0x130   :  { %v354_v18 = vpop.permute.xlu1 %353  ;;  %v372_v9 = vpop.permute.xlu2 %371 }
 0x131   :  { %v410_v35 = vrot.slane %v354_v18, 4  ;;  %v422_v25 = vrot.slane %v372_v9, 4 }
 0x138   :  { %v356_v22 = vpop.permute.xlu0 %355 }
 0x139   :  { %v366_v23 = vpop.permute.xlu1 %365  ;;  %v522_v31 = vrot.slane %v356_v22, 4 }
 0x13a   :  { %v408_v33 = vrot.slane %v366_v23, 4  ;;  %v411_v47 = vsel %vm396_vm1, %v366_v23, %v410_v35 }
 0x13b   :  { %v419_v54 = vperm.slane %v411_v47, %v7329_v29 }
 0x13c   :  { %v409_v50 = vsel %vm396_vm1, %v408_v33, %v354_v18 }
 0x13d   :  { %v415_v58 = vperm.slane %v409_v50, %v7329_v29  ;;  %v456_v2 = vrot.slane %v419_v54, 4 }
 0x13f   :  { %v444_v6 = vrot.slane %v415_v58, 4 }
 0x140   :  { %v368_v34 = vpop.permute.xlu0 %367 }
 0x141   :  { %v520_v36 = vrot.slane %v368_v34, 4  ;;  %v523_v37 = vsel %vm396_vm1, %v368_v34, %v522_v31  ;;  %v360_v38 = vpop.permute.xlu1 %359 }
 0x142   :  { %v531_v44 = vperm.slane %v523_v37, %v7329_v29  ;;  %v395_v45 = vrot.slane %v360_v38, 4  ;;  %v399_v49 = vsel %vm396_vm1, %v360_v38, %v398_v39 }
 0x143   :  { %v521_v48 = vsel %vm396_vm1, %v520_v36, %v356_v22  ;;  %v407_v56 = vperm.slane %v399_v49, %v7329_v29  ;;  %v534_v22 = vrot.slane %v7336_v41, 4 }
 0x144   :  { %v527_v51 = vperm.slane %v521_v48, %v7329_v29  ;;  %v397_v52 = vsel %vm396_vm1, %v395_v45, %v7282_v12  ;;  %v568_v55 = vrot.slane %v531_v44, 4  ;;  %v571_v60 = vsel %vm396_vm1, %v531_v44, %v570_v53 }
 0x145   :  { %v403_v61 = vperm.slane %v397_v52, %v7329_v29  ;;  %v458_v4 = vrot.slane %v407_v56, 4  ;;  %v7357_v7 = vperm.slane %v571_v60, %v7350_v59  ;;  %v457_v13 = vsel %vm396_vm1, %v456_v2, %v407_v56 }
 0x146   :  { %v556_v63 = vrot.slane %v527_v51, 4  ;;  %v559_v0 = vsel %vm396_vm1, %v527_v51, %v558_v57  ;;  %v569_v3 = vsel %vm396_vm1, %v568_v55, %v519_v40  ;;  %v7381_v28 = vperm.slane %v457_v13, %v7350_v59 }
 0x147   :  { %v7360_v11 = vperm.slane %v559_v0, %v7350_v59  ;;  %v446_v12 = vrot.slane %v403_v61, 4  ;;  %v575_v18 = vperm.slane %v569_v3, %v7350_v59  ;;  %v445_v19 = vsel %vm396_vm1, %v444_v6, %v403_v61 }
 0x148   :  { %v392_v62 = vpop.permute.xlu0 %391  ;;  %v557_v17 = vsel %vm396_vm1, %v556_v63, %v515_v46  ;;  %v459_v23 = vsel %vm396_vm1, %v419_v54, %v458_v4  ;;  %v618_v26 = vrot.slane %v7357_v7, 4  ;;  %v7388_v34 = vperm.slane %v445_v19, %v7350_v59 }
 0x149   :  { %v380_v1 = vpop.permute.xlu1 %379  ;;  %v544_v5 = vrot.slane %v392_v62, 4  ;;  %v563_v31 = vperm.slane %v557_v17, %v7350_v59  ;;  %v610_v32 = vrot.slane %v7360_v11, 4  ;;  %v447_v33 = vsel %vm396_vm1, %v415_v58, %v446_v12 }
 0x14a   :  { %v546_v8 = vrot.slane %v380_v1, 4  ;;  %v614_v36 = vrot.slane %v575_v18, 4  ;;  %v7391_v37 = vperm.slane %v459_v23, %v7350_v59  ;;  %v7397_v46 = vperm.slane %v447_v33, %v7350_v59 }
 0x14b   :  { %v545_v14 = vsel %vm396_vm1, %v544_v5, %v380_v1  ;;  %v606_v54 = vrot.slane %v563_v31, 4  ;;  %v494_v55 = vrot.slane %v7388_v34, 4  ;;  %v502_v56 = vrot.slane %v7381_v28, 4 }
 0x14c   :  { %v547_v20 = vsel %vm396_vm1, %v392_v62, %v546_v8  ;;  %v551_v30 = vperm.slane %v545_v14, %v7329_v29  ;;  %v498_v2 = vrot.slane %v7397_v46, 4  ;;  %v506_v3 = vrot.slane %v7391_v37, 4 }
 0x14d   :  { %v555_v24 = vperm.slane %v547_v20, %v7329_v29 }
 0x14e   :  { %v580_v47 = vrot.slane %v551_v30, 4 }
 0x14f   :  { %v592_v42 = vrot.slane %v555_v24, 4 }
 0x150   :  { %v386_v35 = vpop.permute.xlu0 %385 }
 0x151   :  { %v532_v38 = vrot.slane %v386_v35, 4  ;;  %v535_v39 = vsel %vm396_vm1, %v386_v35, %v534_v22  ;;  %v384_v40 = vpop.permute.xlu1 %383 }
 0x152   :  { %v543_v43 = vperm.slane %v535_v39, %v7329_v29  ;;  %v420_v44 = vrot.slane %v384_v40, 4  ;;  %v423_v45 = vsel %vm396_vm1, %v384_v40, %v422_v25 }
 0x153   :  { %v533_v48 = vsel %vm396_vm1, %v532_v38, %v7336_v41  ;;  %v431_v49 = vperm.slane %v423_v45, %v7329_v29 }
 0x154   :  { %v539_v50 = vperm.slane %v533_v48, %v7329_v29  ;;  %v593_v51 = vsel %vm396_vm1, %v592_v42, %v543_v43  ;;  %v594_v52 = vrot.slane %v543_v43, 4  ;;  %v421_v53 = vsel %vm396_vm1, %v420_v44, %v372_v9 }
 0x155   :  { %v599_v57 = vperm.slane %v593_v51, %v7350_v59  ;;  %v427_v61 = vperm.slane %v421_v53, %v7329_v29  ;;  %v482_v5 = vrot.slane %v431_v49, 4 }
 0x156   :  { %v581_v58 = vsel %vm396_vm1, %v580_v47, %v539_v50  ;;  %v582_v60 = vrot.slane %v539_v50, 4  ;;  %v595_v41 = vsel %vm396_vm1, %v555_v24, %v594_v52 }
 0x157   :  { %v587_v62 = vperm.slane %v581_v58, %v7350_v59  ;;  %v603_v63 = vperm.slane %v595_v41, %v7350_v59  ;;  %v612_v0 = vrot.slane %v599_v57, 4  ;;  %v7414_v1 = vsel %vm396_vm1, %v599_v57, %v614_v36 }
 0x158   :  { %v583_v4 = vsel %vm396_vm1, %v551_v30, %v582_v60  ;;  %v390_v6 = vpop.permute.xlu0 %389  ;;  %v770_v13 = vrot.slane %v7414_v1, 4  ;;  %v470_v19 = vrot.slane %v427_v61, 4 }
 0x159   :  { %v591_v8 = vperm.slane %v583_v4, %v7350_v59  ;;  %v604_v9 = vrot.slane %v587_v62, 4  ;;  %v7421_v12 = vsel %vm396_vm1, %v612_v0, %v575_v18  ;;  %v616_v14 = vrot.slane %v603_v63, 4 }
 0x15a   :  { %v7425_v17 = vsel %vm396_vm1, %v603_v63, %v618_v26  ;;  %v432_v20 = vrot.slane %v390_v6, 4  ;;  %v7428_v22 = vsel %vm396_vm1, %v587_v62, %v606_v54  ;;  %v435_v24 = vsel %vm396_vm1, %v390_v6, %v434_v21 }
 0x15b   :  { %v608_v23 = vrot.slane %v591_v8, 4  ;;  %v7432_v25 = vsel %vm396_vm1, %v604_v9, %v563_v31  ;;  %v758_v18 = vrot.slane %v7421_v12, 4  ;;  %v768_v30 = vrot.slane %v7425_v17, 4 }
 0x15c   :  { %v433_v33 = vsel %vm396_vm1, %v432_v20, %v7309_v16  ;;  %v443_v26 = vperm.slane %v435_v24, %v7329_v29  ;;  %v7445_v21 = vsel %vm396_vm1, %v591_v8, %v610_v32  ;;  %v734_v31 = vrot.slane %v7432_v25, 4 }
 0x15d   :  { %v439_v35 = vperm.slane %v433_v33, %v7329_v29  ;;  %v7442_v36 = vsel %vm396_vm1, %v608_v23, %v7360_v11  ;;  %v7451_v40 = vsel %vm396_vm1, %v616_v14, %v7357_v7  ;;  %v746_v16 = vrot.slane %v7428_v22, 4 }
 0x15e   :  { %v480_v38 = vrot.slane %v443_v26, 4  ;;  %v483_v39 = vsel %vm396_vm1, %v443_v26, %v482_v5  ;;  %v735_v32 = vsel %vm396_vm1, %v7442_v36, %v734_v31  ;;  %v744_v47 = vrot.slane %v7445_v21, 4 }
 0x15f   :  { %v468_v42 = vrot.slane %v439_v35, 4  ;;  %v471_v43 = vsel %vm396_vm1, %v439_v35, %v470_v19  ;;  %v491_v11 = vperm.slane %v483_v39, %v7350_v59  ;;  %v747_v7 = vsel %vm396_vm1, %v7445_v21, %v746_v16 }
 0x160   :  { %v479_v44 = vperm.slane %v471_v43, %v7350_v59  ;;  %v481_v45 = vsel %vm396_vm1, %v480_v38, %v431_v49  ;;  %v743_v57 = vperm.slane %v735_v32, %v7329_v29  ;;  %v755_v49 = vperm.slane %v747_v7, %v7329_v29 }
 0x161   :  { %v469_v48 = vsel %vm396_vm1, %v468_v42, %v427_v61  ;;  %v487_v50 = vperm.slane %v481_v45, %v7350_v59  ;;  %v504_v51 = vrot.slane %v491_v11, 4  ;;  %v7466_v52 = vsel %vm396_vm1, %v491_v11, %v506_v3 }
 0x162   :  { %v475_v53 = vperm.slane %v469_v48, %v7350_v59  ;;  %v496_v54 = vrot.slane %v479_v44, 4  ;;  %v656_v61 = vrot.slane %v7466_v52, 4  ;;  %v759_v3 = vsel %vm396_vm1, %v7451_v40, %v758_v18 }
 0x163   :  { %v500_v58 = vrot.slane %v487_v50, 4  ;;  %v503_v60 = vsel %vm396_vm1, %v487_v50, %v502_v56  ;;  %v505_v41 = vsel %vm396_vm1, %v504_v51, %v7391_v37  ;;  %v767_v5 = vperm.slane %v759_v3, %v7329_v29 }
 0x164   :  { %v492_v62 = vrot.slane %v475_v53, 4  ;;  %v644_v63 = vrot.slane %v505_v41, 4  ;;  %v658_v0 = vrot.slane %v503_v60, 4  ;;  %v771_v6 = vsel %vm396_vm1, %v7425_v17, %v770_v13 }
 0x165   :  { %v501_v4 = vsel %vm396_vm1, %v500_v58, %v7381_v28  ;;  %v792_v56 = vrot.slane %v755_v49, 4  ;;  %v779_v37 = vperm.slane %v771_v6, %v7329_v29  ;;  %v794_v8 = vrot.slane %v743_v57, 4 }
 0x166   :  { %v493_v9 = vsel %vm396_vm1, %v492_v62, %v7388_v34  ;;  %v495_v14 = vsel %vm396_vm1, %v475_v53, %v494_v55  ;;  %v818_v28 = vrot.slane %v767_v5, 4  ;;  %v497_v20 = vsel %vm396_vm1, %v496_v54, %v7397_v46 }
 0x167   :  { %v793_v19 = vsel %vm396_vm1, %v792_v56, %v743_v57  ;;  %v499_v13 = vsel %vm396_vm1, %v479_v44, %v498_v2  ;;  %v816_v24 = vrot.slane %v779_v37, 4  ;;  %v620_v18 = vrot.slane %v497_v20, 4 }
 0x168   :  { %v799_v23 = vperm.slane %v793_v19, %v7350_v59  ;;  %v622_v33 = vrot.slane %v493_v9, 4  ;;  %v632_v26 = vrot.slane %v499_v13, 4  ;;  %v634_v35 = vrot.slane %v495_v14, 4 }
 0x169   :  { %v646_v34 = vrot.slane %v501_v4, 4  ;;  %v659_v55 = vsel %vm396_vm1, %v7466_v52, %v658_v0  ;;  %v817_v31 = vsel %vm396_vm1, %v816_v24, %v767_v5  ;;  %v795_v45 = vsel %vm396_vm1, %v755_v49, %v794_v8 }
 0x16a   :  { %v838_v38 = vrot.slane %v799_v23, 4  ;;  %v623_v39 = vsel %vm396_vm1, %v497_v20, %v622_v33  ;;  %v667_v46 = vperm.slane %v659_v55, %v7329_v29  ;;  %v823_v2 = vperm.slane %v817_v31, %v7350_v59 }
 0x16b   :  { %v631_v16 = vperm.slane %v623_v39, %v7329_v29  ;;  %v635_v42 = vsel %vm396_vm1, %v499_v13, %v634_v35  ;;  %v647_v43 = vsel %vm396_vm1, %v505_v41, %v646_v34  ;;  %v803_v50 = vperm.slane %v795_v45, %v7350_v59 }
 0x16c   :  { %v643_v11 = vperm.slane %v635_v42, %v7329_v29  ;;  %v655_v32 = vperm.slane %v647_v43, %v7329_v29  ;;  %v704_v44 = vrot.slane %v667_v46, 4  ;;  %v836_v7 = vrot.slane %v823_v2, 4 }
 0x16d   :  { %v839_v48 = vsel %vm396_vm1, %v823_v2, %v838_v38  ;;  %v819_v51 = vsel %vm396_vm1, %v779_v37, %v818_v28  ;;  %v621_v57 = vsel %vm396_vm1, %v620_v18, %v493_v9  ;;  %v633_v62 = vsel %vm396_vm1, %v632_v26, %v495_v14 }
 0x16e   :  { %6392 = vmatpush.xpose.msk.msra.mxu3 %vm1084_vm2, %v839_v48  ;;  %v680_v52 = vrot.slane %v643_v11, 4  ;;  %v705_v53 = vsel %vm396_vm1, %v704_v44, %v655_v32  ;;  %v827_v54 = vperm.slane %v819_v51, %v7350_v59  ;;  %v837_v58 = vsel %vm396_vm1, %v836_v7, %v799_v23 }
 0x16f   :  { %v711_v49 = vperm.slane %v705_v53, %v7350_v59  ;;  %v7517_v41 = vperm.slane %v621_v57, %v7329_v29  ;;  %6388 = vmatpush.xpose.msk.msrb.mxu2 %vm1084_vm2, %v837_v58  ;;  %v639_v5 = vperm.slane %v633_v62, %v7329_v29  ;;  %v645_v6 = vsel %vm396_vm1, %v644_v63, %v501_v4 }
 0x170   :  { %v681_v0 = vsel %vm396_vm1, %v680_v52, %v631_v16  ;;  %v840_v3 = vrot.slane %v827_v54, 4  ;;  %v732_v56 = vrot.slane %v7442_v36, 4  ;;  %v657_v9 = vsel %vm396_vm1, %v656_v61, %v503_v60 }
 0x171   :  { %v687_v37 = vperm.slane %v681_v0, %v7350_v59  ;;  %v724_v8 = vrot.slane %v711_v49, 4  ;;  %v756_v19 = vrot.slane %v7451_v40, 4  ;;  %v651_v14 = vperm.slane %v645_v6, %v7329_v29 }
 0x172   :  { %v663_v28 = vperm.slane %v657_v9, %v7329_v29  ;;  %v668_v20 = vrot.slane %v639_v5, 4  ;;  %v841_v23 = vsel %vm396_vm1, %v840_v3, %v803_v50  ;;  %v842_v63 = vrot.slane %v803_v50, 4 }
 0x173   :  { %v725_v13 = vsel %vm396_vm1, %v724_v8, %v687_v37  ;;  %v726_v24 = vrot.slane %v687_v37, 4  ;;  %v682_v60 = vrot.slane %v631_v16, 4  ;;  %v706_v61 = vrot.slane %v655_v32, 4 }
 0x174   :  { %6389 = vmatpush.xpose.msk.msrb.mxu2 %vm1084_vm2, %v725_v13  ;;  %v669_v36 = vsel %vm396_vm1, %v668_v20, %v7517_v41  ;;  %v692_v4 = vrot.slane %v663_v28, 4  ;;  %v843_v33 = vsel %vm396_vm1, %v827_v54, %v842_v63  ;;  %v733_v55 = vsel %vm396_vm1, %v732_v56, %v7432_v25 }
 0x175   :  { %v727_v40 = vsel %vm396_vm1, %v711_v49, %v726_v24  ;;  %v675_v18 = vperm.slane %v669_v36, %v7350_v59  ;;  %v683_v35 = vsel %vm396_vm1, %v643_v11, %v682_v60  ;;  %v707_v34 = vsel %vm396_vm1, %v667_v46, %v706_v61  ;;  %v325_v36 = vpop.f32.mrf.mxu2 }
 0x176   :  { %6393 = vmatpush.xpose.msk.msra.mxu3 %vm1084_vm2, %v727_v40  ;;  %v693_v26 = vsel %vm396_vm1, %v692_v4, %v651_v14  ;;  %v691_v39 = vperm.slane %v683_v35, %v7350_v59  ;;  %v715_v2 = vperm.slane %v707_v34, %v7350_v59  ;;  %v745_v16 = vsel %vm396_vm1, %v744_v47, %v7428_v22 }
 0x177   :  { %v699_v31 = vperm.slane %v693_v26, %v7350_v59  ;;  %v718_v38 = vrot.slane %v675_v18, 4  ;;  %v757_v46 = vsel %vm396_vm1, %v756_v19, %v7421_v12  ;;  %v769_v25 = vsel %vm396_vm1, %v768_v30, %v7414_v1 }
 0x178   :  { %6396 = vmatpush.xpose.msk.msra.mxu2 %vm1084_vm2, %v841_v23  ;;  %v728_v11 = vrot.slane %v715_v2, 4  ;;  %v730_v32 = vrot.slane %v691_v39, 4  ;;  %v739_v44 = vperm.slane %v733_v55, %v7329_v29  ;;  %v751_v21 = vperm.slane %v745_v16, %v7329_v29 }
 0x179   :  { %v716_v42 = vrot.slane %v699_v31, 4  ;;  %v719_v43 = vsel %vm396_vm1, %v699_v31, %v718_v38  ;;  %v763_v22 = vperm.slane %v757_v46, %v7329_v29  ;;  %v775_v12 = vperm.slane %v769_v25, %v7329_v29  ;;  %v222_v46 = vld [vmem:[%s9903_s5 + $0x18] sm:$0xff] }
 0x17a   :  { %6400 = vmatpush.xpose.msk.msrb.mxu3 %vm1084_vm2, %v843_v33  ;;  %v670_v47 = vrot.slane %v7517_v41, 4  ;;  %v731_v1 = vsel %vm396_vm1, %v715_v2, %v730_v32  ;;  %v694_v30 = vrot.slane %v651_v14, 4  ;;  %v729_v45 = vsel %vm396_vm1, %v728_v11, %v691_v39 }
 0x17b   :  { %6394 = vmatmul.msk.f32.vlgmr.msra.gmra.mxu3 %vm1084_vm2, %v719_v43  ;;  %v717_v17 = vsel %vm396_vm1, %v716_v42, %v675_v18  ;;  %v780_v7 = vrot.slane %v751_v21, 4  ;;  %v804_v48 = vrot.slane %v775_v12, 4  ;;  %v782_v6 = vrot.slane %v739_v44, 4  ;;  %v221_v18 = vld [vmem:[%s9903_s5 + $0x10] sm:$0xff] }
 0x17c   :  { %6390 = vmatmul.msk.f32.vlgmr.msrb.gmra.mxu2 %vm1084_vm2, %v717_v17  ;;  %v671_v54 = vsel %vm396_vm1, %v639_v5, %v670_v47  ;;  %v695_v57 = vsel %vm396_vm1, %v663_v28, %v694_v30  ;;  %v806_v56 = vrot.slane %v763_v22, 4  ;;  %v337_v60 = vlaneseq  ;;  %v322_v30 = vpop.f32.mrf.mxu1 }
 0x17d   :  { %6397 = vmatpush.xpose.msk.msra.mxu2 %vm1084_vm2, %v729_v45  ;;  %v781_v50 = vsel %vm396_vm1, %v780_v7, %v739_v44  ;;  %v805_v51 = vsel %vm396_vm1, %v804_v48, %v763_v22  ;;  %v679_v0 = vperm.slane %v671_v54, %v7350_v59  ;;  %v703_v3 = vperm.slane %v695_v57, %v7350_v59  ;;  %v7596_v4 = vpop.f32.mrf.mxu2 }
 0x17e   :  { %6401 = vmatpush.xpose.msk.msrb.mxu3 %vm1084_vm2, %v731_v1  ;;  %v787_v52 = vperm.slane %v781_v50, %v7350_v59  ;;  %v811_v53 = vperm.slane %v805_v51, %v7350_v59  ;;  %v783_v8 = vsel %vm396_vm1, %v751_v21, %v782_v6  ;;  %v807_v9 = vsel %vm396_vm1, %v775_v12, %v806_v56  ;;  %v6637_v1 = vld [vmem:[#allocation2] ss:$0 sm:$0xff] }
 0x17f   :  { %v720_v37 = vrot.slane %v703_v3, 4  ;;  %v722_v5 = vrot.slane %v679_v0, 4  ;;  %v791_v28 = vperm.slane %v783_v8, %v7350_v59  ;;  %v815_v20 = vperm.slane %v807_v9, %v7350_v59 }
 0x180   :  { %v828_v58 = vrot.slane %v811_v53, 4  ;;  %v830_v49 = vrot.slane %v787_v52, 4  ;;  %v7598_v61 = vand.u32 127, %v337_v60  ;;  %v233_v33 = vadd.f32 %v221_v18, %v7325_v27 }
 0x181   :  { %v721_v19 = vsel %vm396_vm1, %v720_v37, %v679_v0  ;;  %v723_v14 = vsel %vm396_vm1, %v703_v3, %v722_v5  ;;  %v832_v13 = vrot.slane %v815_v20, 4  ;;  %v834_v23 = vrot.slane %v791_v28, 4 }
 0x182   :  { %v829_v41 = vsel %vm396_vm1, %v828_v58, %v787_v52  ;;  %v831_v62 = vsel %vm396_vm1, %v811_v53, %v830_v49  ;;  %vm341_vm3 = vcmp.ge.s32.totalorder %v7598_v61, 8  ;;  %v7087_v26 = vmov 0.0   ;;  %6382 = vmatmul.msk.f32.gmra.mxu0 %vm243_vm0, %v233_v33 }
 0x183   :  { %6395 = vmatmul.msk.f32.gmra.mxu3 %vm1084_vm2, %v831_v62  ;;  %v833_v24 = vsel %vm396_vm1, %v832_v13, %v791_v28  ;;  %v835_v63 = vsel %vm396_vm1, %v815_v20, %v834_v23  ;;  %v7607_v35 = vsel %vm341_vm3, -1e+09, %v7087_v26  ;;  %v234_v25 = vadd.f32 %v222_v46, %v7367_v15 }
 0x184   :  { %6391 = vmatmul.msk.f32.gmra.mxu2 %vm1084_vm2, %v829_v41  ;;  %v7628_v45 = vadd.f32 %v6637_v1, %v325_v36  ;;  %v7630_v7 = vadd.f32 %v6637_v1, %v322_v30 }
 0x185   :  { %v7600_v40 = vpop.f32.mrf.mxu2 }
 0x186   :  { %v6576_v48 = vpack.i.bf16 %v7630_v7, %v7628_v45  ;;  %v922_v46 = vrot.slane %v7628_v45, 4 }
 0x18a   :  { %6383 = vmatmul.msk.f32.gmra.mxu0 %vm243_vm0, %v234_v25  ;;  %v866_v25 = vrot.slane %v7630_v7, 4 }
 0x18b   :  { %6402 = vmatmul.msk.f32.vlgmr.msrb.gmra.mxu3 %vm1084_vm2, %v723_v14 }
 0x18c   :  { %6398 = vmatmul.msk.f32.vlgmr.msra.gmra.mxu2 %vm1084_vm2, %v721_v19 }
 0x193   :  { %6403 = vmatmul.msk.f32.gmra.mxu3 %vm1084_vm2, %v835_v63 }
 0x194   :  { %6399 = vmatmul.msk.f32.gmra.mxu2 %vm1084_vm2, %v833_v24 }
 0x1fe   :  { %v1149_v34 = vpop.f32.mrf.mxu3 }
 0x1ff   :  { %v1114_v55 = vpop.f32.mrf.mxu2  ;;  %v1150_v27 = vadd.f32 %v1149_v34, %v7607_v35  ;;  %v279_v26 = vpop.f32.mrf.mxu0 }
 0x200   :  { %v1115_v31 = vadd.f32 %v1114_v55, %v7607_v35 }
 0x201   :  { %v1232_v44 = vsel %vm1225_vm4, %v1150_v27, -inf }
 0x202   :  { %v1226_v38 = vsel %vm1225_vm4, %v1115_v31, -inf }
 0x203   :  { %1227 = vmax.xlane.f32.xlu2 %v1226_v38 }
 0x206   :  { %v7612_v2 = vpop.f32.mrf.mxu3 }
 0x207   :  { %v1117_v39 = vpop.f32.mrf.mxu2  ;;  %v1235_v50 = vsel %vm1225_vm4, %v7612_v2, -inf }
 0x208   :  { %v1229_v16 = vsel %vm1225_vm4, %v1117_v39, -inf }
 0x209   :  { %1230 = vmax.xlane.f32.xlu0 %v1229_v16 }
 0x20e   :  { %v1219_v43 = vpop.f32.mrf.mxu3 }
 0x20f   :  { %v1184_v42 = vpop.f32.mrf.mxu2  ;;  %v1220_v32 = vadd.f32 %v1219_v43, %v7607_v35 }
 0x210   :  { %v1185_v11 = vadd.f32 %v1184_v42, %v7607_v35 }
 0x211   :  { %1233 = vmax.xlane.f32.xlu0 %v1232_v44  ;;  %v1244_v22 = vsel %vm1225_vm4, %v1220_v32, -inf }
 0x212   :  { %v1238_v21 = vsel %vm1225_vm4, %v1185_v11, -inf  ;;  %1245 = vmax.xlane.f32.xlu2 %v1244_v22 }
 0x213   :  { %1239 = vmax.xlane.f32.xlu1 %v1238_v21 }
 0x216   :  { %v1222_v47 = vpop.f32.mrf.mxu3 }
 0x217   :  { %v1187_v12 = vpop.f32.mrf.mxu2  ;;  %v1247_v15 = vsel %vm1225_vm4, %v1222_v47, -inf }
 0x218   :  { %v1241_v17 = vsel %vm1225_vm4, %v1187_v12, -inf }
 0x219   :  { %1248 = vmax.xlane.f32.xlu0 %v1247_v15 }
 0x21a   :  { %1242 = vmax.xlane.f32.xlu2 %v1241_v17 }
 0x22c   :  { %6577 = vrot.lane.b32.xlu1 %v6576_v48, %s7079_s19 }
 0x22d   :  { %6587 = vrot.lane.b32.xlu0 %v6576_v48, %s7081_s22 }
 0x232   :  { %6582 = vrot.lane.b32.xlu2 %v6576_v48, %s7080_s1 }
 0x256   :  { %1236 = vmax.xlane.f32.xlu1 %v1235_v50  ;;  %v282_v50 = vpop.f32.mrf.mxu0 }
 0x276   :  { %v1228_v51 = vpop.xlane.xlu2 %1227 }
 0x277   :  { %v1250_v52 = vsub.f32 %v1115_v31, %v1228_v51 }
 0x279   :  { %v1258_v53 = vmul.f32 1.442695, %v1250_v52 }
 0x27b   :  { %6644 = vpow2.f32 %v1258_v53 }
 0x27c   :  { %v1231_v54 = vpop.xlane.xlu0 %1230 }
 0x27d   :  { %v1251_v57 = vsub.f32 %v1117_v39, %v1231_v54 }
 0x27f   :  { %v1260_v58 = vmul.f32 1.442695, %v1251_v57 }
 0x281   :  { %v7639_v49 = vpop.eup %6644  ;;  %6646 = vpow2.f32 %v1260_v58 }
 0x282   :  { %v1274_v41 = vsel %vm1225_vm4, %v7639_v49, 0.0 }
 0x283   :  { %1275 = vadd.xlane.f32.xlu2 %v1274_v41 }
 0x284   :  { %v1234_v62 = vpop.xlane.xlu0 %1233 }
 0x285   :  { %v1246_v3 = vpop.xlane.xlu2 %1245  ;;  %v1252_v19 = vsub.f32 %v1150_v27, %v1234_v62  ;;  %v7683_v62 = vadd.f32 %v7279_v10, %v282_v50 }
 0x286   :  { %v1240_v0 = vpop.xlane.xlu1 %1239  ;;  %v1256_v37 = vsub.f32 %v1220_v32, %v1246_v3 }
 0x287   :  { %v7643_v6 = vpop.eup %6646  ;;  %v1254_v56 = vsub.f32 %v1185_v11, %v1240_v0  ;;  %v1262_v20 = vmul.f32 1.442695, %v1252_v19 }
 0x288   :  { %v1277_v5 = vsel %vm1225_vm4, %v7643_v6, 0.0  ;;  %v1270_v9 = vmul.f32 1.442695, %v1256_v37 }
 0x289   :  { %v1266_v8 = vmul.f32 1.442695, %v1254_v56  ;;  %1278 = vadd.xlane.f32.xlu0 %v1277_v5 }
 0x28b   :  { %6648 = vpow2.f32 %v1266_v8 }
 0x28c   :  { %6650 = vpow2.f32 %v1270_v9  ;;  %v1249_v14 = vpop.xlane.xlu0 %1248 }
 0x28d   :  { %v1257_v28 = vsub.f32 %v1222_v47, %v1249_v14  ;;  %v1243_v13 = vpop.xlane.xlu2 %1242 }
 0x28e   :  { %v1255_v24 = vsub.f32 %v1187_v12, %v1243_v13 }
 0x28f   :  { %v1272_v23 = vmul.f32 1.442695, %v1257_v28 }
 0x290   :  { %v1268_v36 = vmul.f32 1.442695, %v1255_v24 }
 0x291   :  { %v7647_v63 = vpop.eup %6648  ;;  %6652 = vpow2.f32 %v1272_v23 }
 0x292   :  { %v7649_v60 = vpop.eup %6650  ;;  %6654 = vpow2.f32 %v1262_v20  ;;  %v1286_v18 = vsel %vm1225_vm4, %v7647_v63, 0.0 }
 0x293   :  { %6656 = vpow2.f32 %v1268_v36  ;;  %1287 = vadd.xlane.f32.xlu1 %v1286_v18  ;;  %v1292_v33 = vsel %vm1225_vm4, %v7649_v60, 0.0 }
 0x294   :  { %1293 = vadd.xlane.f32.xlu2 %v1292_v33 }
 0x295   :  { %v6583_v34 = vpop.permute.xlu2 %6582 }
 0x296   :  { %v6585_v31 = vunpack.i.h.bf16 %v6583_v34  ;;  %v6584_v38 = vunpack.i.l.bf16 %v6583_v34 }
 0x297   :  { %v7655_v55 = vpop.eup %6652 }
 0x298   :  { %v7657_v39 = vpop.eup %6654  ;;  %v1295_v16 = vsel %vm1225_vm4, %v7655_v55, 0.0  ;;  %v864_v42 = vrot.slane %v6585_v31, 4  ;;  %v920_v43 = vrot.slane %v6584_v38, 4  ;;  %v867_v44 = vsel %vm396_vm1, %v6585_v31, %v866_v25 }
 0x299   :  { %v7661_v27 = vpop.eup %6656  ;;  %1296 = vadd.xlane.f32.xlu0 %v1295_v16  ;;  %v1280_v32 = vsel %vm1225_vm4, %v7657_v39, 0.0  ;;  %v923_v21 = vsel %vm396_vm1, %v6584_v38, %v922_v46  ;;  %v875_v15 = vperm.slane %v867_v44, %v7329_v29 }
 0x29a   :  { %v1289_v11 = vsel %vm1225_vm4, %v7661_v27, 0.0  ;;  %v865_v22 = vsel %vm396_vm1, %v864_v42, %v7630_v7  ;;  %v921_v12 = vsel %vm396_vm1, %v920_v43, %v7628_v45  ;;  %v931_v17 = vperm.slane %v923_v21, %v7329_v29 }
 0x29b   :  { %1290 = vadd.xlane.f32.xlu1 %v1289_v11  ;;  %v871_v53 = vperm.slane %v865_v22, %v7329_v29  ;;  %v927_v54 = vperm.slane %v921_v12, %v7329_v29  ;;  %v7680_v45 = vadd.f32 %v7279_v10, %v279_v26  ;;  %v902_v0 = vrot.slane %v875_v15, 4 }
 0x29c   :  { %1281 = vadd.xlane.f32.xlu2 %v1280_v32  ;;  %v958_v3 = vrot.slane %v931_v17, 4 }
 0x29d   :  { %v890_v14 = vrot.slane %v871_v53, 4  ;;  %v946_v28 = vrot.slane %v927_v54, 4 }
 0x29e   :  { %v6578_v47 = vpop.permute.xlu1 %6577 }
 0x29f   :  { %v6580_v1 = vunpack.i.h.bf16 %v6578_v47  ;;  %v6579_v30 = vunpack.i.l.bf16 %v6578_v47  ;;  %v6588_v48 = vpop.permute.xlu0 %6587 }
 0x2a0   :  { %v6590_v51 = vunpack.i.h.bf16 %v6588_v48  ;;  %v6589_v52 = vunpack.i.l.bf16 %v6588_v48 }
 0x2a1   :  { %v878_v57 = vrot.slane %v6580_v1, 4  ;;  %v934_v7 = vrot.slane %v6579_v30, 4 }
 0x2a2   :  { %v876_v58 = vrot.slane %v6590_v51, 4  ;;  %v932_v41 = vrot.slane %v6589_v52, 4 }
 0x2a3   :  { %v879_v56 = vsel %vm396_vm1, %v6590_v51, %v878_v57  ;;  %v935_v37 = vsel %vm396_vm1, %v6589_v52, %v934_v7 }
 0x2a4   :  { %v877_v5 = vsel %vm396_vm1, %v876_v58, %v6580_v1  ;;  %v887_v8 = vperm.slane %v879_v56, %v7329_v29  ;;  %v933_v9 = vsel %vm396_vm1, %v932_v41, %v6579_v30  ;;  %v943_v19 = vperm.slane %v935_v37, %v7329_v29 }
 0x2a5   :  { %v883_v20 = vperm.slane %v877_v5, %v7329_v29  ;;  %v939_v10 = vperm.slane %v933_v9, %v7329_v29 }
 0x2a6   :  { %v900_v13 = vrot.slane %v887_v8, 4  ;;  %v903_v23 = vsel %vm396_vm1, %v887_v8, %v902_v0  ;;  %v956_v24 = vrot.slane %v943_v19, 4  ;;  %v959_v36 = vsel %vm396_vm1, %v943_v19, %v958_v3 }
 0x2a7   :  { %v888_v18 = vrot.slane %v883_v20, 4  ;;  %v891_v33 = vsel %vm396_vm1, %v883_v20, %v890_v14  ;;  %v911_v26 = vperm.slane %v903_v23, %v7350_v59  ;;  %v944_v34 = vrot.slane %v939_v10, 4 }
 0x2a8   :  { %v899_v31 = vperm.slane %v891_v33, %v7350_v59  ;;  %v901_v38 = vsel %vm396_vm1, %v900_v13, %v875_v15  ;;  %v947_v16 = vsel %vm396_vm1, %v939_v10, %v946_v28  ;;  %v957_v46 = vsel %vm396_vm1, %v956_v24, %v931_v17 }
 0x2a9   :  { %v889_v25 = vsel %vm396_vm1, %v888_v18, %v871_v53  ;;  %v907_v42 = vperm.slane %v901_v38, %v7350_v59  ;;  %v918_v43 = vrot.slane %v911_v26, 4  ;;  %v945_v11 = vsel %vm396_vm1, %v944_v34, %v927_v54 }
 0x2aa   :  { %v895_v32 = vperm.slane %v889_v25, %v7350_v59  ;;  %v914_v44 = vrot.slane %v899_v31, 4  ;;  %v951_v21 = vperm.slane %v945_v11, %v7350_v59  ;;  %v955_v22 = vperm.slane %v947_v16, %v7350_v59 }
 0x2ab   :  { %v916_v12 = vrot.slane %v907_v42, 4  ;;  %v919_v47 = vsel %vm396_vm1, 0.0, %v918_v43  ;;  %v963_v15 = vperm.slane %v957_v46, %v7350_v59  ;;  %v967_v17 = vperm.slane %v959_v36, %v7350_v59 }
 0x2ac   :  { %v915_v1 = vsel %vm396_vm1, 0.0, %v914_v44  ;;  %v970_v30 = vrot.slane %v955_v22, 4  ;;  %v992_v48 = vrot.slane %v919_v47, 4  ;;  %v968_v50 = vrot.slane %v951_v21, 4 }
 0x2ad   :  { %v972_v51 = vrot.slane %v963_v15, 4  ;;  %v974_v52 = vrot.slane %v967_v17, 4  ;;  %1593 = vrot.lane.b32.xlu0 %v7683_v62, %s7078_s18  ;;  %v912_v53 = vrot.slane %v895_v32, 4  ;;  %v917_v54 = vsel %vm396_vm1, 0.0, %v916_v12 }
 0x2ae   :  { %v971_v57 = vsel %vm396_vm1, 0.0, %v970_v30  ;;  %v969_v7 = vsel %vm396_vm1, 0.0, %v968_v50  ;;  %v1030_v58 = vsel %vm396_vm1, %v970_v30, %v951_v21  ;;  %v976_v41 = vsel %vm396_vm1, %v914_v44, %v895_v32 }
 0x2af   :  { %v975_v0 = vsel %vm396_vm1, 0.0, %v974_v52  ;;  %v1035_v3 = vrot.slane %v971_v57, 4  ;;  %v1041_v56 = vsel %vm396_vm1, %v974_v52, %v963_v15  ;;  %v973_v37 = vsel %vm396_vm1, 0.0, %v972_v51 }
 0x2b0   :  { %v1046_v5 = vrot.slane %v975_v0, 4  ;;  %v1034_v8 = vperm.slane %v1030_v58, %v7329_v29  ;;  %v1045_v9 = vperm.slane %v1041_v56, %v7329_v29  ;;  %v913_v19 = vsel %vm396_vm1, 0.0, %v912_v53 }
 0x2b1   :  { %v1036_v14 = vsel %vm396_vm1, %v1035_v3, %v969_v7  ;;  %v980_v28 = vperm.slane %v976_v41, %v7329_v29  ;;  %v981_v20 = vrot.slane %v915_v1, 4  ;;  %v987_v10 = vsel %vm396_vm1, %v918_v43, %v907_v42 }
 0x2b2   :  { %v1040_v13 = vperm.slane %v1036_v14, %v7329_v29  ;;  %v1047_v23 = vsel %vm396_vm1, %v1046_v5, %v973_v37  ;;  %v1054_v24 = vrot.slane %v1034_v8, 4  ;;  %v1066_v36 = vrot.slane %v1045_v9, 4 }
 0x2b3   :  { %v1051_v18 = vperm.slane %v1047_v23, %v7329_v29  ;;  %v982_v33 = vsel %vm396_vm1, %v981_v20, %v913_v19  ;;  %v991_v26 = vperm.slane %v987_v10, %v7329_v29  ;;  %v993_v34 = vsel %vm396_vm1, %v992_v48, %v917_v54 }
 0x2b4   :  { %v1055_v31 = vsel %vm396_vm1, %v1040_v13, %v1054_v24  ;;  %v1052_v38 = vrot.slane %v1040_v13, 4  ;;  %v986_v16 = vperm.slane %v982_v33, %v7329_v29  ;;  %v997_v46 = vperm.slane %v993_v34, %v7329_v29  ;;  %1569 = vrot.lane.b32.xlu2 %v7683_v62, %s7079_s19 }
 0x2b5   :  { %1605 = vrot.lane.b32.xlu0 %v7683_v62, %s7083_s27  ;;  %v1063_v25 = vperm.slane %v1055_v31, %v7350_v59  ;;  %v1067_v42 = vsel %vm396_vm1, %v1051_v18, %v1066_v36  ;;  %v1064_v43 = vrot.slane %v1051_v18, 4  ;;  %v1000_v11 = vrot.slane %v980_v28, 4 }
 0x2b6   :  { %v1075_v32 = vperm.slane %v1067_v42, %v7350_v59  ;;  %v1053_v44 = vsel %vm396_vm1, %v1052_v38, %v1034_v8  ;;  %v1012_v21 = vrot.slane %v991_v26, 4  ;;  %v998_v22 = vrot.slane %v986_v16, 4 }
 0x2b7   :  { %v1059_v12 = vperm.slane %v1053_v44, %v7350_v59  ;;  %v1065_v47 = vsel %vm396_vm1, %v1064_v43, %v1045_v9  ;;  %v1001_v15 = vsel %vm396_vm1, %v986_v16, %v1000_v11  ;;  %v1010_v17 = vrot.slane %v997_v46, 4 }
 0x2b8   :  { %v1080_v1 = vrot.slane %v1075_v32, 4  ;;  %v1071_v30 = vperm.slane %v1065_v47, %v7350_v59  ;;  %v1009_v48 = vperm.slane %v1001_v15, %v7350_v59  ;;  %v1013_v50 = vsel %vm396_vm1, %v997_v46, %v1012_v21 }
 0x2b9   :  { %v1021_v51 = vperm.slane %v1013_v50, %v7350_v59  ;;  %v999_v52 = vsel %vm396_vm1, %v998_v22, %v980_v28  ;;  %v1011_v53 = vsel %vm396_vm1, %v1010_v17, %v991_v26  ;;  %v1078_v54 = vrot.slane %v1059_v12, 4 }
 0x2ba   :  { %v1081_v57 = vsel %vm396_vm1, %v1080_v1, %v1063_v25  ;;  %v1076_v7 = vrot.slane %v1071_v30, 4  ;;  %v1005_v58 = vperm.slane %v999_v52, %v7350_v59  ;;  %v1017_v41 = vperm.slane %v1011_v53, %v7350_v59 }
 0x2bb   :  { %1392 = vmatpush.msrb.mxu2 %v1081_v57  ;;  %v1026_v0 = vrot.slane %v1021_v51, 4  ;;  %v1079_v3 = vsel %vm396_vm1, %v1071_v30, %v1078_v54  ;;  %v1082_v56 = vrot.slane %v1063_v25, 4  ;;  %v1028_v19 = vrot.slane %v1009_v48, 4 }
 0x2bc   :  { %v1077_v37 = vsel %vm396_vm1, %v1076_v7, %v1059_v12  ;;  %v1022_v5 = vrot.slane %v1017_v41, 4  ;;  %1363 = vmatpush.msrb.mxu1 %v1079_v3  ;;  %v1024_v8 = vrot.slane %v1005_v58, 4  ;;  %1581 = vrot.lane.b32.xlu2 %v7683_v62, %s7081_s22 }
 0x2bd   :  { %1334 = vmatpush.msra.mxu3 %v1077_v37  ;;  %v1027_v9 = vsel %vm396_vm1, %v1026_v0, %v1009_v48  ;;  %1591 = vrot.lane.b32.xlu0 %v7680_v45, %s7078_s18  ;;  %v1083_v20 = vsel %vm396_vm1, %v1075_v32, %v1082_v56  ;;  %v1029_v10 = vsel %vm396_vm1, %v1021_v51, %v1028_v19  ;;  %v1611_v56 = vrot.slane %v7680_v45, 4  ;;  %s9907_s18 = sld [smem:[#allocation25_spill]] }
 0x2be   :  { %1393 = vmatpush.msrb.mxu2 %v1027_v9  ;;  %v1023_v14 = vsel %vm396_vm1, %v1022_v5, %v1005_v58  ;;  %v1025_v28 = vsel %vm396_vm1, %v1017_v41, %v1024_v8  ;;  %v1723_v41 = vrot.slane %v7683_v62, 4 }
 0x2bf   :  { %1335 = vmatpush.msra.mxu3 %v1023_v14  ;;  %1364 = vmatpush.msrb.mxu1 %v1025_v28 }
 0x2c1   :  { %1421 = vmatpush.msrb.mxu3 %v1083_v20 }
 0x2c3   :  { %1422 = vmatpush.msrb.mxu3 %v1029_v10 }
 0x2c4   :  { %1567 = vrot.lane.b32.xlu2 %v7680_v45, %s7079_s19 }
 0x2c5   :  { %1575 = vrot.lane.b32.xlu0 %v7683_v62, %s7080_s1 }
 0x2c9   :  { %v1237_v13 = vpop.xlane.xlu1 %1236 }
 0x2ca   :  { %v1253_v23 = vsub.f32 %v7612_v2, %v1237_v13 }
 0x2cc   :  { %v1264_v24 = vmul.f32 1.442695, %v1253_v23  ;;  %1603 = vrot.lane.b32.xlu2 %v7680_v45, %s7083_s27  ;;  %s9906_s27 = sld [smem:[#allocation33_spill]] }
 0x2cd   :  { %1579 = vrot.lane.b32.xlu0 %v7680_v45, %s7081_s22 }
 0x2ce   :  { %6658 = vpow2.f32 %v1264_v24 }
 0x2d4   :  { %v6659_v36 = vpop.eup %6658  ;;  %1573 = vrot.lane.b32.xlu2 %v7680_v45, %s7080_s1 }
 0x2d5   :  { %v1283_v18 = vsel %vm1225_vm4, %v6659_v36, 0.0 }
 0x2d6   :  { %1284 = vadd.xlane.f32.xlu1 %v1283_v18 }
 0x2ef   :  { %1587 = vrot.lane.b32.xlu1 %v7683_v62, %s7082_s8 }
 0x2f6   :  { %v1276_v33 = vpop.xlane.xlu2 %1275 }
 0x2f7   :  { %6660 = vrcp.f32 %v1276_v33  ;;  %1599 = vrot.lane.b32.xlu1 %v7683_v62, %s7084_s20 }
 0x2fc   :  { %v1279_v2 = vpop.xlane.xlu0 %1278 }
 0x2fd   :  { %v6661_v26 = vpop.eup %6660  ;;  %6662 = vrcp.f32 %v1279_v2 }
 0x2fe   :  { %v1306_v34 = vmul.f32 %v6661_v26, %v7639_v49 }
 0x2ff   :  { %1585 = vrot.lane.b32.xlu1 %v7680_v45, %s7082_s8 }
 0x300   :  { %6404 = vmatmul.msk.f32.vlgmr.msra.gmra.mxu3 %vm1225_vm4, %v1306_v34 }
 0x303   :  { %v6663_v31 = vpop.eup %6662 }
 0x304   :  { %v1307_v16 = vmul.f32 %v6663_v31, %v7643_v6 }
 0x306   :  { %v1288_v38 = vpop.xlane.xlu1 %1287 }
 0x307   :  { %6664 = vrcp.f32 %v1288_v38  ;;  %1597 = vrot.lane.b32.xlu1 %v7680_v45, %s7084_s20  ;;  %v1294_v46 = vpop.xlane.xlu2 %1293 }
 0x308   :  { %6666 = vrcp.f32 %v1294_v46  ;;  %6405 = vmatmul.msk.f32.gmra.mxu3 %vm1225_vm4, %v1307_v16 }
 0x30c   :  { %v1297_v25 = vpop.xlane.xlu0 %1296 }
 0x30d   :  { %v6665_v42 = vpop.eup %6664  ;;  %6668 = vrcp.f32 %v1297_v25 }
 0x30e   :  { %v6667_v49 = vpop.eup %6666  ;;  %v1310_v43 = vmul.f32 %v6665_v42, %v7647_v63  ;;  %v1291_v11 = vpop.xlane.xlu1 %1290 }
 0x30f   :  { %v1312_v32 = vmul.f32 %v6667_v49, %v7649_v60  ;;  %6670 = vrcp.f32 %v1291_v11  ;;  %v1282_v44 = vpop.xlane.xlu2 %1281 }
 0x310   :  { %6672 = vrcp.f32 %v1282_v44  ;;  %6408 = vmatmul.msk.f32.vlgmr.msrb.gmra.mxu2 %vm1225_vm4, %v1310_v43 }
 0x311   :  { %6410 = vmatmul.msk.f32.vlgmr.msrb.gmra.mxu3 %vm1225_vm4, %v1312_v32 }
 0x313   :  { %v6669_v6 = vpop.eup %6668 }
 0x314   :  { %v1313_v63 = vmul.f32 %v6669_v6, %v7655_v55 }
 0x315   :  { %v6671_v21 = vpop.eup %6670 }
 0x316   :  { %v6673_v22 = vpop.eup %6672  ;;  %v1311_v12 = vmul.f32 %v6671_v21, %v7661_v27 }
 0x317   :  { %v1308_v47 = vmul.f32 %v6673_v22, %v7657_v39  ;;  %v1570_v60 = vpop.permute.xlu2 %1569 }
 0x318   :  { %6409 = vmatmul.msk.f32.gmra.mxu2 %vm1225_vm4, %v1311_v12  ;;  %v1735_v55 = vrot.slane %v1570_v60, 4 }
 0x319   :  { %6406 = vmatmul.msk.f32.vlgmr.msrb.gmra.mxu1 %vm1225_vm4, %v1308_v47  ;;  %6411 = vmatmul.msk.f32.gmra.mxu3 %vm1225_vm4, %v1313_v63 }
 0x31f   :  { %v1594_v15 = vpop.permute.xlu0 %1593  ;;  %v1582_v17 = vpop.permute.xlu2 %1581 }
 0x320   :  { %v1733_v53 = vrot.slane %v1582_v17, 4  ;;  %v1736_v7 = vsel %vm396_vm1, %v1582_v17, %v1735_v55  ;;  %v1759_v14 = vrot.slane %v1594_v15, 4  ;;  %v7850_v55 = vld [vmem:[%s9906_s27 + $0x8] sm:$0xff] }
 0x321   :  { %v1744_v5 = vperm.slane %v1736_v7, %v7329_v29  ;;  %1480 = vmatpush.msra.mxu1 %v7850_v55 }
 0x322   :  { %v1734_v0 = vsel %vm396_vm1, %v1733_v53, %v1570_v60  ;;  %v7855_v53 = vld [vmem:[%s9906_s27 + $0x10] sm:$0xff] }
 0x323   :  { %v1740_v28 = vperm.slane %v1734_v0, %v7329_v29  ;;  %v1781_v18 = vrot.slane %v1744_v5, 4  ;;  %1509 = vmatpush.msra.mxu2 %v7855_v53 }
 0x325   :  { %v1769_v31 = vrot.slane %v1740_v28, 4 }
 0x327   :  { %v1606_v1 = vpop.permute.xlu0 %1605  ;;  %v1568_v30 = vpop.permute.xlu2 %1567 }
 0x328   :  { %v1623_v3 = vrot.slane %v1568_v30, 4  ;;  %v1757_v20 = vrot.slane %v1606_v1, 4  ;;  %v1760_v33 = vsel %vm396_vm1, %v1606_v1, %v1759_v14 }
 0x329   :  { %v1768_v43 = vperm.slane %v1760_v33, %v7329_v29 }
 0x32a   :  { %v1758_v38 = vsel %vm396_vm1, %v1757_v20, %v1594_v15 }
 0x32b   :  { %v7826_v11 = vperm.slane %v1758_v38, %v7329_v29 }
 0x32f   :  { %v1592_v48 = vpop.permute.xlu0 %1591  ;;  %v1604_v51 = vpop.permute.xlu2 %1603 }
 0x330   :  { %v1645_v2 = vrot.slane %v1604_v51, 4  ;;  %v1647_v26 = vrot.slane %v1592_v48, 4 }
 0x332   :  { %v1646_v32 = vsel %vm396_vm1, %v1645_v2, %v1592_v48  ;;  %v1648_v44 = vsel %vm396_vm1, %v1604_v51, %v1647_v26 }
 0x333   :  { %v7835_v1 = vperm.slane %v1646_v32, %v7329_v29 }
 0x337   :  { %v1576_v27 = vpop.permute.xlu0 %1575  ;;  %v1574_v54 = vpop.permute.xlu2 %1573 }
 0x338   :  { %v1721_v57 = vrot.slane %v1576_v27, 4  ;;  %v1609_v37 = vrot.slane %v1574_v54, 4  ;;  %v1724_v9 = vsel %vm396_vm1, %v1576_v27, %v1723_v41  ;;  %v1612_v10 = vsel %vm396_vm1, %v1574_v54, %v1611_v56 }
 0x339   :  { %v1732_v24 = vperm.slane %v1724_v9, %v7329_v29  ;;  %v1620_v34 = vperm.slane %v1612_v10, %v7329_v29  ;;  %v1793_v54 = vrot.slane %v7826_v11, 4 }
 0x33a   :  { %v1722_v8 = vsel %vm396_vm1, %v1721_v57, %v7683_v62  ;;  %v1610_v13 = vsel %vm396_vm1, %v1609_v37, %v7680_v45 }
 0x33b   :  { %v1728_v23 = vperm.slane %v1722_v8, %v7329_v29  ;;  %v1616_v45 = vperm.slane %v1610_v13, %v7329_v29  ;;  %v1783_v42 = vrot.slane %v1732_v24, 4  ;;  %v1671_v6 = vrot.slane %v1620_v34, 4 }
 0x33c   :  { %v1782_v12 = vsel %vm396_vm1, %v1781_v18, %v1732_v24  ;;  %v1681_v8 = vrot.slane %v7835_v1, 4 }
 0x33d   :  { %v1771_v25 = vrot.slane %v1728_v23, 4  ;;  %v1659_v21 = vrot.slane %v1616_v45, 4  ;;  %v1770_v22 = vsel %vm396_vm1, %v1769_v31, %v1728_v23  ;;  %v1784_v60 = vsel %vm396_vm1, %v1744_v5, %v1783_v42  ;;  %v7871_v5 = vld [vmem:[%s9906_s27 + $0x18] sm:$0xff] }
 0x33e   :  { %v1776_v51 = vperm.slane %v1770_v22, %v7350_v59  ;;  %v1788_v27 = vperm.slane %v1782_v12, %v7350_v59  ;;  %v1792_v7 = vperm.slane %v1784_v60, %v7350_v59  ;;  %1538 = vmatpush.msra.mxu3 %v7871_v5 }
 0x33f   :  { %v1580_v58 = vpop.permute.xlu0 %1579  ;;  %v1772_v63 = vsel %vm396_vm1, %v1740_v28, %v1771_v25 }
 0x340   :  { %v1621_v19 = vrot.slane %v1580_v58, 4  ;;  %v1780_v57 = vperm.slane %v1772_v63, %v7350_v59  ;;  %v1819_v28 = vrot.slane %v1776_v51, 4  ;;  %v1827_v20 = vrot.slane %v1788_v27, 4 }
 0x341   :  { %v1831_v33 = vrot.slane %v1792_v7, 4 }
 0x342   :  { %v1622_v62 = vsel %vm396_vm1, %v1621_v19, %v1568_v30  ;;  %v7838_v30 = vperm.slane %v1648_v44, %v7329_v29 }
 0x343   :  { %v1628_v49 = vperm.slane %v1622_v62, %v7329_v29  ;;  %v1823_v62 = vrot.slane %v1780_v57, 4 }
 0x344   :  { %v1693_v9 = vrot.slane %v7838_v30, 4 }
 0x345   :  { %v1657_v15 = vrot.slane %v1628_v49, 4 }
 0x347   :  { %v1658_v0 = vsel %vm396_vm1, %v1657_v15, %v1616_v45 }
 0x348   :  { %v7885_v23 = vperm.slane %v1658_v0, %v7350_v59 }
 0x349   :  { %v1285_v50 = vpop.xlane.xlu1 %1284 }
 0x34a   :  { %6674 = vrcp.f32 %v1285_v50  ;;  %v1805_v50 = vrot.slane %v1768_v43, 4 }
 0x350   :  { %v6675_v52 = vpop.eup %6674 }
 0x351   :  { %v1309_v39 = vmul.f32 %v6675_v52, %v6659_v36  ;;  %v1624_v36 = vsel %vm396_vm1, %v1580_v58, %v1623_v3  ;;  %v1660_v52 = vsel %vm396_vm1, %v1628_v49, %v1659_v21  ;;  %v1707_v49 = vrot.slane %v7885_v23, 4 }
 0x352   :  { %v1632_v16 = vperm.slane %v1624_v36, %v7329_v29  ;;  %v7876_v19 = vperm.slane %v1660_v52, %v7350_v59 }
 0x353   :  { %6407 = vmatmul.msk.f32.gmra.mxu1 %vm1225_vm4, %v1309_v39  ;;  %v346_v39 = vld [vmem:[%s9906_s27] sm:$0xff] }
 0x354   :  { %v1669_v47 = vrot.slane %v1632_v16, 4  ;;  %v1672_v48 = vsel %vm396_vm1, %v1632_v16, %v1671_v6  ;;  %1451 = vmatpush.msrb.mxu0 %v346_v39 }
 0x355   :  { %v7864_v3 = vperm.slane %v1672_v48, %v7350_v59 }
 0x356   :  { %v1670_v58 = vsel %vm396_vm1, %v1669_v47, %v1620_v34  ;;  %v1711_v34 = vrot.slane %v7876_v19, 4 }
 0x357   :  { %v7881_v10 = vperm.slane %v1670_v58, %v7350_v59  ;;  %v1719_v2 = vrot.slane %v7864_v3, 4 }
 0x359   :  { %v1715_v32 = vrot.slane %v7881_v10, 4 }
 0x361   :  { %v1588_v46 = vpop.permute.xlu1 %1587 }
 0x362   :  { %v1747_v17 = vrot.slane %v1588_v46, 4 }
 0x369   :  { %v1600_v41 = vpop.permute.xlu1 %1599 }
 0x36a   :  { %v1745_v56 = vrot.slane %v1600_v41, 4  ;;  %v1748_v37 = vsel %vm396_vm1, %v1600_v41, %v1747_v17 }
 0x36b   :  { %v1756_v14 = vperm.slane %v1748_v37, %v7329_v29 }
 0x36c   :  { %v1746_v13 = vsel %vm396_vm1, %v1745_v56, %v1588_v46 }
 0x36d   :  { %v1752_v24 = vperm.slane %v1746_v13, %v7329_v29  ;;  %v1806_v36 = vsel %vm396_vm1, %v1805_v50, %v1756_v14  ;;  %v1807_v18 = vrot.slane %v1756_v14, 4 }
 0x36e   :  { %v1812_v26 = vperm.slane %v1806_v36, %v7350_v59 }
 0x36f   :  { %v1794_v31 = vsel %vm396_vm1, %v1793_v54, %v1752_v24  ;;  %v1795_v38 = vrot.slane %v1752_v24, 4  ;;  %v1808_v45 = vsel %vm396_vm1, %v1768_v43, %v1807_v18 }
 0x370   :  { %v1800_v16 = vperm.slane %v1794_v31, %v7350_v59  ;;  %v1816_v46 = vperm.slane %v1808_v45, %v7350_v59  ;;  %v1825_v25 = vrot.slane %v1812_v26, 4  ;;  %v1828_v42 = vsel %vm396_vm1, %v1812_v26, %v1827_v20 }
 0x371   :  { %v1796_v44 = vsel %vm396_vm1, %v7826_v11, %v1795_v38  ;;  %v1983_v6 = vrot.slane %v1828_v42, 4  ;;  %v1586_v21 = vpop.permute.xlu1 %1585 }
 0x372   :  { %v1804_v22 = vperm.slane %v1796_v44, %v7350_v59  ;;  %v1817_v12 = vrot.slane %v1800_v16, 4  ;;  %v1820_v43 = vsel %vm396_vm1, %v1800_v16, %v1819_v28  ;;  %v1826_v47 = vsel %vm396_vm1, %v1825_v25, %v1788_v27 }
 0x373   :  { %v1829_v63 = vrot.slane %v1816_v46, 4  ;;  %v1832_v60 = vsel %vm396_vm1, %v1816_v46, %v1831_v33  ;;  %v1959_v15 = vrot.slane %v1820_v43, 4  ;;  %v1971_v17 = vrot.slane %v1826_v47, 4 }
 0x374   :  { %v1818_v48 = vsel %vm396_vm1, %v1817_v12, %v1776_v51  ;;  %v1821_v50 = vrot.slane %v1804_v22, 4  ;;  %v1824_v52 = vsel %vm396_vm1, %v1804_v22, %v1823_v62  ;;  %v1981_v11 = vrot.slane %v1832_v60, 4 }
 0x375   :  { %v1830_v39 = vsel %vm396_vm1, %v1829_v63, %v1792_v7  ;;  %v1947_v54 = vrot.slane %v1818_v48, 4  ;;  %v1984_v58 = vsel %vm396_vm1, %v1832_v60, %v1983_v6  ;;  %v1635_v41 = vrot.slane %v1586_v21, 4 }
 0x376   :  { %v1969_v0 = vrot.slane %v1830_v39, 4  ;;  %v1982_v27 = vsel %vm396_vm1, %v1981_v11, %v1828_v42  ;;  %v1992_v56 = vperm.slane %v1984_v58, %v7329_v29  ;;  %v1822_v37 = vsel %vm396_vm1, %v1821_v50, %v1780_v57 }
 0x377   :  { %v1948_v14 = vsel %vm396_vm1, %v1822_v37, %v1947_v54  ;;  %v1960_v51 = vsel %vm396_vm1, %v1824_v52, %v1959_v15  ;;  %v1972_v28 = vsel %vm396_vm1, %v1830_v39, %v1971_v17  ;;  %v1945_v20 = vrot.slane %v1822_v37, 4 }
 0x378   :  { %v1956_v7 = vperm.slane %v1948_v14, %v7329_v29  ;;  %v1968_v13 = vperm.slane %v1960_v51, %v7329_v29  ;;  %v1980_v24 = vperm.slane %v1972_v28, %v7329_v29  ;;  %v2029_v36 = vrot.slane %v1992_v56, 4 }
 0x379   :  { %v1598_v18 = vpop.permute.xlu1 %1597  ;;  %v1946_v62 = vsel %vm396_vm1, %v1945_v20, %v1818_v48  ;;  %v1957_v33 = vrot.slane %v1824_v52, 4  ;;  %v7920_v57 = vsel %vm396_vm1, %v1969_v0, %v1826_v47  ;;  %v7923_v26 = vperm.slane %v1982_v27, %v7329_v29 }
 0x37a   :  { %v1633_v31 = vrot.slane %v1598_v18, 4  ;;  %v1636_v38 = vsel %vm396_vm1, %v1598_v18, %v1635_v41  ;;  %v2005_v45 = vrot.slane %v1968_v13, 4  ;;  %v2030_v16 = vsel %vm396_vm1, %v2029_v36, %v1980_v24 }
 0x37b   :  { %v1644_v46 = vperm.slane %v1636_v38, %v7329_v29  ;;  %v2036_v25 = vperm.slane %v2030_v16, %v7350_v59  ;;  %v2007_v42 = vrot.slane %v1956_v7, 4  ;;  %v2031_v44 = vrot.slane %v1980_v24, 4 }
 0x37c   :  { %v1634_v6 = vsel %vm396_vm1, %v1633_v31, %v1586_v21  ;;  %v2006_v22 = vsel %vm396_vm1, %v2005_v45, %v1956_v7  ;;  %v7932_v12 = vperm.slane %v1946_v62, %v7329_v29  ;;  %v7935_v47 = vsel %vm396_vm1, %v1957_v33, %v1820_v43 }
 0x37d   :  { %v1640_v63 = vperm.slane %v1634_v6, %v7329_v29  ;;  %v1694_v60 = vsel %vm396_vm1, %v1693_v9, %v1644_v46  ;;  %v1695_v15 = vrot.slane %v1644_v46, 4  ;;  %v2012_v17 = vperm.slane %v2006_v22, %v7350_v59 }
 0x37e   :  { %v1700_v48 = vperm.slane %v1694_v60, %v7350_v59  ;;  %v2049_v21 = vrot.slane %v2036_v25, 4  ;;  %v2008_v50 = vsel %vm396_vm1, %v1968_v13, %v2007_v42  ;;  %v2032_v52 = vsel %vm396_vm1, %v1992_v56, %v2031_v44 }
 0x37f   :  { %v1682_v43 = vsel %vm396_vm1, %v1681_v8, %v1640_v63  ;;  %v1683_v11 = vrot.slane %v1640_v63, 4  ;;  %v1696_v39 = vsel %vm396_vm1, %v7838_v30, %v1695_v15  ;;  %v2051_v54 = vrot.slane %v2012_v17, 4 }
 0x380   :  { %v1688_v9 = vperm.slane %v1682_v43, %v7350_v59  ;;  %v1704_v58 = vperm.slane %v1696_v39, %v7350_v59  ;;  %v1713_v41 = vrot.slane %v1700_v48, 4  ;;  %v1716_v0 = vsel %vm396_vm1, %v1700_v48, %v1715_v32 }
 0x381   :  { %v1684_v27 = vsel %vm396_vm1, %v7835_v1, %v1683_v11  ;;  %v1871_v56 = vrot.slane %v1716_v0, 4  ;;  %v2050_v8 = vsel %vm396_vm1, %v2049_v21, %v2012_v17  ;;  %v2052_v37 = vsel %vm396_vm1, %v2036_v25, %v2051_v54 }
 0x382   :  { %v1692_v30 = vperm.slane %v1684_v27, %v7350_v59  ;;  %v1705_v14 = vrot.slane %v1688_v9, 4  ;;  %v1708_v51 = vsel %vm396_vm1, %v1688_v9, %v1707_v49  ;;  %v1714_v28 = vsel %vm396_vm1, %v1713_v41, %v7881_v10  ;;  %6420 = vmatpush.xpose.msk.msra.mxu0 %vm1084_vm2, %v2050_v8  ;;  %6424 = vmatpush.xpose.msk.msrb.mxu1 %vm1084_vm2, %v2052_v37 }
 0x383   :  { %v1717_v1 = vrot.slane %v1704_v58, 4  ;;  %v1720_v32 = vsel %vm396_vm1, %v1704_v58, %v1719_v2  ;;  %v1847_v20 = vrot.slane %v1708_v51, 4  ;;  %v1859_v7 = vrot.slane %v1714_v28, 4  ;;  %v1337_v13 = vpop.f32.mrf.mxu3 }
 0x384   :  { %v1706_v24 = vsel %vm396_vm1, %v1705_v14, %v7885_v23  ;;  %v1709_v36 = vrot.slane %v1692_v30, 4  ;;  %v1869_v49 = vrot.slane %v1720_v32, 4  ;;  %v1872_v18 = vsel %vm396_vm1, %v1720_v32, %v1871_v56  ;;  %6412 = vmatmul.msk.f32.vlgmr.msrb.gmra.mxu0 %vm1084_vm2, %v1337_v13 }
 0x385   :  { %v1718_v10 = vsel %vm396_vm1, %v1717_v1, %v7864_v3  ;;  %v2016_v62 = vperm.slane %v2008_v50, %v7350_v59  ;;  %v2040_v33 = vperm.slane %v2032_v52, %v7350_v59  ;;  %v1712_v2 = vsel %vm396_vm1, %v1692_v30, %v1711_v34 }
 0x386   :  { %v1857_v31 = vrot.slane %v1718_v10, 4  ;;  %v1870_v23 = vsel %vm396_vm1, %v1869_v49, %v1716_v0  ;;  %v1710_v38 = vsel %vm396_vm1, %v1709_v36, %v7876_v19  ;;  %v1835_v45 = vrot.slane %v1706_v24, 4 }
 0x387   :  { %v7985_v16 = vperm.slane %v1870_v23, %v7329_v29  ;;  %v2053_v46 = vrot.slane %v2040_v33, 4  ;;  %v2055_v3 = vrot.slane %v2016_v62, 4  ;;  %v1833_v25 = vrot.slane %v1710_v38, 4 }
 0x388   :  { %v1858_v42 = vsel %vm396_vm1, %v1857_v31, %v1714_v28  ;;  %v1836_v44 = vsel %vm396_vm1, %v1710_v38, %v1835_v45  ;;  %v1845_v6 = vrot.slane %v1712_v2, 4  ;;  %v1848_v34 = vsel %vm396_vm1, %v1712_v2, %v1847_v20 }
 0x389   :  { %v2054_v22 = vsel %vm396_vm1, %v2053_v46, %v2016_v62  ;;  %v2056_v63 = vsel %vm396_vm1, %v2040_v33, %v2055_v3  ;;  %v1844_v19 = vperm.slane %v1836_v44, %v7329_v29  ;;  %v1856_v60 = vperm.slane %v1848_v34, %v7329_v29 }
 0x38a   :  { %6428 = vmatpush.xpose.msk.msrb.mxu2 %vm1084_vm2, %v2054_v22  ;;  %6432 = vmatpush.xpose.msk.msrb.mxu3 %vm1084_vm2, %v2056_v63  ;;  %v1860_v15 = vsel %vm396_vm1, %v1718_v10, %v1859_v7  ;;  %v1880_v17 = vperm.slane %v1872_v18, %v7329_v29  ;;  %v1834_v48 = vsel %vm396_vm1, %v1833_v25, %v1706_v24  ;;  %v1905_v21 = vrot.slane %v7985_v16, 4 }
 0x38b   :  { %v1340_v50 = vpop.f32.mrf.mxu3  ;;  %v1868_v52 = vperm.slane %v1860_v15, %v7329_v29  ;;  %v1893_v43 = vrot.slane %v1856_v60, 4  ;;  %v1895_v11 = vrot.slane %v1844_v19, 4  ;;  %v1840_v39 = vperm.slane %v1834_v48, %v7329_v29 }
 0x38c   :  { %6413 = vmatmul.msk.f32.gmra.mxu0 %vm1084_vm2, %v1340_v50  ;;  %v1917_v54 = vrot.slane %v1880_v17, 4  ;;  %v1846_v9 = vsel %vm396_vm1, %v1845_v6, %v1708_v51  ;;  %v1864_v58 = vperm.slane %v1858_v42, %v7329_v29  ;;  %v8007_v41 = vperm.slane %v7935_v47, %v7329_v29 }
 0x38d   :  { %v1894_v0 = vsel %vm396_vm1, %v1893_v43, %v1844_v19  ;;  %v1896_v27 = vsel %vm396_vm1, %v1856_v60, %v1895_v11  ;;  %v1919_v56 = vrot.slane %v1868_v52, 4  ;;  %v1852_v8 = vperm.slane %v1846_v9, %v7329_v29 }
 0x38e   :  { %v1900_v37 = vperm.slane %v1894_v0, %v7350_v59  ;;  %v1918_v30 = vsel %vm396_vm1, %v1917_v54, %v1868_v52  ;;  %v1904_v14 = vperm.slane %v1896_v27, %v7350_v59  ;;  %v1906_v51 = vsel %vm396_vm1, %v1905_v21, %v1864_v58 }
 0x38f   :  { %v1924_v28 = vperm.slane %v1918_v30, %v7350_v59  ;;  %v1920_v47 = vsel %vm396_vm1, %v1880_v17, %v1919_v56  ;;  %v1881_v1 = vrot.slane %v1852_v8, 4  ;;  %v1912_v32 = vperm.slane %v1906_v51, %v7350_v59 }
 0x390   :  { %v1939_v20 = vrot.slane %v1900_v37, 4  ;;  %v1928_v7 = vperm.slane %v1920_v47, %v7350_v59  ;;  %v1943_v13 = vrot.slane %v1904_v14, 4  ;;  %v1976_v24 = vperm.slane %v7920_v57, %v7329_v29 }
 0x391   :  { %v1937_v36 = vrot.slane %v1924_v28, 4  ;;  %v1882_v49 = vsel %vm396_vm1, %v1881_v1, %v1840_v39  ;;  %v1929_v18 = vrot.slane %v1912_v32, 4  ;;  %v1993_v10 = vrot.slane %v8007_v41, 4 }
 0x392   :  { %v1940_v62 = vsel %vm396_vm1, %v1924_v28, %v1939_v20  ;;  %v1941_v33 = vrot.slane %v1928_v7, 4  ;;  %v1944_v2 = vsel %vm396_vm1, %v1928_v7, %v1943_v13  ;;  %v1888_v31 = vperm.slane %v1882_v49, %v7350_v59 }
 0x393   :  { %v1938_v23 = vsel %vm396_vm1, %v1937_v36, %v1900_v37  ;;  %6425 = vmatpush.xpose.msk.msrb.mxu1 %vm1084_vm2, %v1940_v62  ;;  %6433 = vmatpush.xpose.msk.msrb.mxu3 %vm1084_vm2, %v1944_v2  ;;  %v1395_v57 = vpop.f32.mrf.mxu2  ;;  %v1994_v38 = vsel %vm396_vm1, %v1993_v10, %v7932_v12  ;;  %v2017_v45 = vrot.slane %v7923_v26, 4  ;;  %v1907_v42 = vrot.slane %v1864_v58, 4 }
 0x394   :  { %6421 = vmatpush.xpose.msk.msra.mxu0 %vm1084_vm2, %v1938_v23  ;;  %v1942_v46 = vsel %vm396_vm1, %v1941_v33, %v1904_v14  ;;  %6416 = vmatmul.msk.f32.vlgmr.msra.gmra.mxu2 %vm1084_vm2, %v1395_v57  ;;  %v1424_v3 = vpop.f32.mrf.mxu3  ;;  %v2000_v25 = vperm.slane %v1994_v38, %v7350_v59  ;;  %v1883_v6 = vrot.slane %v1840_v39, 4  ;;  %v1930_v34 = vsel %vm396_vm1, %v1929_v18, %v1888_v31 }
 0x395   :  { %6429 = vmatpush.xpose.msk.msrb.mxu2 %vm1084_vm2, %v1942_v46  ;;  %6418 = vmatmul.msk.f32.vlgmr.msra.gmra.mxu3 %vm1084_vm2, %v1424_v3  ;;  %v2018_v44 = vsel %vm396_vm1, %v2017_v45, %v1976_v24  ;;  %v1931_v19 = vrot.slane %v1888_v31, 4  ;;  %v1908_v15 = vsel %vm396_vm1, %v7985_v16, %v1907_v42  ;;  %v2019_v54 = vrot.slane %v1976_v24, 4 }
 0x396   :  { %v1366_v22 = vpop.f32.mrf.mxu1  ;;  %v2024_v63 = vperm.slane %v2018_v44, %v7350_v59  ;;  %v2043_v60 = vrot.slane %v2000_v25, 4  ;;  %v1884_v17 = vsel %vm396_vm1, %v1852_v8, %v1883_v6  ;;  %v1916_v43 = vperm.slane %v1908_v15, %v7350_v59 }
 0x397   :  { %6422 = vmatmul.msk.f32.vlgmr.msra.gmra.mxu0 %vm1084_vm2, %v1930_v34  ;;  %6414 = vmatmul.msk.f32.vlgmr.msra.gmra.mxu1 %vm1084_vm2, %v1366_v22  ;;  %v1932_v48 = vsel %vm396_vm1, %v1912_v32, %v1931_v19  ;;  %v1892_v39 = vperm.slane %v1884_v17, %v7350_v59  ;;  %v1995_v16 = vrot.slane %v7932_v12, 4  ;;  %v2020_v27 = vsel %vm396_vm1, %v7923_v26, %v2019_v54 }
 0x398   :  { %v2044_v21 = vsel %vm396_vm1, %v2024_v63, %v2043_v60  ;;  %v2041_v50 = vrot.slane %v2024_v63, 4  ;;  %v1933_v58 = vrot.slane %v1916_v43, 4  ;;  %v2028_v37 = vperm.slane %v2020_v27, %v7350_v59  ;;  %v6798_v63 = vld [vmem:[#allocation2] ss:$0 sm:$0xff] }
 0x399   :  { %v1935_v0 = vrot.slane %v1892_v39, 4  ;;  %v1996_v56 = vsel %vm396_vm1, %v8007_v41, %v1995_v16  ;;  %v8087_v19 = vadd.f32 %v6798_v63, %v7596_v4  ;;  %v8090_v60 = vadd.f32 %v6798_v63, %v7600_v40 }
 0x39a   :  { %v2042_v9 = vsel %vm396_vm1, %v2041_v50, %v2000_v25  ;;  %v1934_v8 = vsel %vm396_vm1, %v1933_v58, %v1892_v39  ;;  %v2004_v30 = vperm.slane %v1996_v56, %v7350_v59  ;;  %v2045_v14 = vrot.slane %v2028_v37, 4 }
 0x39b   :  { %v1398_v52 = vpop.f32.mrf.mxu2  ;;  %v1936_v12 = vsel %vm396_vm1, %v1916_v43, %v1935_v0  ;;  %v6596_v15 = vpack.i.bf16 %v8087_v19, %v8090_v60 }
 0x39c   :  { %v1427_v11 = vpop.f32.mrf.mxu3  ;;  %6417 = vmatmul.msk.f32.gmra.mxu2 %vm1084_vm2, %v1398_v52  ;;  %v2047_v51 = vrot.slane %v2004_v30, 4  ;;  %v2046_v28 = vsel %vm396_vm1, %v2045_v14, %v2004_v30 }
 0x39d   :  { %6419 = vmatmul.msk.f32.gmra.mxu3 %vm1084_vm2, %v1427_v11 }
 0x39e   :  { %v2048_v26 = vsel %vm396_vm1, %v2028_v37, %v2047_v51 }
 0x39f   :  { %6423 = vmatmul.msk.f32.gmra.mxu0 %vm1084_vm2, %v2042_v9 }
 0x3a4   :  { %6430 = vmatmul.msk.f32.vlgmr.msrb.gmra.mxu2 %vm1084_vm2, %v1934_v8 }
 0x3a5   :  { %6434 = vmatmul.msk.f32.vlgmr.msrb.gmra.mxu3 %vm1084_vm2, %v1936_v12 }
 0x3ac   :  { %6431 = vmatmul.msk.f32.gmra.mxu2 %vm1084_vm2, %v2046_v28 }
 0x3ad   :  { %6435 = vmatmul.msk.f32.gmra.mxu3 %vm1084_vm2, %v2048_v26 }
 0x3d0   :  { %v1369_v41 = vpop.f32.mrf.mxu1 }
 0x3d1   :  { %6415 = vmatmul.msk.f32.gmra.mxu1 %vm1084_vm2, %v1369_v41 }
 0x3d9   :  { %6426 = vmatmul.msk.f32.vlgmr.msrb.gmra.mxu1 %vm1084_vm2, %v1932_v48 }
 0x3e1   :  { %6427 = vmatmul.msk.f32.gmra.mxu1 %vm1084_vm2, %v2044_v21 }
 0x401   :  { %v1453_v47 = vpop.f32.mrf.mxu0 }
 0x402   :  { %v1546_v7 = vsel %vm243_vm0, %v1453_v47, 0.0 }
 0x409   :  { %v1456_v1 = vpop.f32.mrf.mxu0 }
 0x40a   :  { %v1553_v48 = vsel %vm243_vm0, %v1456_v1, 0.0 }
 0x414   :  { %v2326_v32 = vpop.f32.mrf.mxu0  ;;  %v1482_v20 = vpop.f32.mrf.mxu1 }
 0x415   :  { %v2327_v13 = vadd.f32 %v2326_v32, %v7607_v35  ;;  %v1547_v24 = vsel %vm243_vm0, %v1482_v20, 0.0 }
 0x416   :  { %v1548_v36 = vadd.f32 %v1547_v24, %v1546_v7 }
 0x417   :  { %v2437_v49 = vsel %vm1225_vm4, %v2327_v13, -inf  ;;  %v1511_v18 = vpop.f32.mrf.mxu2 }
 0x418   :  { %2438 = vmax.xlane.f32.xlu0 %v2437_v49  ;;  %v1549_v10 = vsel %vm243_vm0, %v1511_v18, 0.0  ;;  %v1540_v62 = vpop.f32.mrf.mxu3  ;;  %v8124_v18 = vld [vmem:[#allocation5] ss:$0 sm:$0xff] }
 0x419   :  { %v1550_v33 = vadd.f32 %v1549_v10, %v1548_v36  ;;  %v1551_v2 = vsel %vm243_vm0, %v1540_v62, 0.0 }
 0x41b   :  { %v8079_v31 = vadd.f32 %v1551_v2, %v1550_v33 }
 0x41c   :  { %v2329_v23 = vpop.f32.mrf.mxu0 }
 0x41d   :  { %v2440_v57 = vsel %vm1225_vm4, %v2329_v23, -inf  ;;  %v1563_v33 = vadd.f32 %v8124_v18, %v8079_v31  ;;  %v6800_v31 = vld [vmem:[%s9902_s28 + $0x8] sm:$0xff] }
 0x41f   :  { %v1514_v38 = vpop.f32.mrf.mxu2 }
 0x420   :  { %2441 = vmax.xlane.f32.xlu0 %v2440_v57  ;;  %v1543_v45 = vpop.f32.mrf.mxu3  ;;  %v1556_v52 = vsel %vm243_vm0, %v1514_v38, 0.0  ;;  %v6799_v38 = vld [vmem:[%s9902_s28] sm:$0xff] }
 0x421   :  { %v1558_v40 = vsel %vm243_vm0, %v1543_v45, 0.0  ;;  %v8140_v45 = vadd.f32 %v6799_v38, %v1563_v33 }
 0x427   :  { %v2396_v46 = vpop.f32.mrf.mxu2 }
 0x428   :  { %v2397_v3 = vadd.f32 %v2396_v46, %v7607_v35  ;;  %v2431_v42 = vpop.f32.mrf.mxu3 }
 0x429   :  { %v2432_v58 = vadd.f32 %v2431_v42, %v7607_v35 }
 0x42a   :  { %v2449_v25 = vsel %vm1225_vm4, %v2397_v3, -inf }
 0x42b   :  { %2450 = vmax.xlane.f32.xlu0 %v2449_v25  ;;  %v2455_v0 = vsel %vm1225_vm4, %v2432_v58, -inf }
 0x42f   :  { %v2399_v44 = vpop.f32.mrf.mxu2 }
 0x430   :  { %v2452_v6 = vsel %vm1225_vm4, %v2399_v44, -inf  ;;  %v2434_v34 = vpop.f32.mrf.mxu3 }
 0x431   :  { %2453 = vmax.xlane.f32.xlu2 %v2452_v6  ;;  %v2458_v22 = vsel %vm1225_vm4, %v2434_v34, -inf }
 0x439   :  { %2459 = vmax.xlane.f32.xlu2 %v2458_v22 }
 0x43f   :  { %6597 = vrot.lane.b32.xlu0 %v6596_v15, %s7080_s1 }
 0x44e   :  { %v1485_v17 = vpop.f32.mrf.mxu1 }
 0x44f   :  { %v1554_v21 = vsel %vm243_vm0, %v1485_v17, 0.0 }
 0x450   :  { %v1555_v50 = vadd.f32 %v1554_v21, %v1553_v48 }
 0x451   :  { %6592 = vrot.lane.b32.xlu2 %v6596_v15, %s7079_s19 }
 0x452   :  { %v1557_v4 = vadd.f32 %v1556_v52, %v1555_v50 }
 0x454   :  { %v1559_v43 = vadd.f32 %v1558_v40, %v1557_v4 }
 0x456   :  { %v2361_v11 = vpop.f32.mrf.mxu1  ;;  %v1564_v57 = vadd.f32 %v8124_v18, %v1559_v43 }
 0x457   :  { %v8101_v39 = vadd.f32 %v2361_v11, %v7607_v35 }
 0x458   :  { %v8145_v46 = vadd.f32 %v6800_v31, %v1564_v57 }
 0x459   :  { %v2443_v54 = vsel %vm1225_vm4, %v8101_v39, -inf }
 0x45a   :  { %2444 = vmax.xlane.f32.xlu1 %v2443_v54  ;;  %v2780_v25 = vsel %vm243_vm0, %v8145_v46, 0.0 }
 0x45e   :  { %v8105_v16 = vpop.f32.mrf.mxu1 }
 0x45f   :  { %v2446_v9 = vsel %vm1225_vm4, %v8105_v16, -inf }
 0x462   :  { %2447 = vmax.xlane.f32.xlu1 %v2446_v9  ;;  %v2135_v9 = vrot.slane %v8090_v60, 4 }
 0x46a   :  { %2456 = vmax.xlane.f32.xlu1 %v2455_v0 }
 0x483   :  { %6602 = vrot.lane.b32.xlu1 %v6596_v15, %s7081_s22 }
 0x48b   :  { %v2439_v27 = vpop.xlane.xlu0 %2438 }
 0x48c   :  { %v2461_v12 = vsub.f32 %v2327_v13, %v2439_v27 }
 0x48e   :  { %v2469_v14 = vmul.f32 1.442695, %v2461_v12 }
 0x493   :  { %v2442_v56 = vpop.xlane.xlu0 %2441 }
 0x494   :  { %v2462_v41 = vsub.f32 %v2329_v23, %v2442_v56 }
 0x496   :  { %v2471_v1 = vmul.f32 1.442695, %v2462_v41 }
 0x49e   :  { %v2451_v8 = vpop.xlane.xlu0 %2450 }
 0x49f   :  { %v2465_v37 = vsub.f32 %v2397_v3, %v2451_v8  ;;  %v2777_v3 = vsel %vm243_vm0, %v8140_v45, 0.0 }
 0x4a1   :  { %v2477_v30 = vmul.f32 1.442695, %v2465_v37 }
 0x4a3   :  { %6676 = vpow2.f32 %v2477_v30 }
 0x4a4   :  { %v2454_v51 = vpop.xlane.xlu2 %2453  ;;  %6678 = vpow2.f32 %v2469_v14 }
 0x4a5   :  { %v2466_v28 = vsub.f32 %v2399_v44, %v2454_v51 }
 0x4a7   :  { %v2479_v26 = vmul.f32 1.442695, %v2466_v28 }
 0x4a9   :  { %v8112_v47 = vpop.eup %6676  ;;  %6680 = vpow2.f32 %v2479_v26 }
 0x4aa   :  { %v2497_v35 = vsel %vm1225_vm4, %v8112_v47, 0.0  ;;  %v8116_v7 = vpop.eup %6678  ;;  %6682 = vpow2.f32 %v2471_v1 }
 0x4ab   :  { %2498 = vadd.xlane.f32.xlu0 %v2497_v35  ;;  %v2485_v49 = vsel %vm1225_vm4, %v8116_v7, 0.0 }
 0x4ac   :  { %v2460_v32 = vpop.xlane.xlu2 %2459 }
 0x4ad   :  { %v2468_v20 = vsub.f32 %v2434_v34, %v2460_v32 }
 0x4af   :  { %v8118_v13 = vpop.eup %6680  ;;  %v2483_v24 = vmul.f32 1.442695, %v2468_v20 }
 0x4b0   :  { %v2500_v36 = vsel %vm1225_vm4, %v8118_v13, 0.0  ;;  %v8126_v10 = vpop.eup %6682 }
 0x4b1   :  { %6684 = vpow2.f32 %v2483_v24  ;;  %2501 = vadd.xlane.f32.xlu1 %v2500_v36  ;;  %v2488_v23 = vsel %vm1225_vm4, %v8126_v10, 0.0  ;;  %v6598_v17 = vpop.permute.xlu0 %6597 }
 0x4b2   :  { %v6600_v52 = vunpack.i.h.bf16 %v6598_v17  ;;  %v6599_v4 = vunpack.i.l.bf16 %v6598_v17 }
 0x4b3   :  { %2486 = vadd.xlane.f32.xlu0 %v2485_v49 }
 0x4b4   :  { %v2077_v11 = vrot.slane %v6600_v52, 4  ;;  %v6593_v54 = vpop.permute.xlu2 %6592  ;;  %v2136_v56 = vsel %vm396_vm1, %v6599_v4, %v2135_v9 }
 0x4b5   :  { %v6595_v8 = vunpack.i.h.bf16 %v6593_v54  ;;  %v6594_v37 = vunpack.i.l.bf16 %v6593_v54  ;;  %v2144_v51 = vperm.slane %v2136_v56, %v7329_v29 }
 0x4b6   :  { %v2078_v27 = vsel %vm396_vm1, %v2077_v11, %v8087_v19 }
 0x4b7   :  { %v8128_v62 = vpop.eup %6684  ;;  %v2084_v30 = vperm.slane %v2078_v27, %v7329_v29  ;;  %v2091_v41 = vrot.slane %v6595_v8, 4  ;;  %v2147_v35 = vrot.slane %v6594_v37, 4  ;;  %v2171_v38 = vrot.slane %v2144_v51, 4 }
 0x4b8   :  { %v2506_v2 = vsel %vm1225_vm4, %v8128_v62, 0.0 }
 0x4b9   :  { %2507 = vadd.xlane.f32.xlu1 %v2506_v2  ;;  %v2103_v57 = vrot.slane %v2084_v30, 4 }
 0x4bb   :  { %2489 = vadd.xlane.f32.xlu0 %v2488_v23 }
 0x4c1   :  { %2778 = vadd.xlane.f32.xlu1 %v2777_v3 }
 0x4c3   :  { %2781 = vadd.xlane.f32.xlu0 %v2780_v25 }
 0x4cd   :  { %v2445_v42 = vpop.xlane.xlu1 %2444 }
 0x4ce   :  { %v2463_v22 = vsub.f32 %v8101_v39, %v2445_v42  ;;  %v2079_v39 = vrot.slane %v8087_v19, 4 }
 0x4d0   :  { %v2473_v15 = vmul.f32 1.442695, %v2463_v22  ;;  %v2080_v0 = vsel %vm396_vm1, %v6600_v52, %v2079_v39 }
 0x4d1   :  { %v2088_v14 = vperm.slane %v2080_v0, %v7329_v29 }
 0x4d3   :  { %v2115_v49 = vrot.slane %v2088_v14, 4 }
 0x4d5   :  { %v2448_v44 = vpop.xlane.xlu1 %2447 }
 0x4d6   :  { %v2464_v21 = vsub.f32 %v8105_v16, %v2448_v44 }
 0x4d8   :  { %v2475_v40 = vmul.f32 1.442695, %v2464_v21 }
 0x4dd   :  { %v2457_v6 = vpop.xlane.xlu1 %2456 }
 0x4de   :  { %v2467_v34 = vsub.f32 %v2432_v58, %v2457_v6  ;;  %v2133_v58 = vrot.slane %v6599_v4, 4 }
 0x4e0   :  { %v2481_v63 = vmul.f32 1.442695, %v2467_v34  ;;  %v2134_v12 = vsel %vm396_vm1, %v2133_v58, %v8090_v60 }
 0x4e1   :  { %v2140_v32 = vperm.slane %v2134_v12, %v7329_v29 }
 0x4e2   :  { %6686 = vpow2.f32 %v2481_v63 }
 0x4e3   :  { %6688 = vpow2.f32 %v2473_v15  ;;  %v2159_v34 = vrot.slane %v2140_v32, 4 }
 0x4e4   :  { %6690 = vpow2.f32 %v2475_v40 }
 0x4e8   :  { %v8152_v48 = vpop.eup %6686 }
 0x4e9   :  { %v2503_v50 = vsel %vm1225_vm4, %v8152_v48, 0.0  ;;  %v8157_v43 = vpop.eup %6688 }
 0x4ea   :  { %2504 = vadd.xlane.f32.xlu2 %v2503_v50  ;;  %v2491_v16 = vsel %vm1225_vm4, %v8157_v43, 0.0  ;;  %v8172_v26 = vpop.eup %6690 }
 0x4eb   :  { %v2494_v23 = vsel %vm1225_vm4, %v8172_v26, 0.0 }
 0x4f2   :  { %2492 = vadd.xlane.f32.xlu2 %v2491_v16 }
 0x4f5   :  { %v6603_v28 = vpop.permute.xlu1 %6602 }
 0x4f6   :  { %v6605_v19 = vunpack.i.h.bf16 %v6603_v28  ;;  %v6604_v1 = vunpack.i.l.bf16 %v6603_v28 }
 0x4f8   :  { %v2089_v20 = vrot.slane %v6605_v19, 4  ;;  %v2092_v24 = vsel %vm396_vm1, %v6605_v19, %v2091_v41  ;;  %v2145_v36 = vrot.slane %v6604_v1, 4  ;;  %v2148_v60 = vsel %vm396_vm1, %v6604_v1, %v2147_v35 }
 0x4f9   :  { %v2100_v33 = vperm.slane %v2092_v24, %v7329_v29  ;;  %v2156_v2 = vperm.slane %v2148_v60, %v7329_v29 }
 0x4fa   :  { %v2090_v31 = vsel %vm396_vm1, %v2089_v20, %v6595_v8  ;;  %v2146_v3 = vsel %vm396_vm1, %v2145_v36, %v6594_v37  ;;  %2495 = vadd.xlane.f32.xlu2 %v2494_v23 }
 0x4fb   :  { %v2096_v25 = vperm.slane %v2090_v31, %v7329_v29  ;;  %v2113_v42 = vrot.slane %v2100_v33, 4  ;;  %v2116_v44 = vsel %vm396_vm1, %v2100_v33, %v2115_v49  ;;  %v2152_v6 = vperm.slane %v2146_v3, %v7329_v29 }
 0x4fc   :  { %v2124_v22 = vperm.slane %v2116_v44, %v7350_v59  ;;  %v2169_v63 = vrot.slane %v2156_v2, 4  ;;  %v2172_v15 = vsel %vm396_vm1, %v2156_v2, %v2171_v38 }
 0x4fd   :  { %v2101_v17 = vrot.slane %v2096_v25, 4  ;;  %v2104_v21 = vsel %vm396_vm1, %v2096_v25, %v2103_v57  ;;  %v2114_v50 = vsel %vm396_vm1, %v2113_v42, %v2088_v14  ;;  %v2157_v52 = vrot.slane %v2152_v6, 4 }
 0x4fe   :  { %v2112_v4 = vperm.slane %v2104_v21, %v7350_v59  ;;  %v2120_v40 = vperm.slane %v2114_v50, %v7350_v59  ;;  %v2131_v11 = vrot.slane %v2124_v22, 4  ;;  %v2160_v39 = vsel %vm396_vm1, %v2152_v6, %v2159_v34 }
 0x4ff   :  { %v2102_v54 = vsel %vm396_vm1, %v2101_v17, %v2084_v30  ;;  %v2158_v9 = vsel %vm396_vm1, %v2157_v52, %v2140_v32  ;;  %v2168_v58 = vperm.slane %v2160_v39, %v7350_v59  ;;  %v2170_v0 = vsel %vm396_vm1, %v2169_v63, %v2144_v51 }
 0x500   :  { %v2108_v16 = vperm.slane %v2102_v54, %v7350_v59  ;;  %v2127_v27 = vrot.slane %v2112_v4, 4  ;;  %v2129_v56 = vrot.slane %v2120_v40, 4  ;;  %v2132_v8 = vsel %vm396_vm1, 0.0, %v2131_v11 }
 0x501   :  { %v2205_v37 = vrot.slane %v2132_v8, 4  ;;  %v2164_v12 = vperm.slane %v2158_v9, %v7350_v59  ;;  %v2176_v14 = vperm.slane %v2170_v0, %v7350_v59  ;;  %v2180_v28 = vperm.slane %v2172_v15, %v7350_v59 }
 0x502   :  { %v2128_v30 = vsel %vm396_vm1, 0.0, %v2127_v27  ;;  %v2183_v41 = vrot.slane %v2168_v58, 4  ;;  %v2125_v35 = vrot.slane %v2108_v16, 4  ;;  %v2130_v19 = vsel %vm396_vm1, 0.0, %v2129_v56 }
 0x503   :  { %v2185_v51 = vrot.slane %v2176_v14, 4  ;;  %v2187_v1 = vrot.slane %v2180_v28, 4  ;;  %v2181_v32 = vrot.slane %v2164_v12, 4  ;;  %v2189_v20 = vsel %vm396_vm1, %v2127_v27, %v2108_v16 }
 0x504   :  { %v2184_v24 = vsel %vm396_vm1, 0.0, %v2183_v41  ;;  %v2243_v36 = vsel %vm396_vm1, %v2183_v41, %v2164_v12  ;;  %v2126_v60 = vsel %vm396_vm1, 0.0, %v2125_v35  ;;  %v2193_v49 = vperm.slane %v2189_v20, %v7329_v29 }
 0x505   :  { %v2188_v33 = vsel %vm396_vm1, 0.0, %v2187_v1  ;;  %v2248_v2 = vrot.slane %v2184_v24, 4  ;;  %v2254_v23 = vsel %vm396_vm1, %v2187_v1, %v2176_v14  ;;  %v2182_v57 = vsel %vm396_vm1, 0.0, %v2181_v32 }
 0x506   :  { %v2259_v38 = vrot.slane %v2188_v33, 4  ;;  %v2186_v31 = vsel %vm396_vm1, 0.0, %v2185_v51  ;;  %v2247_v3 = vperm.slane %v2243_v36, %v7329_v29  ;;  %v2258_v25 = vperm.slane %v2254_v23, %v7329_v29 }
 0x507   :  { %v2249_v42 = vsel %vm396_vm1, %v2248_v2, %v2182_v57  ;;  %v2194_v44 = vrot.slane %v2128_v30, 4  ;;  %v2200_v6 = vsel %vm396_vm1, %v2131_v11, %v2120_v40  ;;  %v2206_v34 = vsel %vm396_vm1, %v2205_v37, %v2130_v19 }
 0x508   :  { %v2253_v22 = vperm.slane %v2249_v42, %v7329_v29  ;;  %v2260_v63 = vsel %vm396_vm1, %v2259_v38, %v2186_v31  ;;  %v2267_v15 = vrot.slane %v2247_v3, 4  ;;  %v2279_v17 = vrot.slane %v2258_v25, 4 }
 0x509   :  { %v2264_v21 = vperm.slane %v2260_v63, %v7329_v29  ;;  %v2195_v50 = vsel %vm396_vm1, %v2194_v44, %v2126_v60  ;;  %v2204_v52 = vperm.slane %v2200_v6, %v7329_v29  ;;  %v2210_v4 = vperm.slane %v2206_v34, %v7329_v29 }
 0x50a   :  { %v2268_v39 = vsel %vm396_vm1, %v2253_v22, %v2267_v15  ;;  %v2265_v54 = vrot.slane %v2253_v22, 4  ;;  %v2199_v40 = vperm.slane %v2195_v50, %v7329_v29  ;;  %v2213_v11 = vrot.slane %v2193_v49, 4  ;;  %v6801_v22 = vld [vmem:[%s9906_s27] sm:$0xff]  ;;  %s9908_s27 = sld [smem:[#allocation28_spill]] }
 0x50b   :  { %v2276_v9 = vperm.slane %v2268_v39, %v7350_v59  ;;  %v2280_v58 = vsel %vm396_vm1, %v2264_v21, %v2279_v17  ;;  %v2277_v0 = vrot.slane %v2264_v21, 4  ;;  %v2225_v16 = vrot.slane %v2204_v52, 4 }
 0x50c   :  { %v2288_v27 = vperm.slane %v2280_v58, %v7350_v59  ;;  %v2266_v56 = vsel %vm396_vm1, %v2265_v54, %v2247_v3  ;;  %v2214_v8 = vsel %vm396_vm1, %v2199_v40, %v2213_v11  ;;  %v2211_v37 = vrot.slane %v2199_v40, 4 }
 0x50d   :  { %v2272_v12 = vperm.slane %v2266_v56, %v7350_v59  ;;  %v2278_v14 = vsel %vm396_vm1, %v2277_v0, %v2258_v25  ;;  %v2222_v28 = vperm.slane %v2214_v8, %v7350_v59  ;;  %v2226_v30 = vsel %vm396_vm1, %v2210_v4, %v2225_v16 }
 0x50e   :  { %v2293_v41 = vrot.slane %v2288_v27, 4  ;;  %v2284_v35 = vperm.slane %v2278_v14, %v7350_v59  ;;  %v2234_v19 = vperm.slane %v2226_v30, %v7350_v59  ;;  %v2295_v51 = vrot.slane %v2276_v9, 4 }
 0x50f   :  { %v2212_v1 = vsel %vm396_vm1, %v2211_v37, %v2193_v49  ;;  %v2223_v32 = vrot.slane %v2210_v4, 4  ;;  %v2291_v20 = vrot.slane %v2272_v12, 4  ;;  %v2241_v24 = vrot.slane %v2222_v28, 4 }
 0x510   :  { %v2294_v36 = vsel %vm396_vm1, %v2293_v41, %v2276_v9  ;;  %v2289_v60 = vrot.slane %v2284_v35, 4  ;;  %v2239_v33 = vrot.slane %v2234_v19, 4  ;;  %v2296_v2 = vsel %vm396_vm1, %v2288_v27, %v2295_v51 }
 0x511   :  { %2603 = vmatpush.msra.mxu2 %v2294_v36  ;;  %2632 = vmatpush.msra.mxu3 %v2296_v2  ;;  %v2218_v23 = vperm.slane %v2212_v1, %v7350_v59  ;;  %v2224_v57 = vsel %vm396_vm1, %v2223_v32, %v2204_v52  ;;  %v2292_v38 = vsel %vm396_vm1, %v2284_v35, %v2291_v20  ;;  %v7088_v63 = vmov 32.0  }
 0x512   :  { %v2290_v31 = vsel %vm396_vm1, %v2289_v60, %v2272_v12  ;;  %v2240_v49 = vsel %vm396_vm1, %v2239_v33, %v2222_v28  ;;  %v2230_v3 = vperm.slane %v2224_v57, %v7350_v59  ;;  %2574 = vmatpush.msra.mxu1 %v2292_v38  ;;  %v2242_v25 = vsel %vm396_vm1, %v2234_v19, %v2241_v24 }
 0x513   :  { %2545 = vmatpush.msrb.mxu0 %v2290_v31  ;;  %2604 = vmatpush.msra.mxu2 %v2240_v49  ;;  %v2237_v42 = vrot.slane %v2218_v23, 4  ;;  %6692 = vrcp.f32 %v7088_v63 }
 0x514   :  { %v2235_v44 = vrot.slane %v2230_v3, 4  ;;  %2633 = vmatpush.msra.mxu3 %v2242_v25 }
 0x515   :  { %2720 = vmatpush.msrb.mxu2 %v7855_v53  ;;  %v2238_v6 = vsel %vm396_vm1, %v2230_v3, %v2237_v42 }
 0x516   :  { %2749 = vmatpush.msrb.mxu3 %v7871_v5  ;;  %v2236_v34 = vsel %vm396_vm1, %v2235_v44, %v2218_v23  ;;  %2575 = vmatpush.msra.mxu1 %v2238_v6 }
 0x517   :  { %2546 = vmatpush.msrb.mxu0 %v2236_v34 }
 0x518   :  { %2691 = vmatpush.msrb.mxu1 %v7850_v55 }
 0x519   :  { %2662 = vmatpush.msra.mxu0 %v6801_v22  ;;  %v6693_v17 = vpop.eup %6692 }
 0x51a   :  { %v2790_v53 = vmul.f32 32.0, %v6693_v17  ;;  %vm2794_vm5 = vweird.f32 %v6693_v17 }
 0x51c   :  { %v2791_v4 = vsub.f32 1.0, %v2790_v53 }
 0x51e   :  { %v2499_v15 = vpop.xlane.xlu0 %2498  ;;  %v2792_v55 = vmul.f32 %v6693_v17, %v2791_v4 }
 0x51f   :  { %6694 = vrcp.f32 %v2499_v15 }
 0x520   :  { %v2793_v0 = vadd.f32 %v6693_v17, %v2792_v55 }
 0x524   :  { %v2502_v21 = vpop.xlane.xlu1 %2501 }
 0x525   :  { %v6695_v50 = vpop.eup %6694  ;;  %6696 = vrcp.f32 %v2502_v21 }
 0x526   :  { %v2521_v5 = vmul.f32 %v6695_v50, %v8112_v47  ;;  %v2487_v52 = vpop.xlane.xlu0 %2486  ;;  %v8261_v47 = vsel %vm2794_vm5, %v6693_v17, %v2793_v0  ;;  %v229_v17 = vld [vmem:[#allocation13] sm:$0x7]  ;;  %v230_v50 = vld [vmem:[#allocation14] sm:$0x7] }
 0x527   :  { %6698 = vrcp.f32 %v2487_v52  ;;  %v8305_v4 = vperm.slane %v229_v17, 0 }
 0x528   :  { %6440 = vmatmul.msk.f32.vlgmr.msra.gmra.mxu2 %vm1225_vm4, %v2521_v5 }
 0x52b   :  { %v6697_v39 = vpop.eup %6696 }
 0x52c   :  { %v2508_v54 = vpop.xlane.xlu1 %2507  ;;  %v2522_v58 = vmul.f32 %v6697_v39, %v8118_v13 }
 0x52d   :  { %v6699_v40 = vpop.eup %6698 }
 0x52e   :  { %v2517_v11 = vmul.f32 %v6699_v40, %v8116_v7  ;;  %v2490_v9 = vpop.xlane.xlu0 %2489 }
 0x52f   :  { %6700 = vrcp.f32 %v2490_v9 }
 0x530   :  { %6436 = vmatmul.msk.f32.vlgmr.msrb.gmra.mxu0 %vm1225_vm4, %v2517_v11  ;;  %6441 = vmatmul.msk.f32.gmra.mxu2 %vm1225_vm4, %v2522_v58 }
 0x534   :  { %v2779_v16 = vpop.xlane.xlu1 %2778 }
 0x535   :  { %v6701_v27 = vpop.eup %6700  ;;  %v2796_v56 = vmul.f32 %v8261_v47, %v2779_v16  ;;  %v6802_v16 = vld [vmem:[%s9903_s5] sm:$0xff] }
 0x536   :  { %v2782_v8 = vpop.xlane.xlu0 %2781  ;;  %v2518_v37 = vmul.f32 %v6701_v27, %v8126_v10 }
 0x537   :  { %v8266_v7 = vsub.f32 %v8140_v45, %v2796_v56  ;;  %v2797_v13 = vmul.f32 %v8261_v47, %v2782_v8 }
 0x538   :  { %6437 = vmatmul.msk.f32.gmra.mxu0 %vm1225_vm4, %v2518_v37  ;;  %v6803_v37 = vld [vmem:[%s9903_s5 + $0x8] sm:$0xff] }
 0x539   :  { %v8271_v12 = vsub.f32 %v8145_v46, %v2797_v13  ;;  %v2804_v14 = vmul.f32 %v8266_v7, %v8266_v7  ;;  %v2944_v13 = vld [vmem:[%s9869_s13 + $0x18] sm:$0xff] }
 0x53b   :  { %v2808_v28 = vsel %vm243_vm0, %v2804_v14, 0.0  ;;  %v2805_v30 = vmul.f32 %v8271_v12, %v8271_v12  ;;  %v2942_v14 = vld [vmem:[%s9869_s13 + $0x8] sm:$0xff] }
 0x53c   :  { %2809 = vadd.xlane.f32.xlu2 %v2808_v28  ;;  %v2941_v28 = vld [vmem:[%s9869_s13] sm:$0xff] }
 0x53d   :  { %v2811_v10 = vsel %vm243_vm0, %v2805_v30, 0.0 }
 0x53e   :  { %2812 = vadd.xlane.f32.xlu1 %v2811_v10 }
 0x55d   :  { %v2505_v45 = vpop.xlane.xlu2 %2504 }
 0x55e   :  { %6702 = vrcp.f32 %v2505_v45 }
 0x55f   :  { %6704 = vrcp.f32 %v2508_v54  ;;  %v8307_v54 = vperm.slane %v230_v50, 0 }
 0x564   :  { %v6703_v41 = vpop.eup %6702 }
 0x565   :  { %v2523_v35 = vmul.f32 %v6703_v41, %v8152_v48  ;;  %v2493_v46 = vpop.xlane.xlu2 %2492  ;;  %v6705_v19 = vpop.eup %6704  ;;  %v2889_v48 = vld [vmem:[%s9867_s11 + $0x18] sm:$0xff] }
 0x566   :  { %6706 = vrcp.f32 %v2493_v46  ;;  %v2524_v20 = vmul.f32 %v6705_v19, %v8128_v62  ;;  %2918 = vmatpush.msrb.mxu0 %v2889_v48  ;;  %v2887_v62 = vld [vmem:[%s9867_s11 + $0x8] sm:$0xff]  ;;  %v223_v46 = vld [vmem:[%s9908_s27] sm:$0xff] }
 0x567   :  { %6442 = vmatmul.msk.f32.vlgmr.msra.gmra.mxu3 %vm1225_vm4, %v2523_v35  ;;  %v207_v35 = vld [vmem:[%s9907_s18] sm:$0xff] }
 0x568   :  { %v2935_v19 = vadd.f32 %v223_v46, %v207_v35  ;;  %v214_v35 = vld [vmem:[%s9909_s0 + $0x8] sm:$0xff] }
 0x56c   :  { %v6707_v51 = vpop.eup %6706 }
 0x56d   :  { %v2519_v1 = vmul.f32 %v6707_v51, %v8157_v43  ;;  %v2496_v32 = vpop.xlane.xlu2 %2495  ;;  %v2888_v43 = vld [vmem:[%s9867_s11 + $0x10] sm:$0xff]  ;;  %v208_v51 = vld [vmem:[%s9907_s18 + $0x8] sm:$0xff] }
 0x56e   :  { %6708 = vrcp.f32 %v2496_v32  ;;  %2919 = vmatpush.msrb.mxu0 %v2888_v43 }
 0x56f   :  { %6438 = vmatmul.msk.f32.vlgmr.msra.gmra.mxu1 %vm1225_vm4, %v2519_v1  ;;  %6443 = vmatmul.msk.f32.gmra.mxu3 %vm1225_vm4, %v2524_v20  ;;  %v224_v1 = vld [vmem:[%s9908_s27 + $0x8] sm:$0xff]  ;;  %v209_v20 = vld [vmem:[%s9907_s18 + $0x10] sm:$0xff] }
 0x570   :  { %2920 = vmatpush.msrb.mxu0 %v2887_v62  ;;  %2979 = vmatpush.msra.mxu1 %v2944_v13  ;;  %v2936_v32 = vadd.f32 %v224_v1, %v208_v51  ;;  %v6805_v13 = vld [vmem:[%s9902_s28 + $0x10] sm:$0xff] }
 0x574   :  { %v6709_v24 = vpop.eup %6708 }
 0x575   :  { %v2520_v36 = vmul.f32 %v6709_v24, %v8172_v26  ;;  %v2886_v26 = vld [vmem:[%s9867_s11] sm:$0xff]  ;;  %v225_v24 = vld [vmem:[%s9908_s27 + $0x10] sm:$0xff] }
 0x576   :  { %2921 = vmatpush.msrb.mxu0 %v2886_v26 }
 0x577   :  { %6439 = vmatmul.msk.f32.gmra.mxu1 %vm1225_vm4, %v2520_v36  ;;  %v2937_v36 = vadd.f32 %v225_v24, %v209_v20 }
 0x5ab   :  { %v2606_v60 = vpop.f32.mrf.mxu2 }
 0x5ac   :  { %6448 = vmatmul.msk.f32.vlgmr.msrb.gmra.mxu2 %vm1084_vm2, %v2606_v60 }
 0x5ad   :  { %v2548_v33 = vpop.f32.mrf.mxu0 }
 0x5ae   :  { %6444 = vmatmul.msk.f32.vlgmr.msra.gmra.mxu0 %vm1084_vm2, %v2548_v33 }
 0x5af   :  { %v2810_v2 = vpop.xlane.xlu2 %2809 }
 0x5b0   :  { %v2820_v23 = vmul.f32 %v2810_v2, %v8261_v47  ;;  %v6640_v2 = vld [vmem:[#allocation8] ss:$0 sm:$0xff] }
 0x5b1   :  { %v2813_v57 = vpop.xlane.xlu1 %2812 }
 0x5b2   :  { %v2824_v38 = vadd.f32 1e-05, %v2820_v23  ;;  %v2821_v31 = vmul.f32 %v2813_v57, %v8261_v47 }
 0x5b3   :  { %v2609_v49 = vpop.f32.mrf.mxu2 }
 0x5b4   :  { %6710 = vrsqrt.f32 %v2824_v38  ;;  %v2825_v3 = vadd.f32 1e-05, %v2821_v31  ;;  %6449 = vmatmul.msk.f32.gmra.mxu2 %vm1084_vm2, %v2609_v49  ;;  %vm2834_vm7 = vweird.f32 %v2824_v38  ;;  %v6639_v31 = vld [vmem:[#allocation7] ss:$0 sm:$0xff] }
 0x5b5   :  { %v2551_v25 = vpop.f32.mrf.mxu0 }
 0x5b6   :  { %6712 = vrsqrt.f32 %v2825_v3  ;;  %6445 = vmatmul.msk.f32.gmra.mxu0 %vm1084_vm2, %v2551_v25  ;;  %vm2844_vm10 = vweird.f32 %v2825_v3 }
 0x5ba   :  { %v6711_v42 = vpop.eup %6710 }
 0x5bb   :  { %v2829_v44 = vmul.f32 %v6711_v42, %v2824_v38  ;;  %vm2835_vm6 = vweird.f32 %v6711_v42 }
 0x5bc   :  { %v6713_v6 = vpop.eup %6712  ;;  %vm2836_vm9 = vmor %vm2834_vm7, %vm2835_vm6 }
 0x5bd   :  { %v2830_v34 = vmul.f32 %v6711_v42, %v2829_v44  ;;  %v2839_v22 = vmul.f32 %v6713_v6, %v2825_v3  ;;  %vm2845_vm8 = vweird.f32 %v6713_v6 }
 0x5be   :  { %vm2846_vm11 = vmor %vm2844_vm10, %vm2845_vm8 }
 0x5bf   :  { %v2831_v63 = vmul.f32 0.5, %v2830_v34  ;;  %v2840_v15 = vmul.f32 %v6713_v6, %v2839_v22 }
 0x5c1   :  { %v2832_v53 = vsub.f32 1.5, %v2831_v63  ;;  %v2841_v21 = vmul.f32 0.5, %v2840_v15 }
 0x5c3   :  { %v2833_v5 = vmul.f32 %v6711_v42, %v2832_v53  ;;  %v2842_v52 = vsub.f32 1.5, %v2841_v21 }
 0x5c5   :  { %v2837_v55 = vsel %vm2836_vm9, %v6711_v42, %v2833_v5  ;;  %v2843_v39 = vmul.f32 %v6713_v6, %v2842_v52 }
 0x5c6   :  { %v2868_v40 = vmul.f32 %v2837_v55, %v8266_v7 }
 0x5c7   :  { %v2847_v11 = vsel %vm2846_vm11, %v6713_v6, %v2843_v39 }
 0x5c8   :  { %v2873_v9 = vmul.f32 %v8305_v4, %v2868_v40  ;;  %v2869_v58 = vmul.f32 %v2847_v11, %v8271_v12  ;;  %v2943_v12 = vld [vmem:[%s9869_s13 + $0x10] sm:$0xff] }
 0x5c9   :  { %2980 = vmatpush.msra.mxu1 %v2943_v12 }
 0x5ca   :  { %v8313_v0 = vadd.f32 %v8307_v54, %v2873_v9  ;;  %v2874_v56 = vmul.f32 %v8305_v4, %v2869_v58 }
 0x5cb   :  { %2981 = vmatpush.msra.mxu1 %v2942_v14 }
 0x5cc   :  { %v2882_v27 = vadd.f32 %v6802_v16, %v8313_v0  ;;  %v8322_v8 = vadd.f32 %v8307_v54, %v2874_v56 }
 0x5cd   :  { %2982 = vmatpush.msra.mxu1 %v2941_v28 }
 0x5ce   :  { %6452 = vmatmul.msk.f32.vlgmr.msrb.gmra.mxu0 %vm243_vm0, %v2882_v27  ;;  %v2883_v7 = vadd.f32 %v6803_v37, %v8322_v8  ;;  %v6804_v37 = vld [vmem:[%s9902_s28 + $0x18] sm:$0xff] }
 0x5d6   :  { %6453 = vmatmul.msk.f32.gmra.mxu0 %vm243_vm0, %v2883_v7 }
 0x5ea   :  { %v2635_v30 = vpop.f32.mrf.mxu3 }
 0x5eb   :  { %6450 = vmatmul.msk.f32.vlgmr.msrb.gmra.mxu3 %vm1084_vm2, %v2635_v30  ;;  %v3004_v30 = vld [vmem:[%s9871_s15 + $0x10] sm:$0xff] }
 0x5ec   :  { %v2577_v10 = vpop.f32.mrf.mxu1 }
 0x5ed   :  { %6446 = vmatmul.msk.f32.vlgmr.msrb.gmra.mxu1 %vm1084_vm2, %v2577_v10  ;;  %v3003_v10 = vld [vmem:[%s9871_s15 + $0x8] sm:$0xff] }
 0x5f2   :  { %v2638_v45 = vpop.f32.mrf.mxu3 }
 0x5f3   :  { %6451 = vmatmul.msk.f32.gmra.mxu3 %vm1084_vm2, %v2638_v45  ;;  %v3002_v45 = vld [vmem:[%s9871_s15] sm:$0xff] }
 0x5f4   :  { %v2580_v41 = vpop.f32.mrf.mxu1 }
 0x5f5   :  { %6447 = vmatmul.msk.f32.gmra.mxu1 %vm1084_vm2, %v2580_v41  ;;  %v213_v41 = vld [vmem:[%s9909_s0] sm:$0xff] }
 0x5fd   :  { %6456 = vmatmul.msk.f32.vlgmr.msra.gmra.mxu1 %vm243_vm0, %v2935_v19  ;;  %v215_v19 = vld [vmem:[%s9909_s0 + $0x10] sm:$0xff] }
 0x605   :  { %6457 = vmatmul.msk.f32.gmra.mxu1 %vm243_vm0, %v2936_v32 }
 0x60d   :  { %6458 = vmatmul.msk.f32.gmra.mxu1 %vm243_vm0, %v2937_v36 }
 0x62b   :  { %v2664_v48 = vpop.f32.mrf.mxu0 }
 0x62c   :  { %v2757_v60 = vsel %vm243_vm0, %v2664_v48, 0.0 }
 0x62f   :  { %v2722_v63 = vpop.f32.mrf.mxu2 }
 0x630   :  { %v2760_v55 = vsel %vm243_vm0, %v2722_v63, 0.0 }
 0x633   :  { %v2667_v23 = vpop.f32.mrf.mxu0 }
 0x634   :  { %v2764_v53 = vsel %vm243_vm0, %v2667_v23, 0.0 }
 0x637   :  { %v2725_v21 = vpop.f32.mrf.mxu2 }
 0x638   :  { %v2767_v52 = vsel %vm243_vm0, %v2725_v21, 0.0 }
 0x64b   :  { %v2923_v49 = vpop.f32.mrf.mxu0 }
 0x64c   :  { %v8376_v3 = vadd.f32 %v6639_v31, %v2923_v49 }
 0x653   :  { %v2926_v34 = vpop.f32.mrf.mxu0 }
 0x654   :  { %v8400_v22 = vadd.f32 %v6639_v31, %v2926_v34 }
 0x66a   :  { %v2693_v43 = vpop.f32.mrf.mxu1 }
 0x66b   :  { %v2758_v62 = vsel %vm243_vm0, %v2693_v43, 0.0 }
 0x66c   :  { %v2759_v33 = vadd.f32 %v2758_v62, %v2757_v60 }
 0x66e   :  { %v2751_v15 = vpop.f32.mrf.mxu3  ;;  %v2761_v40 = vadd.f32 %v2760_v55, %v2759_v33 }
 0x66f   :  { %v2762_v9 = vsel %vm243_vm0, %v2751_v15, 0.0  ;;  %v3090_v15 = vrot.slane %v8376_v3, 4 }
 0x670   :  { %v2763_v16 = vadd.f32 %v2762_v9, %v2761_v40 }
 0x672   :  { %v2696_v26 = vpop.f32.mrf.mxu1  ;;  %v2771_v56 = vadd.f32 %v8124_v18, %v2763_v16 }
 0x673   :  { %v2765_v17 = vsel %vm243_vm0, %v2696_v26, 0.0 }
 0x674   :  { %v2766_v50 = vadd.f32 %v2765_v17, %v2764_v53  ;;  %v8420_v12 = vadd.f32 %v6805_v13, %v2771_v56 }
 0x676   :  { %v2754_v5 = vpop.f32.mrf.mxu3  ;;  %v2768_v39 = vadd.f32 %v2767_v52, %v2766_v50  ;;  %v2783_v28 = vsel %vm243_vm0, %v8420_v12, 0.0 }
 0x677   :  { %v2769_v11 = vsel %vm243_vm0, %v2754_v5, 0.0 }
 0x678   :  { %v2770_v58 = vadd.f32 %v2769_v11, %v2768_v39 }
 0x67a   :  { %v2984_v57 = vpop.f32.mrf.mxu1  ;;  %v2772_v27 = vadd.f32 %v8124_v18, %v2770_v58  ;;  %v3005_v18 = vld [vmem:[%s9871_s15 + $0x18] sm:$0xff] }
 0x67b   :  { %v8368_v38 = vadd.f32 %v6640_v2, %v2984_v57  ;;  %3040 = vmatpush.msra.mxu2 %v3005_v18 }
 0x67c   :  { %v8415_v7 = vadd.f32 %v6804_v37, %v2772_v27 }
 0x67d   :  { %3329 = vrot.lane.b32.xlu2 %v8368_v38, %s7081_s22  ;;  %3311 = vrot.lane.b32.xlu0 %v8368_v38, %s7079_s19  ;;  %v3340_v32 = vrot.slane %v8368_v38, 4 }
 0x67e   :  { %3320 = vrot.lane.b32.xlu1 %v8368_v38, %s7080_s1  ;;  %v2786_v14 = vsel %vm243_vm0, %v8415_v7, 0.0  ;;  %3041 = vmatpush.msra.mxu2 %v3004_v30 }
 0x680   :  { %3042 = vmatpush.msra.mxu2 %v3003_v10 }
 0x682   :  { %v2987_v25 = vpop.f32.mrf.mxu1  ;;  %3043 = vmatpush.msra.mxu2 %v3002_v45 }
 0x683   :  { %v8384_v42 = vadd.f32 %v6640_v2, %v2987_v25  ;;  %6462 = vmatmul.msk.f32.vlgmr.msra.gmra.mxu2 %vm243_vm0, %v213_v41 }
 0x685   :  { %3082 = vrot.lane.b32.xlu2 %v8376_v3, %s7081_s22  ;;  %3070 = vrot.lane.b32.xlu0 %v8376_v3, %s7079_s19 }
 0x686   :  { %3076 = vrot.lane.b32.xlu1 %v8376_v3, %s7080_s1 }
 0x68a   :  { %v2990_v44 = vpop.f32.mrf.mxu1 }
 0x68b   :  { %v8392_v6 = vadd.f32 %v6640_v2, %v2990_v44  ;;  %6463 = vmatmul.msk.f32.gmra.mxu2 %vm243_vm0, %v214_v35 }
 0x68d   :  { %3331 = vrot.lane.b32.xlu2 %v8384_v42, %s7081_s22  ;;  %3313 = vrot.lane.b32.xlu0 %v8384_v42, %s7079_s19 }
 0x68e   :  { %3322 = vrot.lane.b32.xlu1 %v8384_v42, %s7080_s1 }
 0x693   :  { %6464 = vmatmul.msk.f32.gmra.mxu2 %vm243_vm0, %v215_v19 }
 0x695   :  { %3333 = vrot.lane.b32.xlu2 %v8392_v6, %s7081_s22  ;;  %3324 = vrot.lane.b32.xlu0 %v8392_v6, %s7080_s1 }
 0x696   :  { %3315 = vrot.lane.b32.xlu1 %v8392_v6, %s7079_s19 }
 0x69e   :  { %3078 = vrot.lane.b32.xlu1 %v8400_v22, %s7080_s1 }
 0x6be   :  { %2787 = vadd.xlane.f32.xlu2 %v2786_v14 }
 0x6bf   :  { %2784 = vadd.xlane.f32.xlu0 %v2783_v28 }
 0x6d3   :  { %3072 = vrot.lane.b32.xlu0 %v8400_v22, %s7079_s19 }
 0x6d6   :  { %3084 = vrot.lane.b32.xlu2 %v8400_v22, %s7081_s22 }
 0x6d7   :  { %v3330_v46 = vpop.permute.xlu2 %3329 }
 0x6d8   :  { %v3350_v51 = vrot.slane %v3330_v46, 4 }
 0x6df   :  { %v3083_v1 = vpop.permute.xlu2 %3082 }
 0x6e0   :  { %v3100_v44 = vrot.slane %v3083_v1, 4 }
 0x6e7   :  { %v3332_v50 = vpop.permute.xlu2 %3331 }
 0x6ef   :  { %v3312_v20 = vpop.permute.xlu0 %3311 }
 0x6f0   :  { %v3321_v24 = vpop.permute.xlu1 %3320  ;;  %v3351_v36 = vsel %vm396_vm1, %v3350_v51, %v3312_v20  ;;  %v3352_v48 = vrot.slane %v3312_v20, 4  ;;  %v3452_v51 = vrot.slane %v8392_v6, 4 }
 0x6f1   :  { %v3338_v43 = vrot.slane %v3321_v24, 4  ;;  %v3341_v60 = vsel %vm396_vm1, %v3321_v24, %v3340_v32  ;;  %v3357_v62 = vperm.slane %v3351_v36, %v7329_v29 }
 0x6f2   :  { %v3349_v33 = vperm.slane %v3341_v60, %v7329_v29  ;;  %v3353_v26 = vsel %vm396_vm1, %v3330_v46, %v3352_v48  ;;  %v3396_v46 = vrot.slane %v8384_v42, 4 }
 0x6f3   :  { %v3339_v2 = vsel %vm396_vm1, %v3338_v43, %v8368_v38  ;;  %v3361_v23 = vperm.slane %v3353_v26, %v7329_v29  ;;  %v3362_v49 = vrot.slane %v3357_v62, 4  ;;  %v3334_v26 = vpop.permute.xlu2 %3333 }
 0x6f4   :  { %v3345_v57 = vperm.slane %v3339_v2, %v7329_v29  ;;  %v3376_v31 = vrot.slane %v3349_v33, 4 }
 0x6f5   :  { %v3374_v25 = vrot.slane %v3361_v23, 4 }
 0x6f6   :  { %v3364_v34 = vrot.slane %v3345_v57, 4  ;;  %v3377_v63 = vsel %vm396_vm1, %v3361_v23, %v3376_v31  ;;  %v3363_v53 = vsel %vm396_vm1, %v3362_v49, %v3345_v57 }
 0x6f7   :  { %v3071_v17 = vpop.permute.xlu0 %3070  ;;  %v3375_v39 = vsel %vm396_vm1, %v3374_v25, %v3349_v33  ;;  %v3385_v40 = vperm.slane %v3377_v63, %v7350_v59  ;;  %v3369_v27 = vperm.slane %v3363_v53, %v7350_v59 }
 0x6f8   :  { %v3365_v21 = vsel %vm396_vm1, %v3357_v62, %v3364_v34  ;;  %v3077_v38 = vpop.permute.xlu1 %3076  ;;  %v3101_v5 = vsel %vm396_vm1, %v3100_v44, %v3071_v17  ;;  %v3102_v52 = vrot.slane %v3071_v17, 4  ;;  %v3381_v56 = vperm.slane %v3375_v39, %v7350_v59 }
 0x6f9   :  { %v3373_v55 = vperm.slane %v3365_v21, %v7350_v59  ;;  %v3088_v11 = vrot.slane %v3077_v38, 4  ;;  %v3091_v9 = vsel %vm396_vm1, %v3077_v38, %v3090_v15  ;;  %v3107_v16 = vperm.slane %v3101_v5, %v7329_v29 }
 0x6fa   :  { %v3103_v58 = vsel %vm396_vm1, %v3083_v1, %v3102_v52  ;;  %v3099_v13 = vperm.slane %v3091_v9, %v7329_v29  ;;  %v3392_v18 = vrot.slane %v3385_v40, 4  ;;  %v3386_v1 = vrot.slane %v3369_v27, 4 }
 0x6fb   :  { %v3089_v37 = vsel %vm396_vm1, %v3088_v11, %v8376_v3  ;;  %v3111_v14 = vperm.slane %v3103_v58, %v7329_v29  ;;  %v3388_v28 = vrot.slane %v3373_v55, 4  ;;  %v3112_v10 = vrot.slane %v3107_v16, 4 }
 0x6fc   :  { %v3095_v30 = vperm.slane %v3089_v37, %v7329_v29  ;;  %v3126_v45 = vrot.slane %v3099_v13, 4  ;;  %v3390_v32 = vrot.slane %v3381_v56, 4  ;;  %v3406_v3 = vrot.slane %v3332_v50, 4 }
 0x6fd   :  { %v3124_v41 = vrot.slane %v3111_v14, 4  ;;  %v8486_v36 = vsel %vm396_vm1, 0.0, %v3388_v28  ;;  %v8489_v48 = vsel %vm396_vm1, 0.0, %v3392_v18  ;;  %v3506_v57 = vsel %vm396_vm1, %v3388_v28, %v3369_v27 }
 0x6fe   :  { %v3114_v35 = vrot.slane %v3095_v30, 4  ;;  %v3113_v20 = vsel %vm396_vm1, %v3112_v10, %v3095_v30  ;;  %v3127_v33 = vsel %vm396_vm1, %v3111_v14, %v3126_v45  ;;  %v3517_v17 = vsel %vm396_vm1, %v3392_v18, %v3381_v56 }
 0x6ff   :  { %v3314_v19 = vpop.permute.xlu0 %3313  ;;  %v3125_v43 = vsel %vm396_vm1, %v3124_v41, %v3099_v13  ;;  %v8497_v31 = vperm.slane %v3113_v20, %v7350_v59  ;;  %v3135_v21 = vperm.slane %v3127_v33, %v7350_v59  ;;  %v3462_v38 = vrot.slane %v3334_v26, 4 }
 0x700   :  { %v3323_v24 = vpop.permute.xlu1 %3322  ;;  %v3115_v62 = vsel %vm396_vm1, %v3107_v16, %v3114_v35  ;;  %v3408_v23 = vrot.slane %v3314_v19, 4  ;;  %v8503_v44 = vperm.slane %v3125_v43, %v7350_v59  ;;  %v3407_v63 = vsel %vm396_vm1, %v3406_v3, %v3314_v19 }
 0x701   :  { %v3394_v60 = vrot.slane %v3323_v24, 4  ;;  %v3397_v2 = vsel %vm396_vm1, %v3323_v24, %v3396_v46  ;;  %v3123_v53 = vperm.slane %v3115_v62, %v7350_v59  ;;  %v3522_v5 = vrot.slane %v8489_v48, 4 }
 0x702   :  { %v3405_v25 = vperm.slane %v3397_v2, %v7329_v29  ;;  %v3409_v15 = vsel %vm396_vm1, %v3332_v50, %v3408_v23  ;;  %v8516_v39 = vperm.slane %v3506_v57, %v7329_v29  ;;  %v3511_v40 = vrot.slane %v8486_v36, 4 }
 0x703   :  { %v3395_v49 = vsel %vm396_vm1, %v3394_v60, %v8384_v42  ;;  %v8512_v42 = vsel %vm396_vm1, 0.0, %v3386_v1  ;;  %v3413_v50 = vperm.slane %v3407_v63, %v7329_v29  ;;  %v3417_v11 = vperm.slane %v3409_v15, %v7329_v29 }
 0x704   :  { %v3401_v34 = vperm.slane %v3395_v49, %v7329_v29  ;;  %v3432_v55 = vrot.slane %v3405_v25, 4  ;;  %v3136_v58 = vrot.slane %v8497_v31, 4  ;;  %v3140_v16 = vrot.slane %v8503_v44, 4 }
 0x705   :  { %v8524_v56 = vsel %vm396_vm1, 0.0, %v3390_v32  ;;  %v8527_v37 = vperm.slane %v3517_v17, %v7329_v29  ;;  %v3138_v13 = vrot.slane %v3123_v53, 4  ;;  %v8529_v14 = vrot.slane %v3135_v21, 4 }
 0x706   :  { %v3420_v52 = vrot.slane %v3401_v34, 4  ;;  %v3418_v28 = vrot.slane %v3413_v50, 4  ;;  %v3430_v10 = vrot.slane %v3417_v11, 4  ;;  %v3433_v45 = vsel %vm396_vm1, %v3417_v11, %v3432_v55 }
 0x707   :  { %v3325_v9 = vpop.permute.xlu0 %3324  ;;  %v3441_v46 = vperm.slane %v3433_v45, %v7350_v59  ;;  %v3141_v43 = vsel %vm396_vm1, 0.0, %v3140_v16  ;;  %v3200_v15 = vsel %vm396_vm1, %v3138_v13, %v8497_v31 }
 0x708   :  { %v3316_v27 = vpop.permute.xlu1 %3315  ;;  %v3421_v18 = vsel %vm396_vm1, %v3413_v50, %v3420_v52  ;;  %v3450_v41 = vrot.slane %v3325_v9, 4  ;;  %v3419_v35 = vsel %vm396_vm1, %v3418_v28, %v3401_v34  ;;  %v3431_v3 = vsel %vm396_vm1, %v3430_v10, %v3405_v25 }
 0x709   :  { %v3429_v30 = vperm.slane %v3421_v18, %v7350_v59  ;;  %v3463_v19 = vsel %vm396_vm1, %v3462_v38, %v3316_v27  ;;  %v3464_v1 = vrot.slane %v3316_v27, 4  ;;  %v3425_v32 = vperm.slane %v3419_v35, %v7350_v59 }
 0x70a   :  { %v3469_v24 = vperm.slane %v3463_v19, %v7329_v29  ;;  %v3437_v60 = vperm.slane %v3431_v3, %v7350_v59  ;;  %v3448_v62 = vrot.slane %v3441_v46, 4  ;;  %v3451_v57 = vsel %vm396_vm1, %v3450_v41, %v8392_v6 }
 0x70b   :  { %v3444_v20 = vrot.slane %v3429_v30, 4  ;;  %v3465_v33 = vsel %vm396_vm1, %v3334_v26, %v3464_v1  ;;  %v3453_v49 = vsel %vm396_vm1, %v3325_v9, %v3452_v51  ;;  %v3139_v25 = vsel %vm396_vm1, 0.0, %v3138_v13 }
 0x70c   :  { %v3473_v23 = vperm.slane %v3465_v33, %v7329_v29  ;;  %v3143_v34 = vsel %vm396_vm1, 0.0, %v8529_v14  ;;  %v3449_v63 = vsel %vm396_vm1, 0.0, %v3448_v62  ;;  %v3442_v17 = vrot.slane %v3425_v32, 4 }
 0x70d   :  { %v3445_v2 = vsel %vm396_vm1, 0.0, %v3444_v20  ;;  %v3560_v26 = vsel %vm396_vm1, %v3444_v20, %v3425_v32  ;;  %v3446_v53 = vrot.slane %v3437_v60, 4  ;;  %v3474_v21 = vrot.slane %v3469_v24, 4 }
 0x70e   :  { %v3565_v38 = vrot.slane %v3445_v2, 4  ;;  %v3486_v52 = vrot.slane %v3473_v23, 4  ;;  %v3457_v6 = vperm.slane %v3451_v57, %v7329_v29  ;;  %v3461_v51 = vperm.slane %v3453_v49, %v7329_v29 }
 0x70f   :  { %v3216_v55 = vrot.slane %v3143_v34, 4  ;;  %v8560_v50 = vperm.slane %v3560_v26, %v7329_v29  ;;  %v3571_v11 = vsel %vm396_vm1, %v3448_v62, %v3437_v60  ;;  %v3576_v9 = vrot.slane %v3449_v63, 4 }
 0x710   :  { %v3475_v16 = vsel %vm396_vm1, %v3474_v21, %v3457_v6  ;;  %v3476_v27 = vrot.slane %v3457_v6, 4  ;;  %v3487_v31 = vsel %vm396_vm1, %v3486_v52, %v3461_v51  ;;  %v3488_v13 = vrot.slane %v3461_v51, 4 }
 0x711   :  { %v3443_v28 = vsel %vm396_vm1, 0.0, %v3442_v17  ;;  %v3481_v18 = vperm.slane %v3475_v16, %v7350_v59  ;;  %v3493_v30 = vperm.slane %v3487_v31, %v7350_v59  ;;  %v3447_v10 = vsel %vm396_vm1, 0.0, %v3446_v53 }
 0x712   :  { %v3477_v45 = vsel %vm396_vm1, %v3469_v24, %v3476_v27  ;;  %v3489_v41 = vsel %vm396_vm1, %v3473_v23, %v3488_v13  ;;  %v3566_v35 = vsel %vm396_vm1, %v3565_v38, %v3443_v28  ;;  %v3575_v46 = vperm.slane %v3571_v11, %v7329_v29 }
 0x713   :  { %v3137_v19 = vsel %vm396_vm1, 0.0, %v3136_v58  ;;  %v3485_v1 = vperm.slane %v3477_v45, %v7350_v59  ;;  %v3497_v32 = vperm.slane %v3489_v41, %v7350_v59  ;;  %v3502_v3 = vrot.slane %v3493_v30, 4 }
 0x714   :  { %v8577_v20 = vperm.slane %v3200_v15, %v7329_v29  ;;  %v3205_v60 = vrot.slane %v3139_v25, 4  ;;  %v8580_v62 = vsel %vm396_vm1, %v3216_v55, %v3141_v43  ;;  %v3577_v24 = vsel %vm396_vm1, %v3576_v9, %v3447_v10 }
 0x715   :  { %v3498_v33 = vrot.slane %v3481_v18, 4  ;;  %v3500_v2 = vrot.slane %v3485_v1, 4  ;;  %v3504_v23 = vrot.slane %v3497_v32, 4  ;;  %v3570_v57 = vperm.slane %v3566_v35, %v7329_v29 }
 0x716   :  { %v3503_v58 = vsel %vm396_vm1, 0.0, %v3502_v3  ;;  %v3581_v49 = vperm.slane %v3577_v24, %v7329_v29  ;;  %v3584_v34 = vrot.slane %v8560_v50, 4  ;;  %v3596_v63 = vrot.slane %v3575_v46, 4 }
 0x717   :  { %v3501_v26 = vsel %vm396_vm1, 0.0, %v3500_v2  ;;  %v3505_v25 = vsel %vm396_vm1, 0.0, %v3504_v23  ;;  %v3614_v43 = vsel %vm396_vm1, %v3500_v2, %v3481_v18  ;;  %v3625_v15 = vsel %vm396_vm1, %v3504_v23, %v3493_v30 }
 0x718   :  { %v3619_v17 = vrot.slane %v3501_v26, 4  ;;  %v3629_v53 = vperm.slane %v3625_v15, %v7329_v29  ;;  %v3630_v21 = vrot.slane %v3505_v25, 4  ;;  %v3618_v38 = vperm.slane %v3614_v43, %v7329_v29 }
 0x719   :  { %v3499_v52 = vsel %vm396_vm1, 0.0, %v3498_v33  ;;  %v3582_v6 = vrot.slane %v3570_v57, 4  ;;  %v3594_v51 = vrot.slane %v3581_v49, 4  ;;  %v3512_v55 = vsel %vm396_vm1, %v3511_v40, %v8512_v42 }
 0x71a   :  { %v3631_v11 = vsel %vm396_vm1, %v3630_v21, %v3503_v58  ;;  %v3650_v9 = vrot.slane %v3629_v53, 4  ;;  %v3620_v16 = vsel %vm396_vm1, %v3619_v17, %v3499_v52  ;;  %v3638_v27 = vrot.slane %v3618_v38, 4 }
 0x71b   :  { %v3206_v31 = vsel %vm396_vm1, %v3205_v60, %v3137_v19  ;;  %v3635_v13 = vperm.slane %v3631_v11, %v7329_v29  ;;  %v3624_v28 = vperm.slane %v3620_v16, %v7329_v29  ;;  %v3597_v18 = vsel %vm396_vm1, %v3581_v49, %v3596_v63 }
 0x71c   :  { %v3585_v30 = vsel %vm396_vm1, %v3570_v57, %v3584_v34  ;;  %v3595_v36 = vsel %vm396_vm1, %v3594_v51, %v3575_v46  ;;  %v3516_v42 = vperm.slane %v3512_v55, %v7329_v29  ;;  %v3523_v40 = vsel %vm396_vm1, %v3522_v5, %v8524_v56 }
 0x71d   :  { %v3648_v10 = vrot.slane %v3635_v13, 4  ;;  %v3639_v45 = vsel %vm396_vm1, %v3624_v28, %v3638_v27  ;;  %v3651_v41 = vsel %vm396_vm1, %v3635_v13, %v3650_v9  ;;  %v3636_v35 = vrot.slane %v3624_v28, 4 }
 0x71e   :  { %v8614_v19 = vperm.slane %v3639_v45, %v7350_v59  ;;  %v8617_v1 = vperm.slane %v3651_v41, %v7350_v59  ;;  %v8620_v46 = vperm.slane %v3597_v18, %v7350_v59  ;;  %v3583_v48 = vsel %vm396_vm1, %v3582_v6, %v8560_v50 }
 0x71f   :  { %v3637_v5 = vsel %vm396_vm1, %v3636_v35, %v3618_v38  ;;  %v3649_v56 = vsel %vm396_vm1, %v3648_v10, %v3629_v53  ;;  %v3527_v32 = vperm.slane %v3523_v40, %v7329_v29  ;;  %v3530_v3 = vrot.slane %v8516_v39, 4 }
 0x720   :  { %v3664_v60 = vrot.slane %v8617_v1, 4  ;;  %v3643_v24 = vperm.slane %v3637_v5, %v7350_v59  ;;  %v3655_v33 = vperm.slane %v3649_v56, %v7350_v59  ;;  %v3601_v2 = vperm.slane %v3595_v36, %v7350_v59 }
 0x721   :  { %v3210_v23 = vperm.slane %v3206_v31, %v7329_v29  ;;  %v8634_v50 = vperm.slane %v3585_v30, %v7350_v59  ;;  %v3542_v57 = vrot.slane %v8527_v37, 4  ;;  %v3528_v58 = vrot.slane %v3516_v42, 4 }
 0x722   :  { %v3665_v49 = vsel %vm396_vm1, %v3664_v60, %v8614_v19  ;;  %v3660_v34 = vrot.slane %v3655_v33, 4  ;;  %v3610_v63 = vrot.slane %v8620_v46, 4  ;;  %v3540_v26 = vrot.slane %v3527_v32, 4 }
 0x723   :  { %v3211_v25 = vsel %vm396_vm1, %v8529_v14, %v8503_v44  ;;  %6478 = vmatpush.xpose.msk.msra.mxu0 %vm1084_vm2, %v3665_v49  ;;  %v3589_v43 = vperm.slane %v3583_v48, %v7350_v59  ;;  %v3531_v15 = vsel %vm396_vm1, %v3516_v42, %v3530_v3  ;;  %v3543_v17 = vsel %vm396_vm1, %v3527_v32, %v3542_v57 }
 0x724   :  { %v3661_v53 = vsel %vm396_vm1, %v3660_v34, %v3643_v24  ;;  %v3606_v21 = vrot.slane %v3601_v2, 4  ;;  %v8649_v38 = vperm.slane %v3543_v17, %v7350_v59  ;;  %v3541_v52 = vsel %vm396_vm1, %v3540_v26, %v8527_v37 }
 0x725   :  { %6468 = vmatpush.xpose.msk.msra.mxu3 %vm1084_vm2, %v3661_v53  ;;  %v3529_v44 = vsel %vm396_vm1, %v3528_v58, %v8516_v39  ;;  %v3547_v14 = vperm.slane %v3541_v52, %v7350_v59  ;;  %v3221_v6 = vperm.slane %v8580_v62, %v7329_v29  ;;  %v3222_v51 = vrot.slane %v3210_v23, 4  ;;  %v3079_v53 = vpop.permute.xlu1 %3078 }
 0x726   :  { %v3224_v55 = vrot.slane %v8577_v20, 4  ;;  %v3611_v11 = vsel %vm396_vm1, %v3610_v63, %v8634_v50  ;;  %v8663_v9 = vperm.slane %v3531_v15, %v7350_v59  ;;  %v3556_v37 = vrot.slane %v8649_v38, 4 }
 0x727   :  { %6479 = vmatpush.xpose.msk.msra.mxu0 %vm1084_vm2, %v3611_v11  ;;  %v3215_v39 = vperm.slane %v3211_v25, %v7329_v29  ;;  %v3234_v16 = vrot.slane %v3221_v6, 4  ;;  %v3607_v27 = vsel %vm396_vm1, %v3606_v21, %v3589_v43  ;;  %v3535_v62 = vperm.slane %v3529_v44, %v7350_v59 }
 0x728   :  { %v3552_v31 = vrot.slane %v3547_v14, 4  ;;  %v3223_v13 = vsel %vm396_vm1, %v3222_v51, %v8577_v20  ;;  %v3662_v28 = vrot.slane %v3643_v24, 4  ;;  %v3557_v30 = vsel %vm396_vm1, %v3556_v37, %v8663_v9 }
 0x729   :  { %6469 = vmatpush.xpose.msk.msra.mxu3 %vm1084_vm2, %v3607_v27  ;;  %v3235_v18 = vsel %vm396_vm1, %v3234_v16, %v3215_v39  ;;  %v3225_v42 = vsel %vm396_vm1, %v3210_v23, %v3224_v55  ;;  %v8682_v40 = vperm.slane %v3223_v13, %v7350_v59  ;;  %v3236_v10 = vrot.slane %v3215_v39, 4 }
 0x72a   :  { %v8677_v36 = vperm.slane %v3235_v18, %v7350_v59  ;;  %v3233_v20 = vperm.slane %v3225_v42, %v7350_v59  ;;  %v3553_v45 = vsel %vm396_vm1, %v3552_v31, %v3535_v62  ;;  %v3663_v35 = vsel %vm396_vm1, %v3655_v33, %v3662_v28 }
 0x72b   :  { %6480 = vmatpush.xpose.msk.msra.mxu0 %vm1084_vm2, %v3557_v30  ;;  %v3608_v48 = vrot.slane %v3589_v43, 4  ;;  %v3237_v5 = vsel %vm396_vm1, %v3221_v6, %v3236_v10  ;;  %v3554_v63 = vrot.slane %v3535_v62, 4  ;;  %v3666_v26 = vrot.slane %v8614_v19, 4 }
 0x72c   :  { %v3246_v41 = vrot.slane %v8677_v36, 4  ;;  %v3252_v56 = vrot.slane %v3233_v20, 4  ;;  %v3245_v3 = vperm.slane %v3237_v5, %v7350_v59  ;;  %v3612_v19 = vrot.slane %v8634_v50, 4 }
 0x72d   :  { %6470 = vmatpush.xpose.msk.msra.mxu3 %vm1084_vm2, %v3553_v45  ;;  %v3609_v49 = vsel %vm396_vm1, %v3601_v2, %v3608_v48  ;;  %v3144_v52 = vrot.slane %v3079_v53, 4  ;;  %v3146_v6 = vrot.slane %v8400_v22, 4 }
 0x72e   :  { %v3247_v60 = vsel %vm396_vm1, %v3246_v41, %v8682_v40  ;;  %v8698_v33 = vsel %vm396_vm1, %v3245_v3, %v3252_v56  ;;  %v3250_v58 = vrot.slane %v3245_v3, 4  ;;  %v3613_v44 = vsel %vm396_vm1, %v8620_v46, %v3612_v19 }
 0x72f   :  { %v3147_v55 = vsel %vm396_vm1, %v3079_v53, %v3146_v6  ;;  %v8764_v6 = vpop.f32.mrf.mxu2 }
 0x730   :  { %6471 = vmatmul.msk.f32.vlgmr.msra.gmra.mxu3 %vm1084_vm2, %v3247_v60  ;;  %v8710_v43 = vsel %vm396_vm1, %v3250_v58, %v3233_v20 }
 0x731   :  { %6473 = vmatpush.xpose.msk.msrb.mxu3 %vm1084_vm2, %v3663_v35  ;;  %v2788_v32 = vpop.xlane.xlu2 %2787 }
 0x732   :  { %v2799_v24 = vmul.f32 %v8261_v47, %v2788_v32  ;;  %v2785_v23 = vpop.xlane.xlu0 %2784 }
 0x733   :  { %v2798_v57 = vmul.f32 %v8261_v47, %v2785_v23 }
 0x734   :  { %v8702_v34 = vsub.f32 %v8415_v7, %v2799_v24  ;;  %v3555_v7 = vsel %vm396_vm1, %v3547_v14, %v3554_v63  ;;  %v3558_v14 = vrot.slane %v8663_v9, 4  ;;  %v3155_v9 = vperm.slane %v3147_v55, %v7329_v29 }
 0x735   :  { %6474 = vmatpush.xpose.msk.msrb.mxu3 %vm1084_vm2, %v3609_v49  ;;  %v8707_v25 = vsub.f32 %v8420_v12, %v2798_v57  ;;  %v3667_v12 = vsel %vm396_vm1, %v8617_v1, %v3666_v26  ;;  %v3145_v1 = vsel %vm396_vm1, %v3144_v52, %v8400_v22 }
 0x736   :  { %v2807_v15 = vmul.f32 %v8702_v34, %v8702_v34  ;;  %v3559_v51 = vsel %vm396_vm1, %v8649_v38, %v3558_v14  ;;  %v3151_v11 = vperm.slane %v3145_v1, %v7329_v29  ;;  %v3182_v31 = vrot.slane %v3155_v9, 4 }
 0x737   :  { %v2806_v2 = vmul.f32 %v8707_v25, %v8707_v25 }
 0x738   :  { %v2817_v17 = vsel %vm243_vm0, %v2807_v15, 0.0  ;;  %v3170_v27 = vrot.slane %v3151_v11, 4 }
 0x739   :  { %6475 = vmatpush.xpose.msk.msrb.mxu3 %vm1084_vm2, %v3555_v7  ;;  %2818 = vadd.xlane.f32.xlu1 %v2817_v17  ;;  %v2814_v21 = vsel %vm243_vm0, %v2806_v2, 0.0  ;;  %v3085_v50 = vpop.permute.xlu2 %3084 }
 0x73a   :  { %2815 = vadd.xlane.f32.xlu0 %v2814_v21  ;;  %v3156_v46 = vrot.slane %v3085_v50, 4 }
 0x73d   :  { %6483 = vmatpush.xpose.msk.msra.mxu3 %vm1084_vm2, %v3667_v12 }
 0x741   :  { %6484 = vmatpush.xpose.msk.msra.mxu3 %vm1084_vm2, %v3613_v44 }
 0x745   :  { %6485 = vmatpush.xpose.msk.msra.mxu3 %vm1084_vm2, %v3559_v51  ;;  %v3073_v37 = vpop.permute.xlu0 %3072 }
 0x746   :  { %v3157_v39 = vsel %vm396_vm1, %v3156_v46, %v3073_v37  ;;  %v3158_v16 = vrot.slane %v3073_v37, 4  ;;  %v3248_v37 = vrot.slane %v8682_v40, 4 }
 0x747   :  { %v3163_v22 = vperm.slane %v3157_v39, %v7329_v29 }
 0x748   :  { %v3159_v62 = vsel %vm396_vm1, %v3085_v50, %v3158_v16 }
 0x749   :  { %v3167_v38 = vperm.slane %v3159_v62, %v7329_v29  ;;  %v3168_v13 = vrot.slane %v3163_v22, 4  ;;  %v3171_v28 = vsel %vm396_vm1, %v3163_v22, %v3170_v27  ;;  %v3048_v27 = vpop.f32.mrf.mxu2  ;;  %v3249_v62 = vsel %vm396_vm1, %v8677_v36, %v3248_v37 }
 0x74a   :  { %v3179_v18 = vperm.slane %v3171_v28, %v7350_v59 }
 0x74b   :  { %v3169_v30 = vsel %vm396_vm1, %v3168_v13, %v3151_v11  ;;  %v3180_v42 = vrot.slane %v3167_v38, 4  ;;  %v3183_v20 = vsel %vm396_vm1, %v3167_v38, %v3182_v31  ;;  %v8780_v38 = vld [vmem:[#allocation10] ss:$0 sm:$0xff] }
 0x74c   :  { %v3175_v10 = vperm.slane %v3169_v30, %v7350_v59  ;;  %v3191_v45 = vperm.slane %v3183_v20, %v7350_v59  ;;  %v3194_v41 = vrot.slane %v3179_v18, 4  ;;  %v8784_v28 = vadd.f32 %v8780_v38, %v3048_v27 }
 0x74d   :  { %v3181_v35 = vsel %vm396_vm1, %v3180_v42, %v3155_v9 }
 0x74e   :  { %v3187_v48 = vperm.slane %v3181_v35, %v7350_v59  ;;  %v3192_v5 = vrot.slane %v3175_v10, 4  ;;  %v3195_v56 = vsel %vm396_vm1, 0.0, %v3194_v41  ;;  %v3198_v32 = vrot.slane %v3191_v45, 4 }
 0x74f   :  { %v3259_v3 = vrot.slane %v3195_v56, 4  ;;  %v3254_v15 = vsel %vm396_vm1, %v3194_v41, %v3175_v10 }
 0x750   :  { %v3193_v60 = vsel %vm396_vm1, 0.0, %v3192_v5  ;;  %v3196_v24 = vrot.slane %v3187_v48, 4  ;;  %v3199_v23 = vsel %vm396_vm1, 0.0, %v3198_v32  ;;  %v3265_v49 = vsel %vm396_vm1, %v3198_v32, %v3187_v48 }
 0x751   :  { %v3270_v57 = vrot.slane %v3199_v23, 4  ;;  %v3260_v58 = vsel %vm396_vm1, %v3259_v3, %v3193_v60  ;;  %v3269_v2 = vperm.slane %v3265_v49, %v7329_v29  ;;  %v3258_v12 = vperm.slane %v3254_v15, %v7329_v29  ;;  %v3051_v40 = vpop.f32.mrf.mxu2 }
 0x752   :  { %v3197_v63 = vsel %vm396_vm1, 0.0, %v3196_v24  ;;  %v3264_v26 = vperm.slane %v3260_v58, %v7329_v29  ;;  %v8788_v18 = vadd.f32 %v8780_v38, %v3051_v40 }
 0x753   :  { %v3271_v7 = vsel %vm396_vm1, %v3270_v57, %v3197_v63  ;;  %v3290_v21 = vrot.slane %v3269_v2, 4  ;;  %v3278_v51 = vrot.slane %v3258_v12, 4 }
 0x754   :  { %v3275_v17 = vperm.slane %v3271_v7, %v7329_v29  ;;  %v3276_v53 = vrot.slane %v3264_v26, 4  ;;  %v6616_v30 = vpack.i.bf16 %v8784_v28, %v8788_v18 }
 0x755   :  { %v3279_v9 = vsel %vm396_vm1, %v3264_v26, %v3278_v51 }
 0x756   :  { %v3288_v19 = vrot.slane %v3275_v17, 4  ;;  %v3277_v52 = vsel %vm396_vm1, %v3276_v53, %v3258_v12  ;;  %v3291_v55 = vsel %vm396_vm1, %v3275_v17, %v3290_v21  ;;  %v3287_v39 = vperm.slane %v3279_v9, %v7350_v59  ;;  %6617 = vrot.lane.b32.xlu0 %v6616_v30, %s7081_s22  ;;  %6612 = vrot.lane.b32.xlu1 %v6616_v30, %s7080_s1  ;;  %v6806_v21 = vld [vmem:[%s9903_s5 + $0x10] sm:$0xff] }
 0x757   :  { %v3283_v1 = vperm.slane %v3277_v52, %v7350_v59  ;;  %v3299_v46 = vperm.slane %v3291_v55, %v7350_v59  ;;  %6607 = vrot.lane.b32.xlu2 %v6616_v30, %s7079_s19  ;;  %v3756_v30 = vrot.slane %v8784_v28, 4 }
 0x758   :  { %v3289_v44 = vsel %vm396_vm1, %v3288_v19, %v3269_v2  ;;  %v3306_v36 = vrot.slane %v3287_v39, 4 }
 0x759   :  { %v3295_v14 = vperm.slane %v3289_v44, %v7350_v59  ;;  %v3304_v16 = vrot.slane %v3299_v46, 4  ;;  %v3302_v31 = vrot.slane %v3283_v1, 4 }
 0x75a   :  { %v3307_v42 = vsel %vm396_vm1, %v3299_v46, %v3306_v36  ;;  %v227_v46 = vld [vmem:[%s9908_s27 + $0x20] sm:$0xff] }
 0x75b   :  { %v3300_v50 = vrot.slane %v3295_v14, 4  ;;  %v8775_v22 = vsel %vm396_vm1, %v3304_v16, %v3287_v39  ;;  %v3303_v13 = vsel %vm396_vm1, %v3295_v14, %v3302_v31 }
 0x75d   :  { %v3301_v11 = vsel %vm396_vm1, %v3300_v50, %v3283_v1  ;;  %v226_v50 = vld [vmem:[%s9908_s27 + $0x18] sm:$0xff] }
 0x75e   :  { %6472 = vmatmul.msk.f32.gmra.mxu3 %vm1084_vm2, %v3301_v11  ;;  %v211_v11 = vld [vmem:[%s9907_s18 + $0x20] sm:$0xff] }
 0x75f   :  { %v2939_v37 = vadd.f32 %v227_v46, %v211_v11 }
 0x766   :  { %6476 = vmatmul.msk.f32.vlgmr.msrb.gmra.mxu3 %vm1084_vm2, %v3249_v62 }
 0x76e   :  { %6477 = vmatmul.msk.f32.gmra.mxu3 %vm1084_vm2, %v3303_v13 }
 0x776   :  { %6486 = vmatmul.msk.f32.vlgmr.msra.gmra.mxu3 %vm1084_vm2, %v8698_v33 }
 0x77e   :  { %6487 = vmatmul.msk.f32.gmra.mxu3 %vm1084_vm2, %v3307_v42  ;;  %v3812_v42 = vrot.slane %v8788_v18, 4 }
 0x7ac   :  { %v2819_v20 = vpop.xlane.xlu1 %2818 }
 0x7ad   :  { %v2823_v10 = vmul.f32 %v2819_v20, %v8261_v47  ;;  %v2816_v45 = vpop.xlane.xlu0 %2815 }
 0x7ae   :  { %v2822_v41 = vmul.f32 %v2816_v45, %v8261_v47 }
 0x7af   :  { %v2827_v35 = vadd.f32 1e-05, %v2823_v10 }
 0x7b0   :  { %v2826_v48 = vadd.f32 1e-05, %v2822_v41 }
 0x7b1   :  { %6714 = vrsqrt.f32 %v2827_v35  ;;  %vm2864_vm15 = vweird.f32 %v2827_v35 }
 0x7b2   :  { %6716 = vrsqrt.f32 %v2826_v48  ;;  %vm2854_vm4 = vweird.f32 %v2826_v48 }
 0x7b3   :  { %v8801_v5 = vpop.f32.mrf.mxu3 }
 0x7b4   :  { %v4181_v56 = vsel %vm4180_vm12, %v8801_v5, -inf }
 0x7b5   :  { %4182 = vmax.xlane.f32.xlu0 %v4181_v56 }
 0x7b7   :  { %v6715_v33 = vpop.eup %6714 }
 0x7b8   :  { %v6717_v32 = vpop.eup %6716  ;;  %v2859_v3 = vmul.f32 %v6715_v33, %v2827_v35  ;;  %vm2865_vm13 = vweird.f32 %v6715_v33  ;;  %v212_v35 = vld [vmem:[%s9907_s18 + $0x28] sm:$0xff] }
 0x7b9   :  { %v2849_v60 = vmul.f32 %v6717_v32, %v2826_v48  ;;  %vm2855_vm14 = vweird.f32 %v6717_v32  ;;  %vm2866_vm3 = vmor %vm2864_vm15, %vm2865_vm13  ;;  %v228_v48 = vld [vmem:[%s9908_s27 + $0x28] sm:$0xff] }
 0x7ba   :  { %v2860_v24 = vmul.f32 %v6715_v33, %v2859_v3  ;;  %vm2856_vm5 = vmor %vm2854_vm4, %vm2855_vm14  ;;  %v2940_v56 = vadd.f32 %v228_v48, %v212_v35  ;;  %vm7089_vm4 = vmmov 1  }
 0x7bb   :  { %v2850_v23 = vmul.f32 %v6717_v32, %v2849_v60 }
 0x7bc   :  { %v2861_v57 = vmul.f32 0.5, %v2860_v24  ;;  %v6608_v24 = vpop.permute.xlu2 %6607 }
 0x7bd   :  { %v2851_v58 = vmul.f32 0.5, %v2850_v23 }
 0x7be   :  { %v2862_v49 = vsub.f32 1.5, %v2861_v57 }
 0x7bf   :  { %v2852_v63 = vsub.f32 1.5, %v2851_v58  ;;  %v6610_v58 = vunpack.i.h.bf16 %v6608_v24 }
 0x7c0   :  { %v2863_v26 = vmul.f32 %v6715_v33, %v2862_v49  ;;  %v6609_v49 = vunpack.i.l.bf16 %v6608_v24 }
 0x7c1   :  { %v2853_v15 = vmul.f32 %v6717_v32, %v2852_v63 }
 0x7c2   :  { %v2867_v2 = vsel %vm2866_vm3, %v6715_v33, %v2863_v26 }
 0x7c3   :  { %v2857_v7 = vsel %vm2856_vm5, %v6717_v32, %v2853_v15  ;;  %v2871_v53 = vmul.f32 %v2867_v2, %v8702_v34  ;;  %v6807_v34 = vld [vmem:[%s9903_s5 + $0x18] sm:$0xff] }
 0x7c4   :  { %v2870_v17 = vmul.f32 %v2857_v7, %v8707_v25  ;;  %v3768_v7 = vrot.slane %v6610_v58, 4 }
 0x7c5   :  { %v2876_v44 = vmul.f32 %v8305_v4, %v2871_v53 }
 0x7c6   :  { %v2875_v12 = vmul.f32 %v8305_v4, %v2870_v17  ;;  %v3824_v17 = vrot.slane %v6609_v49, 4 }
 0x7c7   :  { %v8818_v14 = vadd.f32 %v8307_v54, %v2876_v44 }
 0x7c8   :  { %v8809_v19 = vadd.f32 %v8307_v54, %v2875_v12  ;;  %v210_v54 = vld [vmem:[%s9907_s18 + $0x18] sm:$0xff]  ;;  %v6613_v9 = vpop.permute.xlu1 %6612  ;;  %v6618_v13 = vpop.permute.xlu0 %6617 }
 0x7c9   :  { %v2885_v25 = vadd.f32 %v6807_v34, %v8818_v14  ;;  %v2938_v51 = vadd.f32 %v226_v50, %v210_v54  ;;  %v6615_v27 = vunpack.i.h.bf16 %v6613_v9  ;;  %v6620_v45 = vunpack.i.h.bf16 %v6618_v13 }
 0x7ca   :  { %v2884_v52 = vadd.f32 %v6806_v21, %v8809_v19  ;;  %v6619_v41 = vunpack.i.l.bf16 %v6618_v13 }
 0x7cb   :  { %6459 = vmatmul.msk.f32.gmra.mxu1 %vm243_vm0, %v2938_v51  ;;  %v3754_v62 = vrot.slane %v6615_v27, 4  ;;  %v3757_v33 = vsel %vm396_vm1, %v6615_v27, %v3756_v30 }
 0x7cc   :  { %6454 = vmatmul.msk.f32.gmra.mxu0 %vm243_vm0, %v2884_v52  ;;  %v3822_v60 = vrot.slane %v6619_v41, 4  ;;  %v3765_v23 = vperm.slane %v3757_v33, %v7329_v29 }
 0x7cd   :  { %v3755_v20 = vsel %vm396_vm1, %v3754_v62, %v8784_v28 }
 0x7ce   :  { %v3761_v32 = vperm.slane %v3755_v20, %v7329_v29  ;;  %v3823_v12 = vsel %vm396_vm1, %v3822_v60, %v6609_v49  ;;  %v3792_v21 = vrot.slane %v3765_v23, 4 }
 0x7cf   :  { %v3829_v44 = vperm.slane %v3823_v12, %v7329_v29 }
 0x7d0   :  { %v3780_v15 = vrot.slane %v3761_v32, 4 }
 0x7d1   :  { %v3834_v46 = vrot.slane %v3829_v44, 4 }
 0x7d3   :  { %6460 = vmatmul.msk.f32.gmra.mxu1 %vm243_vm0, %v2939_v37 }
 0x7d4   :  { %6455 = vmatmul.msk.f32.gmra.mxu0 %vm243_vm0, %v2885_v25  ;;  %v3769_v25 = vsel %vm396_vm1, %v6620_v45, %v3768_v7 }
 0x7d5   :  { %v3777_v54 = vperm.slane %v3769_v25, %v7329_v29 }
 0x7d7   :  { %v3793_v27 = vsel %vm396_vm1, %v3777_v54, %v3792_v21 }
 0x7db   :  { %6461 = vmatmul.msk.f32.gmra.mxu1 %vm243_vm0, %v2940_v56 }
 0x7dc   :  { %6481 = vmatmul.msk.f32.vlgmr.msra.gmra.mxu0 %vm1084_vm2, %v8710_v43 }
 0x7e1   :  { %v8827_v1 = vpop.f32.mrf.mxu3 }
 0x7e2   :  { %v4184_v4 = vsel %vm4180_vm12, %v8827_v1, -inf }
 0x7e3   :  { %4185 = vmax.xlane.f32.xlu1 %v4184_v4  ;;  %v3825_v4 = vsel %vm396_vm1, %v6619_v41, %v3824_v17 }
 0x7e4   :  { %6482 = vmatmul.msk.f32.gmra.mxu0 %vm1084_vm2, %v8775_v22  ;;  %v6614_v22 = vunpack.i.l.bf16 %v6613_v9 }
 0x7e6   :  { %v3810_v31 = vrot.slane %v6614_v22, 4  ;;  %v3813_v28 = vsel %vm396_vm1, %v6614_v22, %v3812_v42 }
 0x7e7   :  { %v3821_v63 = vperm.slane %v3813_v28, %v7329_v29 }
 0x7e8   :  { %v3811_v10 = vsel %vm396_vm1, %v3810_v31, %v8788_v18  ;;  %v3766_v18 = vrot.slane %v6620_v45, 4  ;;  %v3801_v31 = vperm.slane %v3793_v27, %v7350_v59  ;;  %v8904_v45 = vadd.f32 %v8780_v38, %v8764_v6 }
 0x7e9   :  { %v8840_v43 = vpop.f32.mrf.mxu3  ;;  %v3817_v3 = vperm.slane %v3811_v10, %v7329_v29  ;;  %v3848_v34 = vrot.slane %v3821_v63, 4 }
 0x7ea   :  { %v4187_v55 = vsel %vm4180_vm12, %v8840_v43, -inf  ;;  %v3767_v53 = vsel %vm396_vm1, %v3766_v18, %v6610_v58  ;;  %v3808_v48 = vrot.slane %v3801_v31, 4 }
 0x7eb   :  { %4188 = vmax.xlane.f32.xlu2 %v4187_v55  ;;  %v3836_v2 = vrot.slane %v3817_v3, 4  ;;  %v3773_v52 = vperm.slane %v3767_v53, %v7329_v29  ;;  %v3833_v55 = vperm.slane %v3825_v4, %v7329_v29  ;;  %v3835_v30 = vsel %vm396_vm1, %v3834_v46, %v3817_v3 }
 0x7ec   :  { %v3841_v42 = vperm.slane %v3835_v30, %v7350_v59  ;;  %v3809_v3 = vsel %vm396_vm1, 0.0, %v3808_v48 }
 0x7ed   :  { %v3778_v50 = vrot.slane %v3773_v52, 4  ;;  %v3781_v51 = vsel %vm396_vm1, %v3773_v52, %v3780_v15  ;;  %v3837_v9 = vsel %vm396_vm1, %v3829_v44, %v3836_v2  ;;  %v3846_v20 = vrot.slane %v3833_v55, 4 }
 0x7ee   :  { %v3789_v11 = vperm.slane %v3781_v51, %v7350_v59  ;;  %v3845_v22 = vperm.slane %v3837_v9, %v7350_v59  ;;  %v3849_v10 = vsel %vm396_vm1, %v3833_v55, %v3848_v34  ;;  %v3936_v49 = vrot.slane %v3809_v3, 4 }
 0x7ef   :  { %v3779_v37 = vsel %vm396_vm1, %v3778_v50, %v3761_v32  ;;  %v3847_v33 = vsel %vm396_vm1, %v3846_v20, %v3821_v63  ;;  %v3857_v56 = vperm.slane %v3849_v10, %v7350_v59  ;;  %v3858_v32 = vrot.slane %v3841_v42, 4 }
 0x7f0   :  { %v3785_v62 = vperm.slane %v3779_v37, %v7350_v59  ;;  %v3804_v13 = vrot.slane %v3789_v11, 4  ;;  %v3853_v18 = vperm.slane %v3847_v33, %v7350_v59  ;;  %v3860_v60 = vrot.slane %v3845_v22, 4 }
 0x7f1   :  { %v8850_v39 = vpop.f32.mrf.mxu3  ;;  %v3864_v6 = vrot.slane %v3857_v56, 4  ;;  %v3859_v7 = vsel %vm396_vm1, 0.0, %v3858_v32 }
 0x7f2   :  { %v4190_v16 = vsel %vm4180_vm12, %v8850_v39, -inf  ;;  %v3805_v35 = vsel %vm396_vm1, 0.0, %v3804_v13  ;;  %v3802_v24 = vrot.slane %v3785_v62, 4  ;;  %v3861_v63 = vsel %vm396_vm1, 0.0, %v3860_v60 }
 0x7f3   :  { %4191 = vmax.xlane.f32.xlu0 %v4190_v16  ;;  %v3790_v16 = vrot.slane %v3777_v54, 4  ;;  %v3865_v15 = vsel %vm396_vm1, 0.0, %v3864_v6  ;;  %v3979_v2 = vrot.slane %v3861_v63, 4  ;;  %v3974_v17 = vsel %vm396_vm1, %v3860_v60, %v3841_v42 }
 0x7f4   :  { %v3990_v12 = vrot.slane %v3865_v15, 4  ;;  %v3978_v21 = vperm.slane %v3974_v17, %v7329_v29  ;;  %v3985_v52 = vsel %vm396_vm1, %v3864_v6, %v3853_v18  ;;  %v3803_v25 = vsel %vm396_vm1, 0.0, %v3802_v24 }
 0x7f5   :  { %v3980_v44 = vsel %vm396_vm1, %v3979_v2, %v3859_v7  ;;  %v3989_v34 = vperm.slane %v3985_v52, %v7329_v29  ;;  %v3920_v4 = vsel %vm396_vm1, %v3804_v13, %v3785_v62 }
 0x7f6   :  { %v3984_v54 = vperm.slane %v3980_v44, %v7329_v29  ;;  %v3924_v51 = vperm.slane %v3920_v4, %v7329_v29  ;;  %v3998_v62 = vrot.slane %v3978_v21, 4 }
 0x7f7   :  { %v4010_v30 = vrot.slane %v3989_v34, 4 }
 0x7f8   :  { %v3999_v10 = vsel %vm396_vm1, %v3984_v54, %v3998_v62 }
 0x7f9   :  { %v8855_v40 = vpop.f32.mrf.mxu3  ;;  %v4007_v56 = vperm.slane %v3999_v10, %v7350_v59 }
 0x7fa   :  { %v4199_v36 = vsel %vm4180_vm12, %v8855_v40, -inf }
 0x7fb   :  { %4200 = vmax.xlane.f32.xlu0 %v4199_v36  ;;  %v3791_v36 = vsel %vm396_vm1, %v3790_v16, %v3765_v23  ;;  %v3925_v23 = vrot.slane %v3805_v35, 4  ;;  %v3996_v16 = vrot.slane %v3984_v54, 4 }
 0x7fc   :  { %v3797_v41 = vperm.slane %v3791_v36, %v7350_v59  ;;  %v3944_v36 = vrot.slane %v3924_v51, 4 }
 0x7fd   :  { %v3926_v55 = vsel %vm396_vm1, %v3925_v23, %v3803_v25  ;;  %v3997_v42 = vsel %vm396_vm1, %v3996_v16, %v3978_v21  ;;  %v4026_v21 = vrot.slane %v4007_v56, 4 }
 0x7fe   :  { %v3806_v28 = vrot.slane %v3797_v41, 4  ;;  %v3930_v46 = vperm.slane %v3926_v55, %v7329_v29  ;;  %v3931_v9 = vsel %vm396_vm1, %v3808_v48, %v3797_v41  ;;  %v4003_v41 = vperm.slane %v3997_v42, %v7350_v59 }
 0x7ff   :  { %v3935_v27 = vperm.slane %v3931_v9, %v7329_v29 }
 0x800   :  { %v3807_v58 = vsel %vm396_vm1, 0.0, %v3806_v28  ;;  %v3942_v13 = vrot.slane %v3930_v46, 4  ;;  %v4022_v24 = vrot.slane %v4003_v41, 4  ;;  %v3945_v6 = vsel %vm396_vm1, %v3930_v46, %v3944_v36 }
 0x801   :  { %v8877_v57 = vpop.f32.mrf.mxu3  ;;  %v3937_v37 = vsel %vm396_vm1, %v3936_v49, %v3807_v58  ;;  %v3956_v35 = vrot.slane %v3935_v27, 4  ;;  %v3953_v63 = vperm.slane %v3945_v6, %v7350_v59  ;;  %v218_v6 = vld [vmem:[%s9909_s0 + $0x28] sm:$0xff] }
 0x802   :  { %v4202_v26 = vsel %vm4180_vm12, %v8877_v57, -inf  ;;  %v3941_v22 = vperm.slane %v3937_v37, %v7329_v29  ;;  %v3943_v33 = vsel %vm396_vm1, %v3942_v13, %v3924_v51 }
 0x803   :  { %4203 = vmax.xlane.f32.xlu1 %v4202_v26  ;;  %v3862_v26 = vrot.slane %v3853_v18, 4  ;;  %v3949_v28 = vperm.slane %v3943_v33, %v7350_v59  ;;  %v3972_v52 = vrot.slane %v3953_v63, 4 }
 0x804   :  { %v3954_v20 = vrot.slane %v3941_v22, 4 }
 0x805   :  { %v3863_v53 = vsel %vm396_vm1, 0.0, %v3862_v26  ;;  %v3968_v49 = vrot.slane %v3949_v28, 4  ;;  %v3957_v26 = vsel %vm396_vm1, %v3941_v22, %v3956_v35 }
 0x806   :  { %v3991_v50 = vsel %vm396_vm1, %v3990_v12, %v3863_v53  ;;  %v3955_v3 = vsel %vm396_vm1, %v3954_v20, %v3935_v27  ;;  %v3965_v17 = vperm.slane %v3957_v26, %v7350_v59 }
 0x807   :  { %v3995_v11 = vperm.slane %v3991_v50, %v7329_v29  ;;  %v3961_v60 = vperm.slane %v3955_v3, %v7350_v59 }
 0x808   :  { %v3970_v25 = vrot.slane %v3965_v17, 4  ;;  %v3973_v54 = vsel %vm396_vm1, %v3965_v17, %v3972_v52 }
 0x809   :  { %v4008_v31 = vrot.slane %v3995_v11, 4  ;;  %v4011_v18 = vsel %vm396_vm1, %v3995_v11, %v4010_v30  ;;  %v3966_v15 = vrot.slane %v3961_v60, 4  ;;  %v3969_v12 = vsel %vm396_vm1, %v3961_v60, %v3968_v49  ;;  %v217_v60 = vld [vmem:[%s9909_s0 + $0x20] sm:$0xff] }
 0x80a   :  { %v4019_v23 = vperm.slane %v4011_v18, %v7350_v59  ;;  %v3971_v50 = vsel %vm396_vm1, %v3970_v25, %v3953_v63  ;;  %v3700_v25 = vrot.slane %v8904_v45, 4 }
 0x80b   :  { %v4009_v48 = vsel %vm396_vm1, %v4008_v31, %v3989_v34  ;;  %v3967_v44 = vsel %vm396_vm1, %v3966_v15, %v3949_v28  ;;  %v216_v28 = vld [vmem:[%s9909_s0 + $0x18] sm:$0xff] }
 0x80c   :  { %v4015_v32 = vperm.slane %v4009_v48, %v7350_v59  ;;  %v4024_v7 = vrot.slane %v4019_v23, 4  ;;  %v4027_v4 = vsel %vm396_vm1, %v4019_v23, %v4026_v21  ;;  %6465 = vmatmul.msk.f32.gmra.mxu2 %vm243_vm0, %v216_v28 }
 0x80d   :  { %4375 = vmatpush.msrb.mxu3 %v4027_v4 }
 0x80e   :  { %v4020_v58 = vrot.slane %v4015_v32, 4  ;;  %v4023_v2 = vsel %vm396_vm1, %v4015_v32, %v4022_v24  ;;  %v4025_v34 = vsel %vm396_vm1, %v4024_v7, %v4007_v56  ;;  %v6808_v56 = vld [vmem:[#allocation8] ss:$0 sm:$0xff]  ;;  %v6809_v24 = vld [vmem:[#allocation7] ss:$0 sm:$0xff] }
 0x80f   :  { %3680 = vrot.lane.b32.xlu0 %v8904_v45, %s7080_s1  ;;  %4317 = vmatpush.msrb.mxu1 %v4023_v2 }
 0x810   :  { %v4021_v53 = vsel %vm396_vm1, %v4020_v58, %v4003_v41  ;;  %4346 = vmatpush.msrb.mxu2 %v4025_v34  ;;  %4376 = vmatpush.msrb.mxu3 %v3973_v54 }
 0x811   :  { %4288 = vmatpush.msrb.mxu0 %v4021_v53  ;;  %4318 = vmatpush.msrb.mxu1 %v3969_v12 }
 0x812   :  { %4347 = vmatpush.msrb.mxu2 %v3971_v50 }
 0x813   :  { %4289 = vmatpush.msrb.mxu0 %v3967_v44 }
 0x814   :  { %6466 = vmatmul.msk.f32.gmra.mxu2 %vm243_vm0, %v217_v60 }
 0x81c   :  { %3689 = vrot.lane.b32.xlu1 %v8904_v45, %s7081_s22  ;;  %6467 = vmatmul.msk.f32.gmra.mxu2 %vm243_vm0, %v218_v6 }
 0x828   :  { %v4183_v9 = vpop.xlane.xlu0 %4182 }
 0x829   :  { %v4205_v31 = vsub.f32 %v8801_v5, %v4183_v9 }
 0x82b   :  { %v4213_v30 = vmul.f32 1.442695, %v4205_v31 }
 0x849   :  { %v2929_v51 = vpop.f32.mrf.mxu0 }
 0x84a   :  { %v9004_v23 = vadd.f32 %v6809_v24, %v2929_v51 }
 0x851   :  { %v2932_v55 = vpop.f32.mrf.mxu0 }
 0x852   :  { %v9012_v58 = vadd.f32 %v6809_v24, %v2932_v55 }
 0x856   :  { %v4186_v49 = vpop.xlane.xlu1 %4185 }
 0x857   :  { %v4206_v44 = vsub.f32 %v8827_v1, %v4186_v49 }
 0x859   :  { %v4136_v11 = vpop.f32.mrf.mxu0  ;;  %v4215_v1 = vmul.f32 1.442695, %v4206_v44 }
 0x85a   :  { %v4193_v46 = vsel %vm4180_vm12, %v4136_v11, -inf }
 0x85b   :  { %4194 = vmax.xlane.f32.xlu2 %v4193_v46 }
 0x85e   :  { %v4189_v63 = vpop.xlane.xlu2 %4188 }
 0x85f   :  { %v4207_v54 = vsub.f32 %v8840_v43, %v4189_v63 }
 0x861   :  { %v8963_v37 = vpop.f32.mrf.mxu0  ;;  %v4217_v9 = vmul.f32 1.442695, %v4207_v54 }
 0x862   :  { %v4196_v16 = vsel %vm4180_vm12, %v8963_v37, -inf }
 0x863   :  { %4197 = vmax.xlane.f32.xlu2 %v4196_v16 }
 0x866   :  { %v4192_v27 = vpop.xlane.xlu0 %4191 }
 0x867   :  { %v4208_v42 = vsub.f32 %v8850_v39, %v4192_v27 }
 0x869   :  { %v4219_v10 = vmul.f32 1.442695, %v4208_v42 }
 0x86e   :  { %v4201_v22 = vpop.xlane.xlu0 %4200 }
 0x86f   :  { %v4211_v62 = vsub.f32 %v8855_v40, %v4201_v22  ;;  %v2993_v40 = vpop.f32.mrf.mxu1 }
 0x870   :  { %v8996_v18 = vadd.f32 %v6808_v56, %v2993_v40 }
 0x871   :  { %v4225_v13 = vmul.f32 1.442695, %v4211_v62 }
 0x873   :  { %6718 = vpow2.f32 %v4225_v13 }
 0x874   :  { %6720 = vpow2.f32 %v4213_v30 }
 0x875   :  { %6722 = vpow2.f32 %v4219_v10 }
 0x876   :  { %v4204_v26 = vpop.xlane.xlu1 %4203 }
 0x877   :  { %v2996_v48 = vpop.f32.mrf.mxu1  ;;  %v4212_v7 = vsub.f32 %v8877_v57, %v4204_v26 }
 0x878   :  { %v8992_v3 = vadd.f32 %v6808_v56, %v2996_v48 }
 0x879   :  { %v8969_v36 = vpop.eup %6718  ;;  %v4227_v12 = vmul.f32 1.442695, %v4212_v7 }
 0x87a   :  { %v4247_v20 = vsel %vm4180_vm12, %v8969_v36, 0.0  ;;  %v8976_v35 = vpop.eup %6720 }
 0x87b   :  { %3671 = vrot.lane.b32.xlu2 %v8904_v45, %s7079_s19  ;;  %4248 = vadd.xlane.f32.xlu0 %v4247_v20  ;;  %v4229_v5 = vsel %vm4180_vm12, %v8976_v35, 0.0  ;;  %v8980_v41 = vpop.eup %6722 }
 0x87c   :  { %v4238_v39 = vsel %vm4180_vm12, %v8980_v41, 0.0 }
 0x87f   :  { %v2999_v33 = vpop.f32.mrf.mxu1 }
 0x880   :  { %v8984_v32 = vadd.f32 %v6808_v56, %v2999_v33 }
 0x881   :  { %v3681_v53 = vpop.permute.xlu0 %3680 }
 0x882   :  { %v3698_v21 = vrot.slane %v3681_v53, 4  ;;  %v3701_v51 = vsel %vm396_vm1, %v3681_v53, %v3700_v25 }
 0x883   :  { %4230 = vadd.xlane.f32.xlu0 %v4229_v5 }
 0x884   :  { %v3699_v57 = vsel %vm396_vm1, %v3698_v21, %v8904_v45 }
 0x885   :  { %v3705_v46 = vperm.slane %v3699_v57, %v7329_v29 }
 0x887   :  { %v3724_v62 = vrot.slane %v3705_v46, 4 }
 0x88b   :  { %4239 = vadd.xlane.f32.xlu0 %v4238_v39 }
 0x88e   :  { %v3690_v55 = vpop.permute.xlu1 %3689 }
 0x88f   :  { %v3710_v16 = vrot.slane %v3690_v55, 4 }
 0x89f   :  { %4785 = vrot.lane.b32.xlu0 %v8984_v32, %s7081_s22 }
 0x8a7   :  { %4774 = vrot.lane.b32.xlu0 %v8992_v3, %s7080_s1 }
 0x8af   :  { %4772 = vrot.lane.b32.xlu0 %v8996_v18, %s7080_s1 }
 0x8b7   :  { %4528 = vrot.lane.b32.xlu0 %v9004_v23, %s7080_s1 }
 0x8bf   :  { %4530 = vrot.lane.b32.xlu0 %v9012_v58, %s7080_s1 }
 0x8ce   :  { %v4195_v15 = vpop.xlane.xlu2 %4194 }
 0x8cf   :  { %v4209_v2 = vsub.f32 %v4136_v11, %v4195_v15 }
 0x8d1   :  { %v4221_v17 = vmul.f32 1.442695, %v4209_v2 }
 0x8d3   :  { %6724 = vpow2.f32 %v4221_v17 }
 0x8d4   :  { %6726 = vpow2.f32 %v4227_v12 }
 0x8d6   :  { %v4198_v52 = vpop.xlane.xlu2 %4197 }
 0x8d7   :  { %v4210_v34 = vsub.f32 %v8963_v37, %v4198_v52  ;;  %v3709_v37 = vperm.slane %v3701_v51, %v7329_v29 }
 0x8d9   :  { %v9020_v4 = vpop.eup %6724  ;;  %v4223_v50 = vmul.f32 1.442695, %v4210_v34  ;;  %v3736_v30 = vrot.slane %v3709_v37, 4 }
 0x8da   :  { %v4241_v11 = vsel %vm4180_vm12, %v9020_v4, 0.0  ;;  %v9030_v43 = vpop.eup %6726 }
 0x8db   :  { %6728 = vpow2.f32 %v4223_v50  ;;  %4242 = vadd.xlane.f32.xlu2 %v4241_v11  ;;  %v4250_v20 = vsel %vm4180_vm12, %v9030_v43, 0.0 }
 0x8dc   :  { %6730 = vpow2.f32 %v4215_v1 }
 0x8dd   :  { %6732 = vpow2.f32 %v4217_v9 }
 0x8de   :  { %v3672_v27 = vpop.permute.xlu2 %3671 }
 0x8df   :  { %v3711_v45 = vsel %vm396_vm1, %v3710_v16, %v3672_v27  ;;  %v3712_v22 = vrot.slane %v3672_v27, 4 }
 0x8e0   :  { %v3717_v31 = vperm.slane %v3711_v45, %v7329_v29 }
 0x8e1   :  { %v9034_v13 = vpop.eup %6728  ;;  %v3713_v42 = vsel %vm396_vm1, %v3690_v55, %v3712_v22 }
 0x8e2   :  { %v3721_v10 = vperm.slane %v3713_v42, %v7329_v29  ;;  %v3722_v5 = vrot.slane %v3717_v31, 4  ;;  %v3725_v40 = vsel %vm396_vm1, %v3717_v31, %v3724_v62  ;;  %v4244_v39 = vsel %vm4180_vm12, %v9034_v13, 0.0  ;;  %v9046_v60 = vpop.eup %6730 }
 0x8e3   :  { %v3733_v48 = vperm.slane %v3725_v40, %v7350_v59  ;;  %4251 = vadd.xlane.f32.xlu2 %v4250_v20  ;;  %4245 = vadd.xlane.f32.xlu1 %v4244_v39  ;;  %v9051_v26 = vpop.eup %6732  ;;  %v4232_v21 = vsel %vm4180_vm12, %v9046_v60, 0.0 }
 0x8e4   :  { %v3723_v33 = vsel %vm396_vm1, %v3722_v5, %v3705_v46  ;;  %v3734_v56 = vrot.slane %v3721_v10, 4  ;;  %v3737_v28 = vsel %vm396_vm1, %v3721_v10, %v3736_v30  ;;  %v4235_v57 = vsel %vm4180_vm12, %v9051_v26, 0.0 }
 0x8e5   :  { %v3729_v24 = vperm.slane %v3723_v33, %v7350_v59  ;;  %v3745_v6 = vperm.slane %v3737_v28, %v7350_v59  ;;  %v3748_v49 = vrot.slane %v3733_v48, 4 }
 0x8e6   :  { %v3735_v63 = vsel %vm396_vm1, %v3734_v56, %v3709_v37 }
 0x8e7   :  { %v3741_v15 = vperm.slane %v3735_v63, %v7350_v59  ;;  %v3746_v2 = vrot.slane %v3729_v24, 4  ;;  %v3749_v7 = vsel %vm396_vm1, 0.0, %v3748_v49  ;;  %v3752_v17 = vrot.slane %v3745_v6, 4 }
 0x8e8   :  { %v3866_v53 = vsel %vm396_vm1, %v3748_v49, %v3729_v24  ;;  %v3871_v12 = vrot.slane %v3749_v7, 4 }
 0x8e9   :  { %v3747_v52 = vsel %vm396_vm1, 0.0, %v3746_v2  ;;  %v3750_v44 = vrot.slane %v3741_v15, 4  ;;  %v3753_v34 = vsel %vm396_vm1, 0.0, %v3752_v17  ;;  %v3870_v25 = vperm.slane %v3866_v53, %v7329_v29 }
 0x8ea   :  { %v3882_v54 = vrot.slane %v3753_v34, 4  ;;  %v3872_v50 = vsel %vm396_vm1, %v3871_v12, %v3747_v52  ;;  %v3877_v51 = vsel %vm396_vm1, %v3752_v17, %v3741_v15 }
 0x8eb   :  { %4233 = vadd.xlane.f32.xlu2 %v4232_v21  ;;  %4236 = vadd.xlane.f32.xlu1 %v4235_v57  ;;  %v3751_v55 = vsel %vm396_vm1, 0.0, %v3750_v44  ;;  %v3876_v11 = vperm.slane %v3872_v50, %v7329_v29  ;;  %v3881_v1 = vperm.slane %v3877_v51, %v7329_v29  ;;  %v3890_v46 = vrot.slane %v3870_v25, 4 }
 0x8ec   :  { %v3883_v9 = vsel %vm396_vm1, %v3882_v54, %v3751_v55 }
 0x8ed   :  { %v3887_v37 = vperm.slane %v3883_v9, %v7329_v29  ;;  %v3891_v16 = vsel %vm396_vm1, %v3876_v11, %v3890_v46  ;;  %v3902_v27 = vrot.slane %v3881_v1, 4  ;;  %v3888_v45 = vrot.slane %v3876_v11, 4  ;;  %v3063_v9 = vld [vmem:[%s9873_s17] sm:$0xff] }
 0x8ee   :  { %v4249_v22 = vpop.xlane.xlu0 %4248  ;;  %v3899_v62 = vperm.slane %v3891_v16, %v7350_v59 }
 0x8ef   :  { %6734 = vrcp.f32 %v4249_v22  ;;  %v3903_v31 = vsel %vm396_vm1, %v3887_v37, %v3902_v27  ;;  %v3889_v30 = vsel %vm396_vm1, %v3888_v45, %v3870_v25  ;;  %v3900_v42 = vrot.slane %v3887_v37, 4 }
 0x8f0   :  { %v3911_v20 = vperm.slane %v3903_v31, %v7350_v59  ;;  %v3918_v10 = vrot.slane %v3899_v62, 4  ;;  %v3895_v5 = vperm.slane %v3889_v30, %v7350_v59  ;;  %v4904_v30 = vrot.slane %v8984_v32, 4 }
 0x8f1   :  { %v3901_v40 = vsel %vm396_vm1, %v3900_v42, %v3881_v1 }
 0x8f2   :  { %v3919_v39 = vsel %vm396_vm1, %v3911_v20, %v3918_v10  ;;  %v3907_v48 = vperm.slane %v3901_v40, %v7350_v59  ;;  %v3914_v33 = vrot.slane %v3895_v5, 4  ;;  %v3916_v56 = vrot.slane %v3911_v20, 4 }
 0x8f3   :  { %4377 = vmatpush.msrb.mxu3 %v3919_v39 }
 0x8f4   :  { %v3915_v28 = vsel %vm396_vm1, %v3907_v48, %v3914_v33  ;;  %v3917_v24 = vsel %vm396_vm1, %v3916_v56, %v3899_v62  ;;  %v3912_v6 = vrot.slane %v3907_v48, 4 }
 0x8f5   :  { %v6735_v49 = vpop.eup %6734  ;;  %4319 = vmatpush.msrb.mxu1 %v3915_v28  ;;  %4348 = vmatpush.msrb.mxu2 %v3917_v24 }
 0x8f6   :  { %v4267_v63 = vmul.f32 %v6735_v49, %v8969_v36  ;;  %v4231_v15 = vpop.xlane.xlu0 %4230  ;;  %v3913_v2 = vsel %vm396_vm1, %v3912_v6, %v3895_v5  ;;  %v9106_v36 = vpop.f32.mrf.mxu2  ;;  %v3064_v5 = vld [vmem:[%s9873_s17 + $0x8] sm:$0xff] }
 0x8f7   :  { %6736 = vrcp.f32 %v4231_v15  ;;  %4290 = vmatpush.msrb.mxu0 %v3913_v2  ;;  %4435 = vmatpush.msra.mxu1 %v3064_v5 }
 0x8f8   :  { %6494 = vmatmul.msk.f32.vlgmr.msrb.gmra.mxu3 %vm4180_vm12, %v4267_v63 }
 0x8f9   :  { %4406 = vmatpush.msra.mxu0 %v3063_v9 }
 0x8fd   :  { %v6737_v7 = vpop.eup %6736 }
 0x8fe   :  { %v4261_v17 = vmul.f32 %v6737_v7, %v8976_v35  ;;  %v3057_v35 = vpop.f32.mrf.mxu2  ;;  %v4240_v46 = vpop.xlane.xlu0 %4239 }
 0x8ff   :  { %v9109_v12 = vadd.f32 %v8780_v38, %v3057_v35 }
 0x900   :  { %6488 = vmatmul.msk.f32.vlgmr.msrb.gmra.mxu0 %vm4180_vm12, %v4261_v17 }
 0x903   :  { %4776 = vrot.lane.b32.xlu2 %v8984_v32, %s7080_s1 }
 0x904   :  { %4767 = vrot.lane.b32.xlu1 %v8984_v32, %s7079_s19 }
 0x906   :  { %v3060_v53 = vpop.f32.mrf.mxu2 }
 0x907   :  { %v9112_v21 = vadd.f32 %v8780_v38, %v3060_v53 }
 0x909   :  { %v6626_v52 = vpack.i.bf16 %v9109_v12, %v9112_v21 }
 0x90b   :  { %4783 = vrot.lane.b32.xlu2 %v8992_v3, %s7081_s22  ;;  %6632 = vrot.lane.b32.xlu0 %v6626_v52, %s7081_s22 }
 0x90c   :  { %4765 = vrot.lane.b32.xlu1 %v8992_v3, %s7079_s19 }
 0x911   :  { %v4786_v27 = vpop.permute.xlu0 %4785 }
 0x913   :  { %4781 = vrot.lane.b32.xlu2 %v8996_v18, %s7081_s22 }
 0x914   :  { %4763 = vrot.lane.b32.xlu1 %v8996_v18, %s7079_s19 }
 0x919   :  { %v4775_v20 = vpop.permute.xlu0 %4774 }
 0x91a   :  { %v4846_v48 = vrot.slane %v4775_v20, 4 }
 0x91b   :  { %4534 = vrot.lane.b32.xlu2 %v9004_v23, %s7081_s22 }
 0x91c   :  { %4522 = vrot.lane.b32.xlu1 %v9004_v23, %s7079_s19  ;;  %v4847_v17 = vsel %vm396_vm1, %v4846_v48, %v8992_v3 }
 0x923   :  { %4536 = vrot.lane.b32.xlu2 %v9012_v58, %s7081_s22 }
 0x924   :  { %4524 = vrot.lane.b32.xlu1 %v9012_v58, %s7079_s19 }
 0x92b   :  { %6622 = vrot.lane.b32.xlu2 %v6626_v52, %s7079_s19 }
 0x92c   :  { %6627 = vrot.lane.b32.xlu1 %v6626_v52, %s7080_s1 }
 0x94e   :  { %v4243_v44 = vpop.xlane.xlu2 %4242 }
 0x94f   :  { %6738 = vrcp.f32 %v4243_v44 }
 0x955   :  { %v6739_v34 = vpop.eup %6738 }
 0x956   :  { %v4265_v25 = vmul.f32 %v6739_v34, %v9020_v4  ;;  %v4246_v54 = vpop.xlane.xlu1 %4245  ;;  %v4252_v57 = vpop.xlane.xlu2 %4251  ;;  %v3066_v4 = vld [vmem:[%s9873_s17 + $0x18] sm:$0xff] }
 0x957   :  { %6740 = vrcp.f32 %v4246_v54  ;;  %4493 = vmatpush.msra.mxu3 %v3066_v4 }
 0x958   :  { %6742 = vrcp.f32 %v4252_v57  ;;  %6492 = vmatmul.msk.f32.vlgmr.msrb.gmra.mxu2 %vm4180_vm12, %v4265_v25  ;;  %v4773_v57 = vpop.permute.xlu0 %4772 }
 0x95d   :  { %v6741_v38 = vpop.eup %6740 }
 0x95e   :  { %v6743_v50 = vpop.eup %6742  ;;  %v4237_v51 = vpop.xlane.xlu1 %4236  ;;  %v4266_v11 = vmul.f32 %v6741_v38, %v9034_v13 }
 0x95f   :  { %v4234_v55 = vpop.xlane.xlu2 %4233  ;;  %6744 = vrcp.f32 %v4237_v51  ;;  %v4268_v1 = vmul.f32 %v6743_v50, %v9030_v43 }
 0x960   :  { %6746 = vrcp.f32 %v4234_v55  ;;  %6493 = vmatmul.msk.f32.gmra.mxu2 %vm4180_vm12, %v4266_v11  ;;  %v4853_v55 = vperm.slane %v4847_v17, %v7329_v29 }
 0x961   :  { %6495 = vmatmul.msk.f32.gmra.mxu3 %vm4180_vm12, %v4268_v1  ;;  %6748 = vrcp.f32 %v4240_v46  ;;  %v4790_v1 = vrot.slane %v4773_v57, 4 }
 0x965   :  { %v6745_v13 = vpop.eup %6744 }
 0x966   :  { %v6747_v43 = vpop.eup %6746  ;;  %v4263_v37 = vmul.f32 %v6745_v13, %v9051_v26  ;;  %v4914_v26 = vrot.slane %v4786_v27, 4 }
 0x967   :  { %v4262_v16 = vmul.f32 %v6747_v43, %v9046_v60  ;;  %v4777_v45 = vpop.permute.xlu2 %4776  ;;  %v6749_v22 = vpop.eup %6748 }
 0x968   :  { %6490 = vmatmul.msk.f32.vlgmr.msrb.gmra.mxu1 %vm4180_vm12, %v4263_v37  ;;  %v4902_v62 = vrot.slane %v4777_v45, 4  ;;  %v4264_v31 = vmul.f32 %v6749_v22, %v8980_v41  ;;  %v4905_v60 = vsel %vm396_vm1, %v4777_v45, %v4904_v30  ;;  %v3065_v41 = vld [vmem:[%s9873_s17 + $0x10] sm:$0xff] }
 0x969   :  { %6489 = vmatmul.msk.f32.gmra.mxu0 %vm4180_vm12, %v4262_v16  ;;  %4464 = vmatpush.msra.mxu2 %v3065_v41  ;;  %v4913_v40 = vperm.slane %v4905_v60, %v7329_v29  ;;  %v4791_v41 = vsel %vm396_vm1, %v4790_v1, %v8996_v18 }
 0x96a   :  { %v4903_v42 = vsel %vm396_vm1, %v4902_v62, %v8984_v32  ;;  %v4848_v32 = vrot.slane %v8992_v3, 4  ;;  %v4792_v62 = vrot.slane %v8996_v18, 4 }
 0x96b   :  { %v4909_v10 = vperm.slane %v4903_v42, %v7329_v29  ;;  %v4940_v63 = vrot.slane %v4913_v40, 4 }
 0x96c   :  { %v4849_v35 = vsel %vm396_vm1, %v4775_v20, %v4848_v32 }
 0x96d   :  { %v4928_v28 = vrot.slane %v4909_v10, 4  ;;  %v4857_v11 = vperm.slane %v4849_v35, %v7329_v29 }
 0x96f   :  { %v4784_v6 = vpop.permute.xlu2 %4783  ;;  %v4884_v5 = vrot.slane %v4857_v11, 4 }
 0x970   :  { %6491 = vmatmul.msk.f32.gmra.mxu1 %vm4180_vm12, %v4264_v31  ;;  %v4858_v44 = vrot.slane %v4784_v6, 4 }
 0x976   :  { %v4768_v39 = vpop.permute.xlu1 %4767 }
 0x977   :  { %v4915_v33 = vsel %vm396_vm1, %v4914_v26, %v4768_v39  ;;  %v4916_v56 = vrot.slane %v4768_v39, 4 }
 0x978   :  { %v4921_v24 = vperm.slane %v4915_v33, %v7329_v29 }
 0x979   :  { %v4917_v49 = vsel %vm396_vm1, %v4786_v27, %v4916_v56 }
 0x97a   :  { %v4925_v15 = vperm.slane %v4917_v49, %v7329_v29  ;;  %v4926_v2 = vrot.slane %v4921_v24, 4  ;;  %v4929_v7 = vsel %vm396_vm1, %v4921_v24, %v4928_v28 }
 0x97b   :  { %v4937_v53 = vperm.slane %v4929_v7, %v7350_v59  ;;  %v4379_v52 = vpop.f32.mrf.mxu3 }
 0x97c   :  { %v4927_v34 = vsel %vm396_vm1, %v4926_v2, %v4909_v10  ;;  %v4938_v25 = vrot.slane %v4925_v15, 4  ;;  %v4941_v54 = vsel %vm396_vm1, %v4925_v15, %v4940_v63  ;;  %6502 = vmatmul.msk.f32.vlgmr.msra.gmra.mxu3 %vm1084_vm2, %v4379_v52  ;;  %v4872_v10 = vrot.slane %v4853_v55, 4 }
 0x97d   :  { %v4933_v38 = vperm.slane %v4927_v34, %v7350_v59  ;;  %v4949_v50 = vperm.slane %v4941_v54, %v7350_v59  ;;  %v4952_v51 = vrot.slane %v4937_v53, 4  ;;  %v4292_v3 = vpop.f32.mrf.mxu0  ;;  %v4797_v34 = vperm.slane %v4791_v41, %v7329_v29 }
 0x97e   :  { %v4939_v46 = vsel %vm396_vm1, %v4938_v25, %v4913_v40  ;;  %v4766_v4 = vpop.permute.xlu1 %4765  ;;  %6496 = vmatmul.msk.f32.vlgmr.msra.gmra.mxu0 %vm1084_vm2, %v4292_v3  ;;  %v4782_v40 = vpop.permute.xlu2 %4781 }
 0x97f   :  { %v4945_v9 = vperm.slane %v4939_v46, %v7350_v59  ;;  %v4950_v13 = vrot.slane %v4933_v38, 4  ;;  %v4953_v43 = vsel %vm396_vm1, 0.0, %v4952_v51  ;;  %v4956_v37 = vrot.slane %v4949_v50, 4 }
 0x980   :  { %v5066_v16 = vsel %vm396_vm1, %v4952_v51, %v4933_v38  ;;  %v5071_v27 = vrot.slane %v4953_v43, 4  ;;  %v4859_v45 = vsel %vm396_vm1, %v4858_v44, %v4766_v4  ;;  %v4860_v22 = vrot.slane %v4766_v4, 4 }
 0x981   :  { %v4951_v31 = vsel %vm396_vm1, 0.0, %v4950_v13  ;;  %v9175_v30 = vperm.slane %v5066_v16, %v7329_v29  ;;  %v4954_v42 = vrot.slane %v4945_v9, 4  ;;  %v4957_v26 = vsel %vm396_vm1, 0.0, %v4956_v37 }
 0x982   :  { %v5072_v20 = vsel %vm396_vm1, %v5071_v27, %v4951_v31  ;;  %v4861_v60 = vsel %vm396_vm1, %v4784_v6, %v4860_v22  ;;  %v4865_v39 = vperm.slane %v4859_v45, %v7329_v29  ;;  %v4802_v33 = vrot.slane %v4782_v40, 4  ;;  %v4529_v27 = vpop.permute.xlu0 %4528 }
 0x983   :  { %v5076_v32 = vperm.slane %v5072_v20, %v7329_v29  ;;  %v5090_v48 = vrot.slane %v9175_v30, 4  ;;  %v4869_v56 = vperm.slane %v4861_v60, %v7329_v29  ;;  %v5077_v28 = vsel %vm396_vm1, %v4956_v37, %v4945_v9 }
 0x984   :  { %v5082_v24 = vrot.slane %v4957_v26, 4  ;;  %v4870_v49 = vrot.slane %v4865_v39, 4  ;;  %v4873_v6 = vsel %vm396_vm1, %v4865_v39, %v4872_v10  ;;  %v4955_v63 = vsel %vm396_vm1, 0.0, %v4954_v42 }
 0x985   :  { %v4881_v18 = vperm.slane %v4873_v6, %v7350_v59  ;;  %v4882_v15 = vrot.slane %v4869_v56, 4  ;;  %v4885_v2 = vsel %vm396_vm1, %v4869_v56, %v4884_v5  ;;  %v5091_v52 = vsel %vm396_vm1, %v5076_v32, %v5090_v48 }
 0x986   :  { %v4764_v7 = vpop.permute.xlu1 %4763  ;;  %v4871_v17 = vsel %vm396_vm1, %v4870_v49, %v4853_v55  ;;  %v4893_v35 = vperm.slane %v4885_v2, %v7350_v59  ;;  %v4793_v44 = vsel %vm396_vm1, %v4773_v57, %v4792_v62  ;;  %v5081_v25 = vperm.slane %v5077_v28, %v7329_v29 }
 0x987   :  { %v4803_v53 = vsel %vm396_vm1, %v4802_v33, %v4764_v7  ;;  %v5083_v54 = vsel %vm396_vm1, %v5082_v24, %v4955_v63  ;;  %v4877_v38 = vperm.slane %v4871_v17, %v7350_v59  ;;  %v4883_v50 = vsel %vm396_vm1, %v4882_v15, %v4857_v11 }
 0x988   :  { %v4896_v51 = vrot.slane %v4881_v18, 4  ;;  %v4804_v3 = vrot.slane %v4764_v7, 4  ;;  %v4809_v55 = vperm.slane %v4803_v53, %v7329_v29  ;;  %v5099_v1 = vperm.slane %v5091_v52, %v7350_v59 }
 0x989   :  { %v4900_v46 = vrot.slane %v4893_v35, 4  ;;  %v5087_v4 = vperm.slane %v5083_v54, %v7329_v29  ;;  %v4801_v57 = vperm.slane %v4793_v44, %v7329_v29  ;;  %v4816_v9 = vrot.slane %v4797_v34, 4 }
 0x98a   :  { %v4889_v13 = vperm.slane %v4883_v50, %v7350_v59  ;;  %v4894_v43 = vrot.slane %v4877_v38, 4  ;;  %v4897_v37 = vsel %vm396_vm1, 0.0, %v4896_v51  ;;  %v4805_v16 = vsel %vm396_vm1, %v4782_v40, %v4804_v3  ;;  %v4535_v3 = vpop.permute.xlu2 %4534 }
 0x98b   :  { %v5102_v11 = vrot.slane %v5081_v25, 4  ;;  %v5012_v45 = vsel %vm396_vm1, %v4896_v51, %v4877_v38  ;;  %v4817_v22 = vsel %vm396_vm1, %v4809_v55, %v4816_v9  ;;  %v5118_v62 = vrot.slane %v5099_v1, 4 }
 0x98c   :  { %v5088_v31 = vrot.slane %v5076_v32, 4  ;;  %v4901_v42 = vsel %vm396_vm1, 0.0, %v4900_v46  ;;  %v4814_v26 = vrot.slane %v4809_v55, 4  ;;  %v5100_v60 = vrot.slane %v5087_v4, 4 }
 0x98d   :  { %v5103_v20 = vsel %vm396_vm1, %v5087_v4, %v5102_v11  ;;  %v4898_v10 = vrot.slane %v4889_v13, 4  ;;  %v5017_v5 = vrot.slane %v4897_v37, 4  ;;  %v4813_v41 = vperm.slane %v4805_v16, %v7329_v29 }
 0x98e   :  { %v5111_v40 = vperm.slane %v5103_v20, %v7350_v59  ;;  %v4828_v39 = vrot.slane %v4801_v57, 4  ;;  %v4540_v48 = vrot.slane %v4529_v27, 4  ;;  %v4895_v33 = vsel %vm396_vm1, 0.0, %v4894_v43  ;;  %v4523_v43 = vpop.permute.xlu1 %4522 }
 0x98f   :  { %v4825_v56 = vperm.slane %v4817_v22, %v7350_v59  ;;  %v9217_v32 = vperm.slane %v5012_v45, %v7329_v29  ;;  %v5028_v28 = vrot.slane %v4901_v42, 4  ;;  %v5089_v49 = vsel %vm396_vm1, %v5088_v31, %v9175_v30 }
 0x990   :  { %v5119_v24 = vsel %vm396_vm1, %v5111_v40, %v5118_v62  ;;  %v4815_v6 = vsel %vm396_vm1, %v4814_v26, %v4797_v34  ;;  %v5095_v63 = vperm.slane %v5089_v49, %v7350_v59  ;;  %v5101_v18 = vsel %vm396_vm1, %v5100_v60, %v5081_v25 }
 0x991   :  { %6519 = vmatpush.xpose.msk.msrb.mxu3 %vm1084_vm2, %v5119_v24  ;;  %v5116_v15 = vrot.slane %v5111_v40, 4  ;;  %v5018_v2 = vsel %vm396_vm1, %v5017_v5, %v4895_v33  ;;  %v4826_v7 = vrot.slane %v4813_v41, 4  ;;  %v5107_v17 = vperm.slane %v5101_v18, %v7350_v59 }
 0x992   :  { %v4899_v35 = vsel %vm396_vm1, 0.0, %v4898_v10  ;;  %v4829_v53 = vsel %vm396_vm1, %v4813_v41, %v4828_v39  ;;  %v4840_v52 = vrot.slane %v4825_v56, 4  ;;  %v5114_v30 = vrot.slane %v5095_v63, 4 }
 0x993   :  { %v5117_v44 = vsel %vm396_vm1, %v5116_v15, %v5099_v1  ;;  %v4821_v34 = vperm.slane %v4815_v6, %v7350_v59  ;;  %v5112_v54 = vrot.slane %v5107_v17, 4  ;;  %v5023_v25 = vsel %vm396_vm1, %v4900_v46, %v4889_v13 }
 0x994   :  { %6514 = vmatpush.xpose.msk.msrb.mxu2 %vm1084_vm2, %v5117_v44  ;;  %v5029_v38 = vsel %vm396_vm1, %v5028_v28, %v4899_v35  ;;  %v4542_v50 = vrot.slane %v9004_v23, 4  ;;  %v4541_v51 = vsel %vm396_vm1, %v4540_v48, %v9004_v23  ;;  %v5115_v55 = vsel %vm396_vm1, %v5107_v17, %v5114_v30  ;;  %v4531_v44 = vpop.permute.xlu0 %4530 }
 0x995   :  { %v5022_v4 = vperm.slane %v5018_v2, %v7329_v29  ;;  %v4827_v1 = vsel %vm396_vm1, %v4826_v7, %v4801_v57  ;;  %v4837_v9 = vperm.slane %v4829_v53, %v7350_v59  ;;  %6509 = vmatpush.xpose.msk.msrb.mxu1 %vm1084_vm2, %v5115_v55  ;;  %v5113_v46 = vsel %vm396_vm1, %v5112_v54, %v5095_v63 }
 0x996   :  { %v5027_v13 = vperm.slane %v5023_v25, %v7329_v29  ;;  %v4841_v37 = vsel %vm396_vm1, 0.0, %v4840_v52  ;;  %6504 = vmatpush.xpose.msk.msrb.mxu0 %vm1084_vm2, %v5113_v46  ;;  %v5033_v23 = vperm.slane %v5029_v38, %v7329_v29  ;;  %v5036_v16 = vrot.slane %v9217_v32, 4 }
 0x997   :  { %v4543_v11 = vsel %vm396_vm1, %v4529_v27, %v4542_v50  ;;  %v4552_v57 = vrot.slane %v4535_v3, 4  ;;  %v4838_v45 = vrot.slane %v4821_v34, 4  ;;  %v4547_v62 = vperm.slane %v4541_v51, %v7329_v29 }
 0x998   :  { %v5048_v22 = vrot.slane %v5027_v13, 4  ;;  %v4833_v31 = vperm.slane %v4827_v1, %v7350_v59  ;;  %v4554_v42 = vrot.slane %v4523_v43, 4  ;;  %v5037_v26 = vsel %vm396_vm1, %v5022_v4, %v5036_v16 }
 0x999   :  { %v4844_v20 = vrot.slane %v4837_v9, 4  ;;  %v4958_v60 = vsel %vm396_vm1, %v4840_v52, %v4821_v34  ;;  %v4963_v10 = vrot.slane %v4841_v37, 4  ;;  %v4553_v5 = vsel %vm396_vm1, %v4552_v57, %v4523_v43  ;;  %v4537_v57 = vpop.permute.xlu2 %4536 }
 0x99a   :  { %v5045_v41 = vperm.slane %v5037_v26, %v7350_v59  ;;  %v5049_v27 = vsel %vm396_vm1, %v5033_v23, %v5048_v22  ;;  %v5034_v40 = vrot.slane %v5022_v4, 4  ;;  %v5046_v39 = vrot.slane %v5033_v23, 4 }
 0x99b   :  { %v4839_v48 = vsel %vm396_vm1, 0.0, %v4838_v45  ;;  %v4551_v33 = vperm.slane %v4543_v11, %v7329_v29  ;;  %v4555_v56 = vsel %vm396_vm1, %v4535_v3, %v4554_v42  ;;  %v4559_v28 = vperm.slane %v4553_v5, %v7329_v29 }
 0x99c   :  { %v5057_v24 = vperm.slane %v5049_v27, %v7350_v59  ;;  %v4566_v49 = vrot.slane %v4547_v62, 4  ;;  %v4842_v6 = vrot.slane %v4833_v31, 4  ;;  %v4845_v63 = vsel %vm396_vm1, 0.0, %v4844_v20 }
 0x99d   :  { %v4962_v18 = vperm.slane %v4958_v60, %v7329_v29  ;;  %v4964_v15 = vsel %vm396_vm1, %v4963_v10, %v4839_v48  ;;  %v5064_v2 = vrot.slane %v5045_v41, 4  ;;  %v5035_v7 = vsel %vm396_vm1, %v5034_v40, %v9217_v32  ;;  %v4525_v10 = vpop.permute.xlu1 %4524 }
 0x99e   :  { %v5047_v17 = vsel %vm396_vm1, %v5046_v39, %v5027_v13  ;;  %v4563_v35 = vperm.slane %v4555_v56, %v7329_v29  ;;  %v5041_v53 = vperm.slane %v5035_v7, %v7350_v59  ;;  %v5062_v30 = vrot.slane %v5057_v24, 4 }
 0x99f   :  { %v5053_v52 = vperm.slane %v5047_v17, %v7350_v59  ;;  %v4974_v34 = vrot.slane %v4845_v63, 4  ;;  %v4564_v54 = vrot.slane %v4559_v28, 4  ;;  %v4567_v25 = vsel %vm396_vm1, %v4559_v28, %v4566_v49 }
 0x9a0   :  { %v5065_v38 = vsel %vm396_vm1, %v5057_v24, %v5064_v2  ;;  %v5060_v50 = vrot.slane %v5041_v53, 4  ;;  %v5063_v32 = vsel %vm396_vm1, %v5062_v30, %v5045_v41  ;;  %v4843_v3 = vsel %vm396_vm1, 0.0, %v4842_v6 }
 0x9a1   :  { %6520 = vmatpush.xpose.msk.msrb.mxu3 %vm1084_vm2, %v5065_v38  ;;  %v5058_v51 = vrot.slane %v5053_v52, 4  ;;  %v4578_v55 = vrot.slane %v4551_v33, 4  ;;  %6515 = vmatpush.xpose.msk.msrb.mxu2 %vm1084_vm2, %v5063_v32  ;;  %v4968_v4 = vperm.slane %v4964_v15, %v7329_v29  ;;  %v4969_v1 = vsel %vm396_vm1, %v4844_v20, %v4833_v31 }
 0x9a2   :  { %v4596_v9 = vrot.slane %v4531_v44, 4  ;;  %v4576_v43 = vrot.slane %v4563_v35, 4  ;;  %v5061_v46 = vsel %vm396_vm1, %v5053_v52, %v5060_v50  ;;  %v4575_v37 = vperm.slane %v4567_v25, %v7350_v59 }
 0x9a3   :  { %v5059_v13 = vsel %vm396_vm1, %v5058_v51, %v5041_v53  ;;  %6510 = vmatpush.xpose.msk.msrb.mxu1 %vm1084_vm2, %v5061_v46  ;;  %v4973_v23 = vperm.slane %v4969_v1, %v7329_v29  ;;  %v4975_v16 = vsel %vm396_vm1, %v4974_v34, %v4843_v3  ;;  %v4982_v11 = vrot.slane %v4962_v18, 4 }
 0x9a4   :  { %6505 = vmatpush.xpose.msk.msrb.mxu0 %vm1084_vm2, %v5059_v13  ;;  %v4565_v45 = vsel %vm396_vm1, %v4564_v54, %v4547_v62  ;;  %v4579_v22 = vsel %vm396_vm1, %v4563_v35, %v4578_v55  ;;  %v4979_v31 = vperm.slane %v4975_v16, %v7329_v29  ;;  %v4597_v20 = vsel %vm396_vm1, %v4596_v9, %v9012_v58 }
 0x9a5   :  { %v4983_v42 = vsel %vm396_vm1, %v4968_v4, %v4982_v11  ;;  %v4994_v26 = vrot.slane %v4973_v23, 4  ;;  %v4577_v60 = vsel %vm396_vm1, %v4576_v43, %v4551_v33  ;;  %v4598_v5 = vrot.slane %v9012_v58, 4 }
 0x9a6   :  { %v4608_v41 = vrot.slane %v4537_v57, 4  ;;  %v4571_v27 = vperm.slane %v4565_v45, %v7350_v59  ;;  %v4590_v40 = vrot.slane %v4575_v37, 4  ;;  %v4587_v62 = vperm.slane %v4579_v22, %v7350_v59 }
 0x9a7   :  { %v4991_v39 = vperm.slane %v4983_v42, %v7350_v59  ;;  %v4995_v48 = vsel %vm396_vm1, %v4979_v31, %v4994_v26  ;;  %v4980_v56 = vrot.slane %v4968_v4, 4  ;;  %v4603_v28 = vperm.slane %v4597_v20, %v7329_v29 }
 0x9a8   :  { %v4583_v24 = vperm.slane %v4577_v60, %v7350_v59  ;;  %v4609_v33 = vsel %vm396_vm1, %v4608_v41, %v4525_v10  ;;  %v5003_v49 = vperm.slane %v4995_v48, %v7350_v59  ;;  %v4610_v58 = vrot.slane %v4525_v10, 4  ;;  %v6628_v41 = vpop.permute.xlu1 %6627 }
 0x9a9   :  { %v5010_v6 = vrot.slane %v4991_v39, 4  ;;  %v4981_v63 = vsel %vm396_vm1, %v4980_v56, %v4962_v18  ;;  %v4992_v15 = vrot.slane %v4979_v31, 4  ;;  %v4588_v2 = vrot.slane %v4571_v27, 4 }
 0x9aa   :  { %v4591_v7 = vsel %vm396_vm1, 0.0, %v4590_v40  ;;  %v4987_v17 = vperm.slane %v4981_v63, %v7350_v59  ;;  %v5008_v35 = vrot.slane %v5003_v49, 4  ;;  %v4594_v53 = vrot.slane %v4587_v62, 4 }
 0x9ab   :  { %v4615_v52 = vperm.slane %v4609_v33, %v7329_v29  ;;  %v5011_v30 = vsel %vm396_vm1, %v5003_v49, %v5010_v6  ;;  %v4993_v34 = vsel %vm396_vm1, %v4992_v15, %v4973_v23  ;;  %v4599_v38 = vsel %vm396_vm1, %v4531_v44, %v4598_v5 }
 0x9ac   :  { %6521 = vmatpush.xpose.msk.msrb.mxu3 %vm1084_vm2, %v5011_v30  ;;  %v4999_v54 = vperm.slane %v4993_v34, %v7350_v59  ;;  %v5006_v25 = vrot.slane %v4987_v17, 4  ;;  %v5009_v18 = vsel %vm396_vm1, %v5008_v35, %v4991_v39  ;;  %v4657_v50 = vrot.slane %v4591_v7, 4  ;;  %v6623_v35 = vpop.permute.xlu2 %6622 }
 0x9ad   :  { %v4611_v32 = vsel %vm396_vm1, %v4537_v57, %v4610_v58  ;;  %6516 = vmatpush.xpose.msk.msrb.mxu2 %vm1084_vm2, %v5009_v18  ;;  %v4622_v51 = vrot.slane %v4603_v28, 4  ;;  %v4589_v3 = vsel %vm396_vm1, 0.0, %v4588_v2  ;;  %v4592_v1 = vrot.slane %v4583_v24, 4 }
 0x9ae   :  { %v5007_v55 = vsel %vm396_vm1, %v4999_v54, %v5006_v25  ;;  %v5004_v4 = vrot.slane %v4999_v54, 4  ;;  %v4595_v9 = vsel %vm396_vm1, 0.0, %v4594_v53  ;;  %v4652_v43 = vsel %vm396_vm1, %v4590_v40, %v4571_v27  ;;  %v6633_v27 = vpop.permute.xlu0 %6632 }
 0x9af   :  { %v4620_v46 = vrot.slane %v4615_v52, 4  ;;  %6511 = vmatpush.xpose.msk.msrb.mxu1 %vm1084_vm2, %v5007_v55  ;;  %v4607_v44 = vperm.slane %v4599_v38, %v7329_v29  ;;  %v4619_v13 = vperm.slane %v4611_v32, %v7329_v29  ;;  %v4658_v23 = vsel %vm396_vm1, %v4657_v50, %v4589_v3 }
 0x9b0   :  { %v5005_v37 = vsel %vm396_vm1, %v5004_v4, %v4987_v17  ;;  %v4623_v16 = vsel %vm396_vm1, %v4615_v52, %v4622_v51  ;;  %v9326_v11 = vperm.slane %v4652_v43, %v7329_v29  ;;  %v4663_v57 = vsel %vm396_vm1, %v4594_v53, %v4583_v24 }
 0x9b1   :  { %6506 = vmatpush.xpose.msk.msrb.mxu0 %vm1084_vm2, %v5005_v37  ;;  %v4668_v45 = vrot.slane %v4595_v9, 4  ;;  %v4593_v22 = vsel %vm396_vm1, 0.0, %v4592_v1  ;;  %v4621_v31 = vsel %vm396_vm1, %v4620_v46, %v4603_v28  ;;  %v5208_v42 = vrot.slane %v9109_v12, 4 }
 0x9b2   :  { %v5264_v26 = vrot.slane %v9112_v21, 4  ;;  %v4634_v20 = vrot.slane %v4607_v44, 4  ;;  %v9334_v60 = vperm.slane %v4658_v23, %v7329_v29  ;;  %v4631_v10 = vperm.slane %v4623_v16, %v7350_v59 }
 0x9b3   :  { %v4632_v5 = vrot.slane %v4619_v13, 4  ;;  %v6630_v40 = vunpack.i.h.bf16 %v6628_v41  ;;  %v6629_v62 = vunpack.i.l.bf16 %v6628_v41  ;;  %v6635_v39 = vunpack.i.h.bf16 %v6633_v27 }
 0x9b4   :  { %v6634_v48 = vunpack.i.l.bf16 %v6633_v27  ;;  %v9338_v56 = vperm.slane %v4663_v57, %v7329_v29  ;;  %v9341_v28 = vsel %vm396_vm1, %v4668_v45, %v4593_v22  ;;  %v4676_v24 = vrot.slane %v9326_v11, 4 }
 0x9b5   :  { %v9345_v33 = vperm.slane %v4621_v31, %v7350_v59  ;;  %v5206_v49 = vrot.slane %v6630_v40, 4  ;;  %v5209_v58 = vsel %vm396_vm1, %v6630_v40, %v5208_v42  ;;  %v5262_v6 = vrot.slane %v6629_v62, 4 }
 0x9b6   :  { %v5265_v63 = vsel %vm396_vm1, %v6629_v62, %v5264_v26  ;;  %v4633_v15 = vsel %vm396_vm1, %v4632_v5, %v4607_v44  ;;  %v4635_v2 = vsel %vm396_vm1, %v4619_v13, %v4634_v20  ;;  %v9351_v7 = vrot.slane %v4631_v10, 4 }
 0x9b7   :  { %v5218_v17 = vrot.slane %v6635_v39, 4  ;;  %v5207_v53 = vsel %vm396_vm1, %v5206_v49, %v9109_v12  ;;  %v5217_v52 = vperm.slane %v5209_v58, %v7329_v29  ;;  %v5263_v30 = vsel %vm396_vm1, %v5262_v6, %v9112_v21 }
 0x9b8   :  { %v5274_v34 = vrot.slane %v6634_v48, 4  ;;  %v6625_v54 = vunpack.i.h.bf16 %v6623_v35  ;;  %v6624_v25 = vunpack.i.l.bf16 %v6623_v35  ;;  %v5213_v18 = vperm.slane %v5207_v53, %v7329_v29 }
 0x9b9   :  { %v5273_v38 = vperm.slane %v5265_v63, %v7329_v29  ;;  %v9361_v50 = vperm.slane %v4633_v15, %v7350_v59  ;;  %v4643_v32 = vperm.slane %v4635_v2, %v7350_v59  ;;  %v4644_v51 = vrot.slane %v9345_v33, 4 }
 0x9ba   :  { %v5269_v12 = vperm.slane %v5263_v30, %v7329_v29  ;;  %v5220_v3 = vrot.slane %v6625_v54, 4  ;;  %v5276_v55 = vrot.slane %v6624_v25, 4  ;;  %v5232_v4 = vrot.slane %v5213_v18, 4 }
 0x9bb   :  { %v5219_v21 = vsel %vm396_vm1, %v5218_v17, %v6625_v54  ;;  %v5244_v1 = vrot.slane %v5217_v52, 4  ;;  %v5275_v46 = vsel %vm396_vm1, %v5274_v34, %v6624_v25  ;;  %v5300_v44 = vrot.slane %v5273_v38, 4 }
 0x9bc   :  { %v5288_v9 = vrot.slane %v5269_v12, 4  ;;  %v5225_v43 = vperm.slane %v5219_v21, %v7329_v29  ;;  %v5221_v13 = vsel %vm396_vm1, %v6635_v39, %v5220_v3  ;;  %v5277_v37 = vsel %vm396_vm1, %v6634_v48, %v5276_v55 }
 0x9bd   :  { %v5281_v23 = vperm.slane %v5275_v46, %v7329_v29  ;;  %v5229_v16 = vperm.slane %v5221_v13, %v7329_v29  ;;  %v5285_v22 = vperm.slane %v5277_v37, %v7329_v29  ;;  %v9375_v31 = vrot.slane %v4643_v32, 4 }
 0x9be   :  { %v5230_v57 = vrot.slane %v5225_v43, 4  ;;  %v5233_v45 = vsel %vm396_vm1, %v5225_v43, %v5232_v4  ;;  %v9390_v15 = vsel %vm396_vm1, 0.0, %v9351_v7  ;;  %v4648_v53 = vrot.slane %v9361_v50, 4 }
 0x9bf   :  { %v5241_v42 = vperm.slane %v5233_v45, %v7350_v59  ;;  %v5286_v26 = vrot.slane %v5281_v23, 4  ;;  %v5289_v20 = vsel %vm396_vm1, %v5281_v23, %v5288_v9  ;;  %v5242_v5 = vrot.slane %v5229_v16, 4 }
 0x9c0   :  { %v5231_v10 = vsel %vm396_vm1, %v5230_v57, %v5213_v18  ;;  %v5245_v41 = vsel %vm396_vm1, %v5229_v16, %v5244_v1  ;;  %v5297_v27 = vperm.slane %v5289_v20, %v7350_v59  ;;  %v5298_v6 = vrot.slane %v5285_v22, 4 }
 0x9c1   :  { %v5237_v40 = vperm.slane %v5231_v10, %v7350_v59  ;;  %v5253_v62 = vperm.slane %v5245_v41, %v7350_v59  ;;  %v5256_v39 = vrot.slane %v5241_v42, 4  ;;  %v5287_v48 = vsel %vm396_vm1, %v5286_v26, %v5269_v12 }
 0x9c2   :  { %v5243_v49 = vsel %vm396_vm1, %v5242_v5, %v5217_v52  ;;  %v5293_v58 = vperm.slane %v5287_v48, %v7350_v59  ;;  %v5301_v63 = vsel %vm396_vm1, %v5285_v22, %v5300_v44  ;;  %v5299_v30 = vsel %vm396_vm1, %v5298_v6, %v5273_v38 }
 0x9c3   :  { %v5249_v2 = vperm.slane %v5243_v49, %v7350_v59  ;;  %v5257_v17 = vsel %vm396_vm1, 0.0, %v5256_v39  ;;  %v5260_v35 = vrot.slane %v5253_v62, 4  ;;  %v5309_v52 = vperm.slane %v5301_v63, %v7350_v59 }
 0x9c4   :  { %v5310_v34 = vrot.slane %v5293_v58, 4  ;;  %v5305_v18 = vperm.slane %v5299_v30, %v7350_v59  ;;  %v5312_v32 = vrot.slane %v5297_v27, 4  ;;  %v9401_v12 = vsel %vm396_vm1, 0.0, %v9375_v31 }
 0x9c5   :  { %v5258_v54 = vrot.slane %v5249_v2, 4  ;;  %v5261_v25 = vsel %vm396_vm1, 0.0, %v5260_v35  ;;  %v5254_v3 = vrot.slane %v5237_v40, 4  ;;  %v5377_v55 = vrot.slane %v5257_v17, 4 }
 0x9c6   :  { %v5316_v4 = vrot.slane %v5309_v52, 4  ;;  %v5388_v1 = vrot.slane %v5261_v25, 4  ;;  %v5313_v38 = vsel %vm396_vm1, 0.0, %v5312_v32  ;;  %v5314_v9 = vrot.slane %v5305_v18, 4 }
 0x9c7   :  { %v5259_v21 = vsel %vm396_vm1, 0.0, %v5258_v54  ;;  %v5431_v46 = vrot.slane %v5313_v38, 4  ;;  %v5311_v44 = vsel %vm396_vm1, 0.0, %v5310_v34  ;;  %v5426_v13 = vsel %vm396_vm1, %v5312_v32, %v5293_v58 }
 0x9c8   :  { %v5317_v43 = vsel %vm396_vm1, 0.0, %v5316_v4  ;;  %v5315_v37 = vsel %vm396_vm1, 0.0, %v5314_v9  ;;  %v5430_v16 = vperm.slane %v5426_v13, %v7329_v29  ;;  %v5437_v57 = vsel %vm396_vm1, %v5316_v4, %v5305_v18 }
 0x9c9   :  { %v5442_v23 = vrot.slane %v5317_v43, 4  ;;  %v5432_v45 = vsel %vm396_vm1, %v5431_v46, %v5311_v44  ;;  %v5441_v22 = vperm.slane %v5437_v57, %v7329_v29  ;;  %v5255_v42 = vsel %vm396_vm1, 0.0, %v5254_v3 }
 0x9ca   :  { %v5372_v26 = vsel %vm396_vm1, %v5256_v39, %v5237_v40  ;;  %v5436_v20 = vperm.slane %v5432_v45, %v7329_v29  ;;  %v5378_v41 = vsel %vm396_vm1, %v5377_v55, %v5255_v42  ;;  %v5383_v48 = vsel %vm396_vm1, %v5260_v35, %v5249_v2 }
 0x9cb   :  { %v5443_v10 = vsel %vm396_vm1, %v5442_v23, %v5315_v37  ;;  %v5376_v5 = vperm.slane %v5372_v26, %v7329_v29  ;;  %v5382_v62 = vperm.slane %v5378_v41, %v7329_v29  ;;  %v5389_v49 = vsel %vm396_vm1, %v5388_v1, %v5259_v21 }
 0x9cc   :  { %v5447_v27 = vperm.slane %v5443_v10, %v7329_v29  ;;  %v5448_v58 = vrot.slane %v5436_v20, 4  ;;  %v5387_v6 = vperm.slane %v5383_v48, %v7329_v29  ;;  %v5393_v40 = vperm.slane %v5389_v49, %v7329_v29 }
 0x9cd   :  { %v5450_v39 = vrot.slane %v5430_v16, 4  ;;  %v5394_v17 = vrot.slane %v5382_v62, 4  ;;  %v5462_v30 = vrot.slane %v5441_v22, 4  ;;  %v5396_v52 = vrot.slane %v5376_v5, 4 }
 0x9ce   :  { %v5460_v63 = vrot.slane %v5447_v27, 4  ;;  %v5449_v34 = vsel %vm396_vm1, %v5448_v58, %v5430_v16  ;;  %v5406_v54 = vrot.slane %v5393_v40, 4  ;;  %v5408_v18 = vrot.slane %v5387_v6, 4 }
 0x9cf   :  { %v5451_v25 = vsel %vm396_vm1, %v5436_v20, %v5450_v39  ;;  %v4717_v2 = vsel %vm396_vm1, %v9375_v31, %v9361_v50  ;;  %v5455_v35 = vperm.slane %v5449_v34, %v7350_v59  ;;  %v5395_v3 = vsel %vm396_vm1, %v5394_v17, %v5376_v5 }
 0x9d0   :  { %v5461_v32 = vsel %vm396_vm1, %v5460_v63, %v5441_v22  ;;  %v5407_v4 = vsel %vm396_vm1, %v5406_v54, %v5387_v6  ;;  %v5459_v21 = vperm.slane %v5451_v25, %v7350_v59  ;;  %v5463_v1 = vsel %vm396_vm1, %v5447_v27, %v5462_v30 }
 0x9d1   :  { %v5467_v55 = vperm.slane %v5461_v32, %v7350_v59  ;;  %v5401_v38 = vperm.slane %v5395_v3, %v7350_v59  ;;  %v5413_v9 = vperm.slane %v5407_v4, %v7350_v59  ;;  %v5471_v31 = vperm.slane %v5463_v1, %v7350_v59 }
 0x9d2   :  { %v5397_v43 = vsel %vm396_vm1, %v5382_v62, %v5396_v52  ;;  %v4722_v46 = vrot.slane %v9401_v12, 4  ;;  %v5409_v37 = vsel %vm396_vm1, %v5393_v40, %v5408_v18  ;;  %v4673_v16 = vperm.slane %v9341_v28, %v7329_v29 }
 0x9d3   :  { %v5472_v44 = vrot.slane %v5467_v55, 4  ;;  %v5405_v13 = vperm.slane %v5397_v43, %v7350_v59  ;;  %v5418_v57 = vrot.slane %v5413_v9, 4  ;;  %v5476_v45 = vrot.slane %v5471_v31, 4 }
 0x9d4   :  { %v5417_v22 = vperm.slane %v5409_v37, %v7350_v59  ;;  %v4688_v42 = vrot.slane %v9338_v56, 4  ;;  %v5478_v12 = vrot.slane %v5459_v21, 4  ;;  %v4649_v28 = vsel %vm396_vm1, 0.0, %v4648_v53 }
 0x9d5   :  { %v5473_v26 = vsel %vm396_vm1, %v5472_v44, %v5455_v35  ;;  %v5424_v20 = vrot.slane %v5405_v13, 4  ;;  %v5419_v10 = vsel %vm396_vm1, %v5418_v57, %v5401_v38  ;;  %v5477_v5 = vsel %vm396_vm1, %v5476_v45, %v5459_v21 }
 0x9d6   :  { %5739 = vmatpush.msra.mxu0 %v5473_v26  ;;  %v5422_v41 = vrot.slane %v5417_v22, 4  ;;  %v4706_v27 = vsel %vm396_vm1, %v9351_v7, %v9345_v33  ;;  %v4711_v62 = vrot.slane %v9390_v15, 4  ;;  %v5479_v48 = vsel %vm396_vm1, %v5471_v31, %v5478_v12 }
 0x9d7   :  { %v5425_v49 = vsel %vm396_vm1, %v5417_v22, %v5424_v20  ;;  %v4645_v58 = vsel %vm396_vm1, 0.0, %v4644_v51  ;;  %v4686_v6 = vrot.slane %v4673_v16, 4  ;;  %5826 = vmatpush.msra.mxu3 %v5479_v48  ;;  %v4689_v53 = vsel %vm396_vm1, %v4673_v16, %v4688_v42 }
 0x9d8   :  { %5740 = vmatpush.msra.mxu0 %v5419_v10  ;;  %v5423_v50 = vsel %vm396_vm1, %v5422_v41, %v5405_v13  ;;  %v5474_v40 = vrot.slane %v5455_v35, 4  ;;  %v4721_v7 = vperm.slane %v4717_v2, %v7329_v29  ;;  %v4723_v15 = vsel %vm396_vm1, %v4722_v46, %v4649_v28 }
 0x9d9   :  { %v4710_v39 = vperm.slane %v4706_v27, %v7329_v29  ;;  %v4677_v33 = vsel %vm396_vm1, %v9334_v60, %v4676_v24  ;;  %5827 = vmatpush.msra.mxu3 %v5425_v49  ;;  %v4712_v51 = vsel %vm396_vm1, %v4711_v62, %v4645_v58  ;;  %v5420_v63 = vrot.slane %v5401_v38, 4 }
 0x9da   :  { %v4697_v30 = vperm.slane %v4689_v53, %v7350_v59  ;;  %v4687_v52 = vsel %vm396_vm1, %v4686_v6, %v9338_v56  ;;  %v4727_v34 = vperm.slane %v4723_v15, %v7329_v29  ;;  %v4685_v25 = vperm.slane %v4677_v33, %v7350_v59 }
 0x9db   :  { %v4350_v23 = vpop.f32.mrf.mxu2  ;;  %v5475_v18 = vsel %vm396_vm1, %v5467_v55, %v5474_v40  ;;  %v4742_v24 = vrot.slane %v4721_v7, 4  ;;  %v4674_v35 = vrot.slane %v9334_v60, 4  ;;  %v4716_v32 = vperm.slane %v4712_v51, %v7329_v29 }
 0x9dc   :  { %6500 = vmatmul.msk.f32.vlgmr.msra.gmra.mxu2 %vm1084_vm2, %v4350_v23  ;;  %v4730_v3 = vrot.slane %v4710_v39, 4  ;;  %v4693_v56 = vperm.slane %v4687_v52, %v7350_v59  ;;  %v5421_v21 = vsel %vm396_vm1, %v5413_v9, %v5420_v63  ;;  %v4702_v1 = vrot.slane %v4697_v30, 4 }
 0x9dd   :  { %5797 = vmatpush.msra.mxu2 %v5477_v5  ;;  %v4740_v55 = vrot.slane %v4727_v34, 4  ;;  %v4704_v38 = vrot.slane %v4685_v25, 4  ;;  %v4743_v31 = vsel %vm396_vm1, %v4727_v34, %v4742_v24  ;;  %v4675_v60 = vsel %vm396_vm1, %v4674_v35, %v9326_v11 }
 0x9de   :  { %v4731_v43 = vsel %vm396_vm1, %v4716_v32, %v4730_v3  ;;  %v4698_v46 = vrot.slane %v4693_v56, 4  ;;  %v4703_v44 = vsel %vm396_vm1, %v4702_v1, %v4685_v25  ;;  %v4751_v13 = vperm.slane %v4743_v31, %v7350_v59 }
 0x9df   :  { %5798 = vmatpush.msra.mxu2 %v5423_v50  ;;  %v4741_v9 = vsel %vm396_vm1, %v4740_v55, %v4721_v7  ;;  %v4705_v37 = vsel %vm396_vm1, %v4697_v30, %v4704_v38  ;;  %v4681_v23 = vperm.slane %v4675_v60, %v7350_v59  ;;  %v4739_v16 = vperm.slane %v4731_v43, %v7350_v59 }
 0x9e0   :  { %v4728_v57 = vrot.slane %v4716_v32, 4  ;;  %v4747_v22 = vperm.slane %v4741_v9, %v7350_v59  ;;  %v4756_v42 = vrot.slane %v4751_v13, 4 }
 0x9e1   :  { %v4699_v45 = vsel %vm396_vm1, %v4698_v46, %v4681_v23  ;;  %v4758_v26 = vrot.slane %v4739_v16, 4  ;;  %v4700_v20 = vrot.slane %v4681_v23, 4 }
 0x9e2   :  { %v4729_v12 = vsel %vm396_vm1, %v4728_v57, %v4710_v39  ;;  %v4752_v10 = vrot.slane %v4747_v22, 4  ;;  %v4757_v5 = vsel %vm396_vm1, %v4756_v42, %v4739_v16 }
 0x9e3   :  { %v4353_v17 = vpop.f32.mrf.mxu2  ;;  %v4759_v28 = vsel %vm396_vm1, %v4751_v13, %v4758_v26  ;;  %v4735_v41 = vperm.slane %v4729_v12, %v7350_v59  ;;  %v4701_v27 = vsel %vm396_vm1, %v4693_v56, %v4700_v20 }
 0x9e4   :  { %v4382_v54 = vpop.f32.mrf.mxu3  ;;  %6501 = vmatmul.msk.f32.gmra.mxu2 %vm1084_vm2, %v4353_v17 }
 0x9e5   :  { %6503 = vmatmul.msk.f32.gmra.mxu3 %vm1084_vm2, %v4382_v54  ;;  %v4321_v2 = vpop.f32.mrf.mxu1  ;;  %v4753_v62 = vsel %vm396_vm1, %v4752_v10, %v4735_v41  ;;  %v4754_v48 = vrot.slane %v4735_v41, 4 }
 0x9e6   :  { %v4295_v4 = vpop.f32.mrf.mxu0  ;;  %6498 = vmatmul.msk.f32.vlgmr.msra.gmra.mxu1 %vm1084_vm2, %v4321_v2 }
 0x9e7   :  { %6497 = vmatmul.msk.f32.gmra.mxu0 %vm1084_vm2, %v4295_v4  ;;  %5768 = vmatpush.msra.mxu1 %v5475_v18  ;;  %v4755_v49 = vsel %vm396_vm1, %v4747_v22, %v4754_v48 }
 0x9e9   :  { %5769 = vmatpush.msra.mxu1 %v5421_v21 }
 0x9ec   :  { %6517 = vmatmul.msk.f32.vlgmr.msrb.gmra.mxu2 %vm1084_vm2, %v4703_v44 }
 0x9ed   :  { %6522 = vmatmul.msk.f32.vlgmr.msrb.gmra.mxu3 %vm1084_vm2, %v4705_v37  ;;  %v4324_v11 = vpop.f32.mrf.mxu1  ;;  %v6810_v37 = vld [vmem:[#allocation10] ss:$0 sm:$0xff] }
 0x9ee   :  { %6499 = vmatmul.msk.f32.gmra.mxu1 %vm1084_vm2, %v4324_v11  ;;  %v9538_v23 = vadd.f32 %v6810_v37, %v9106_v36 }
 0x9ef   :  { %6507 = vmatmul.msk.f32.vlgmr.msrb.gmra.mxu0 %vm1084_vm2, %v4699_v45 }
 0x9f4   :  { %6518 = vmatmul.msk.f32.gmra.mxu2 %vm1084_vm2, %v4757_v5 }
 0x9f5   :  { %6523 = vmatmul.msk.f32.gmra.mxu3 %vm1084_vm2, %v4759_v28 }
 0x9f6   :  { %6512 = vmatmul.msk.f32.vlgmr.msrb.gmra.mxu1 %vm1084_vm2, %v4701_v27 }
 0x9f7   :  { %6508 = vmatmul.msk.f32.gmra.mxu0 %vm1084_vm2, %v4753_v62 }
 0x9fb   :  { %v4408_v58 = vpop.f32.mrf.mxu0 }
 0x9fc   :  { %v4501_v40 = vsel %vm243_vm0, %v4408_v58, 0.0 }
 0x9fe   :  { %6513 = vmatmul.msk.f32.gmra.mxu1 %vm1084_vm2, %v4755_v49 }
 0x9ff   :  { %v9516_v6 = vpop.f32.mrf.mxu3 }
 0xa5f   :  { %v4466_v50 = vpop.f32.mrf.mxu2 }
 0xa60   :  { %v4504_v33 = vsel %vm243_vm0, %v4466_v50, 0.0 }
 0xa63   :  { %v4437_v53 = vpop.f32.mrf.mxu1 }
 0xa64   :  { %v4411_v7 = vpop.f32.mrf.mxu0  ;;  %v4502_v15 = vsel %vm243_vm0, %v4437_v53, 0.0 }
 0xa65   :  { %v4503_v39 = vadd.f32 %v4502_v15, %v4501_v40  ;;  %v4508_v52 = vsel %vm243_vm0, %v4411_v7, 0.0 }
 0xa67   :  { %v9521_v51 = vadd.f32 %v4504_v33, %v4503_v39  ;;  %v4469_v17 = vpop.f32.mrf.mxu2 }
 0xa68   :  { %v4498_v63 = vpop.f32.mrf.mxu3  ;;  %v4511_v24 = vsel %vm243_vm0, %v4469_v17, 0.0  ;;  %v4506_v17 = vsel %vm243_vm0, %v9516_v6, 0.0 }
 0xa69   :  { %v4513_v35 = vsel %vm243_vm0, %v4498_v63, 0.0 }
 0xa6b   :  { %v4440_v30 = vpop.f32.mrf.mxu1 }
 0xa6c   :  { %v4509_v34 = vsel %vm243_vm0, %v4440_v30, 0.0  ;;  %v5512_v54 = vpop.f32.mrf.mxu0 }
 0xa6d   :  { %v4510_v25 = vadd.f32 %v4509_v34, %v4508_v52  ;;  %v5632_v18 = vsel %vm4180_vm12, %v5512_v54, -inf  ;;  %v4507_v52 = vadd.f32 %v4506_v17, %v9521_v51 }
 0xa6e   :  { %5633 = vmax.xlane.f32.xlu1 %v5632_v18 }
 0xa6f   :  { %v4512_v2 = vadd.f32 %v4511_v24, %v4510_v25  ;;  %v5588_v56 = vpop.f32.mrf.mxu2 }
 0xa70   :  { %v5626_v32 = vpop.f32.mrf.mxu3  ;;  %v5644_v46 = vsel %vm4180_vm12, %v5588_v56, -inf }
 0xa71   :  { %v9528_v3 = vadd.f32 %v4513_v35, %v4512_v2  ;;  %v5650_v9 = vsel %vm4180_vm12, %v5626_v32, -inf }
 0xa73   :  { %v5550_v4 = vpop.f32.mrf.mxu1 }
 0xa74   :  { %v5515_v21 = vpop.f32.mrf.mxu0  ;;  %v5638_v1 = vsel %vm4180_vm12, %v5550_v4, -inf }
 0xa75   :  { %5639 = vmax.xlane.f32.xlu0 %v5638_v1  ;;  %v5635_v55 = vsel %vm4180_vm12, %v5515_v21, -inf }
 0xa76   :  { %5636 = vmax.xlane.f32.xlu1 %v5635_v55 }
 0xa77   :  { %v5591_v44 = vpop.f32.mrf.mxu2 }
 0xa78   :  { %v5629_v38 = vpop.f32.mrf.mxu3  ;;  %v5647_v13 = vsel %vm4180_vm12, %v5591_v44, -inf }
 0xa79   :  { %v5653_v31 = vsel %vm4180_vm12, %v5629_v38, -inf }
 0xa7a   :  { %5654 = vmax.xlane.f32.xlu2 %v5653_v31 }
 0xa7b   :  { %v5553_v60 = vpop.f32.mrf.mxu1 }
 0xa7c   :  { %v5641_v43 = vsel %vm4180_vm12, %v5553_v60, -inf }
 0xa7d   :  { %5642 = vmax.xlane.f32.xlu0 %v5641_v43 }
 0xa7e   :  { %5645 = vmax.xlane.f32.xlu1 %v5644_v46 }
 0xa82   :  { %5648 = vmax.xlane.f32.xlu2 %v5647_v13 }
 0xa85   :  { %5651 = vmax.xlane.f32.xlu0 %v5650_v9 }
 0xa97   :  { %5141 = vrot.lane.b32.xlu1 %v9538_v23, %s7081_s22 }
 0xa99   :  { %5132 = vrot.lane.b32.xlu0 %v9538_v23, %s7080_s1 }
 0xa9a   :  { %5123 = vrot.lane.b32.xlu2 %v9538_v23, %s7079_s19 }
 0xae1   :  { %v5634_v16 = vpop.xlane.xlu1 %5633 }
 0xae2   :  { %v5656_v12 = vsub.f32 %v5512_v54, %v5634_v16  ;;  %v9561_v54 = vld [vmem:[#allocation11] ss:$0 sm:$0xff] }
 0xae3   :  { %v4518_v35 = vadd.f32 %v9561_v54, %v4507_v52  ;;  %v4519_v46 = vadd.f32 %v9561_v54, %v9528_v3 }
 0xae4   :  { %v5664_v5 = vmul.f32 1.442695, %v5656_v12 }
 0xae5   :  { %v9580_v43 = vadd.f32 %v4518_v35, %v8313_v0 }
 0xae8   :  { %v5640_v11 = vpop.xlane.xlu0 %5639 }
 0xae9   :  { %v5637_v57 = vpop.xlane.xlu1 %5636  ;;  %v5658_v48 = vsub.f32 %v5550_v4, %v5640_v11 }
 0xaea   :  { %v5657_v50 = vsub.f32 %v5515_v21, %v5637_v57 }
 0xaeb   :  { %v5668_v7 = vmul.f32 1.442695, %v5658_v48 }
 0xaec   :  { %v5666_v39 = vmul.f32 1.442695, %v5657_v50 }
 0xaed   :  { %v5655_v45 = vpop.xlane.xlu2 %5654 }
 0xaee   :  { %v5663_v28 = vsub.f32 %v5629_v38, %v5655_v45  ;;  %v5152_v38 = vrot.slane %v9538_v23, 4 }
 0xaf0   :  { %v5643_v22 = vpop.xlane.xlu0 %5642  ;;  %v5678_v53 = vmul.f32 1.442695, %v5663_v28 }
 0xaf1   :  { %v5646_v42 = vpop.xlane.xlu1 %5645  ;;  %v5659_v34 = vsub.f32 %v5553_v60, %v5643_v22 }
 0xaf2   :  { %v5660_v26 = vsub.f32 %v5588_v56, %v5646_v42 }
 0xaf3   :  { %v5670_v6 = vmul.f32 1.442695, %v5659_v34 }
 0xaf4   :  { %v5672_v20 = vmul.f32 1.442695, %v5660_v26 }
 0xaf5   :  { %v5649_v36 = vpop.xlane.xlu2 %5648 }
 0xaf6   :  { %6750 = vpow2.f32 %v5672_v20  ;;  %v5661_v10 = vsub.f32 %v5591_v44, %v5649_v36  ;;  %v5972_v20 = vsel %vm243_vm0, %v9580_v43, 0.0 }
 0xaf8   :  { %v5674_v41 = vmul.f32 1.442695, %v5661_v10  ;;  %v5652_v27 = vpop.xlane.xlu0 %5651 }
 0xaf9   :  { %v5662_v62 = vsub.f32 %v5626_v32, %v5652_v27 }
 0xafa   :  { %6752 = vpow2.f32 %v5674_v41 }
 0xafb   :  { %v5676_v49 = vmul.f32 1.442695, %v5662_v62  ;;  %6754 = vpow2.f32 %v5664_v5 }
 0xafc   :  { %v9546_v58 = vpop.eup %6750 }
 0xafd   :  { %6756 = vpow2.f32 %v5676_v49  ;;  %v5692_v40 = vsel %vm4180_vm12, %v9546_v58, 0.0  ;;  %v5124_v18 = vpop.permute.xlu2 %5123 }
 0xafe   :  { %5693 = vadd.xlane.f32.xlu2 %v5692_v40  ;;  %6758 = vpow2.f32 %v5678_v53  ;;  %v5164_v51 = vrot.slane %v5124_v18, 4 }
 0xaff   :  { %6760 = vpow2.f32 %v5668_v7 }
 0xb00   :  { %v9550_v15 = vpop.eup %6752  ;;  %6762 = vpow2.f32 %v5666_v39 }
 0xb01   :  { %v5695_v33 = vsel %vm4180_vm12, %v9550_v15, 0.0  ;;  %v9554_v63 = vpop.eup %6754  ;;  %6764 = vpow2.f32 %v5670_v6 }
 0xb02   :  { %5696 = vadd.xlane.f32.xlu1 %v5695_v33  ;;  %v5680_v24 = vsel %vm4180_vm12, %v9554_v63, 0.0 }
 0xb03   :  { %v9558_v30 = vpop.eup %6756 }
 0xb04   :  { %v5698_v25 = vsel %vm4180_vm12, %v9558_v30, 0.0  ;;  %v9567_v2 = vpop.eup %6758 }
 0xb05   :  { %5699 = vadd.xlane.f32.xlu0 %v5698_v25  ;;  %v9570_v32 = vpop.eup %6760  ;;  %v5701_v56 = vsel %vm4180_vm12, %v9567_v2, 0.0 }
 0xb06   :  { %5681 = vadd.xlane.f32.xlu2 %v5680_v24  ;;  %v9574_v21 = vpop.eup %6762  ;;  %v5686_v37 = vsel %vm4180_vm12, %v9570_v32, 0.0 }
 0xb07   :  { %v5683_v0 = vsel %vm4180_vm12, %v9574_v21, 0.0  ;;  %v9599_v36 = vpop.eup %6764 }
 0xb08   :  { %v5689_v53 = vsel %vm4180_vm12, %v9599_v36, 0.0 }
 0xb09   :  { %v5142_v4 = vpop.permute.xlu1 %5141 }
 0xb0a   :  { %v5162_v1 = vrot.slane %v5142_v4, 4  ;;  %v5165_v55 = vsel %vm396_vm1, %v5142_v4, %v5164_v51  ;;  %5702 = vadd.xlane.f32.xlu1 %v5701_v56 }
 0xb0b   :  { %v5173_v31 = vperm.slane %v5165_v55, %v7329_v29  ;;  %v5133_v60 = vpop.permute.xlu0 %5132 }
 0xb0c   :  { %v5163_v44 = vsel %vm396_vm1, %v5162_v1, %v5124_v18  ;;  %v5150_v13 = vrot.slane %v5133_v60, 4  ;;  %v5153_v9 = vsel %vm396_vm1, %v5133_v60, %v5152_v38 }
 0xb0d   :  { %v5169_v16 = vperm.slane %v5163_v44, %v7329_v29  ;;  %v5186_v11 = vrot.slane %v5173_v31, 4  ;;  %v5161_v57 = vperm.slane %v5153_v9, %v7329_v29  ;;  %5687 = vadd.xlane.f32.xlu0 %v5686_v37 }
 0xb0e   :  { %v5151_v3 = vsel %vm396_vm1, %v5150_v13, %v9538_v23  ;;  %5684 = vadd.xlane.f32.xlu2 %v5683_v0  ;;  %v9604_v23 = vadd.f32 %v4519_v46, %v8322_v8 }
 0xb0f   :  { %v5174_v45 = vrot.slane %v5169_v16, 4  ;;  %v5157_v22 = vperm.slane %v5151_v3, %v7329_v29  ;;  %v5187_v42 = vsel %vm396_vm1, %v5186_v11, %v5161_v57  ;;  %v5188_v26 = vrot.slane %v5161_v57, 4 }
 0xb10   :  { %v5193_v12 = vperm.slane %v5187_v42, %v7350_v59  ;;  %v5975_v40 = vsel %vm243_vm0, %v9604_v23, 0.0 }
 0xb11   :  { %v5175_v10 = vsel %vm396_vm1, %v5174_v45, %v5157_v22  ;;  %v5176_v5 = vrot.slane %v5157_v22, 4  ;;  %v5189_v28 = vsel %vm396_vm1, %v5173_v31, %v5188_v26 }
 0xb12   :  { %v5181_v41 = vperm.slane %v5175_v10, %v7350_v59  ;;  %v5197_v27 = vperm.slane %v5189_v28, %v7350_v59  ;;  %5973 = vadd.xlane.f32.xlu1 %v5972_v20  ;;  %v5202_v49 = vrot.slane %v5193_v12, 4  ;;  %v6813_v10 = vld [vmem:[%s9873_s17 + $0x18] sm:$0xff] }
 0xb13   :  { %v5177_v62 = vsel %vm396_vm1, %v5169_v16, %v5176_v5  ;;  %v6814_v5 = vld [vmem:[%s9873_s17 + $0x8] sm:$0xff] }
 0xb14   :  { %v5185_v48 = vperm.slane %v5177_v62, %v7350_v59  ;;  %v5204_v50 = vrot.slane %v5197_v27, 4  ;;  %v5198_v8 = vrot.slane %v5181_v41, 4  ;;  %v5203_v25 = vsel %vm396_vm1, 0.0, %v5202_v49 }
 0xb15   :  { %5690 = vadd.xlane.f32.xlu0 %v5689_v53 }
 0xb16   :  { %v5200_v7 = vrot.slane %v5185_v48, 4  ;;  %v5205_v39 = vsel %vm396_vm1, 0.0, %v5204_v50  ;;  %v5329_v33 = vsel %vm396_vm1, %v5204_v50, %v5193_v12  ;;  %5976 = vadd.xlane.f32.xlu2 %v5975_v40  ;;  %v5199_v4 = vsel %vm396_vm1, 0.0, %v5198_v8  ;;  %v6811_v12 = vld [vmem:[%s9873_s17 + $0x10] sm:$0xff] }
 0xb17   :  { %v5333_v17 = vperm.slane %v5329_v33, %v7329_v29  ;;  %v5334_v52 = vrot.slane %v5205_v39, 4 }
 0xb18   :  { %v5201_v34 = vsel %vm396_vm1, 0.0, %v5200_v7  ;;  %v5318_v18 = vsel %vm396_vm1, %v5200_v7, %v5181_v41 }
 0xb19   :  { %v5335_v24 = vsel %vm396_vm1, %v5334_v52, %v5203_v25  ;;  %v5322_v6 = vperm.slane %v5318_v18, %v7329_v29  ;;  %v5323_v35 = vrot.slane %v5201_v34, 4  ;;  %v5354_v51 = vrot.slane %v5333_v17, 4 }
 0xb1a   :  { %v5339_v56 = vperm.slane %v5335_v24, %v7329_v29 }
 0xb1b   :  { %v5324_v1 = vsel %vm396_vm1, %v5323_v35, %v5199_v4  ;;  %v5342_v55 = vrot.slane %v5322_v6, 4 }
 0xb1c   :  { %v5328_v38 = vperm.slane %v5324_v1, %v7329_v29  ;;  %v5355_v31 = vsel %vm396_vm1, %v5339_v56, %v5354_v51  ;;  %v5352_v60 = vrot.slane %v5339_v56, 4  ;;  %v6071_v1 = vld [vmem:[%s9877_s21 + $0x8] sm:$0xff] }
 0xb1d   :  { %v5363_v46 = vperm.slane %v5355_v31, %v7350_v59 }
 0xb1e   :  { %v5343_v44 = vsel %vm396_vm1, %v5328_v38, %v5342_v55  ;;  %v5340_v13 = vrot.slane %v5328_v38, 4  ;;  %v5353_v9 = vsel %vm396_vm1, %v5352_v60, %v5333_v17 }
 0xb1f   :  { %v5351_v37 = vperm.slane %v5343_v44, %v7350_v59  ;;  %v5368_v16 = vrot.slane %v5363_v46, 4  ;;  %v5359_v11 = vperm.slane %v5353_v9, %v7350_v59 }
 0xb20   :  { %v5341_v57 = vsel %vm396_vm1, %v5340_v13, %v5322_v6 }
 0xb21   :  { %v5369_v0 = vsel %vm396_vm1, %v5368_v16, %v5351_v37  ;;  %v5347_v29 = vperm.slane %v5341_v57, %v7350_v59  ;;  %v5364_v3 = vrot.slane %v5359_v11, 4  ;;  %v5370_v45 = vrot.slane %v5351_v37, 4  ;;  %v6812_v59 = vld [vmem:[%s9873_s17] sm:$0xff] }
 0xb22   :  { %5799 = vmatpush.msra.mxu2 %v5369_v0 }
 0xb23   :  { %v5365_v22 = vsel %vm396_vm1, %v5364_v3, %v5347_v29  ;;  %v5371_v42 = vsel %vm396_vm1, %v5363_v46, %v5370_v45  ;;  %v5366_v26 = vrot.slane %v5347_v29, 4 }
 0xb24   :  { %5915 = vmatpush.msrb.mxu2 %v6811_v12  ;;  %5741 = vmatpush.msra.mxu0 %v5365_v22 }
 0xb25   :  { %5828 = vmatpush.msra.mxu3 %v5371_v42  ;;  %v5367_v20 = vsel %vm396_vm1, %v5359_v11, %v5366_v26  ;;  %v9692_v42 = vld [vmem:[#allocation13] sm:$0x7] }
 0xb26   :  { %5857 = vmatpush.msrb.mxu0 %v6812_v59  ;;  %5770 = vmatpush.msra.mxu1 %v5367_v20  ;;  %v9695_v26 = vperm.slane %v9692_v42, 1  ;;  %v9697_v20 = vld [vmem:[#allocation14] sm:$0x7] }
 0xb27   :  { %5944 = vmatpush.msrb.mxu3 %v6813_v10  ;;  %v9700_v59 = vperm.slane %v9697_v20, 1 }
 0xb28   :  { %5886 = vmatpush.msrb.mxu1 %v6814_v5 }
 0xb71   :  { %v5694_v28 = vpop.xlane.xlu2 %5693 }
 0xb72   :  { %6766 = vrcp.f32 %v5694_v28 }
 0xb75   :  { %v5697_v41 = vpop.xlane.xlu1 %5696 }
 0xb76   :  { %6768 = vrcp.f32 %v5697_v41  ;;  %v6214_v41 = vld [vmem:[%s9879_s23 + $0x78] sm:$0xff] }
 0xb78   :  { %v6767_v27 = vpop.eup %6766  ;;  %v5700_v62 = vpop.xlane.xlu0 %5699 }
 0xb79   :  { %v5716_v48 = vmul.f32 %v6767_v27, %v9546_v58  ;;  %6770 = vrcp.f32 %v5700_v62  ;;  %v5682_v49 = vpop.xlane.xlu2 %5681  ;;  %v6213_v27 = vld [vmem:[%s9879_s23 + $0x70] sm:$0xff]  ;;  %v6212_v62 = vld [vmem:[%s9879_s23 + $0x68] sm:$0xff] }
 0xb7a   :  { %6772 = vrcp.f32 %v5682_v49  ;;  %v6210_v49 = vld [vmem:[%s9879_s23 + $0x58] sm:$0xff] }
 0xb7b   :  { %6528 = vmatmul.msk.f32.vlgmr.msra.gmra.mxu2 %vm4180_vm12, %v5716_v48  ;;  %v6211_v48 = vld [vmem:[%s9879_s23 + $0x60] sm:$0xff] }
 0xb7c   :  { %v6769_v53 = vpop.eup %6768 }
 0xb7d   :  { %v5703_v50 = vpop.xlane.xlu1 %5702  ;;  %v5717_v52 = vmul.f32 %v6769_v53, %v9550_v15  ;;  %v6208_v53 = vld [vmem:[%s9879_s23 + $0x48] sm:$0xff] }
 0xb7e   :  { %6774 = vrcp.f32 %v5703_v50  ;;  %v6209_v50 = vld [vmem:[%s9879_s23 + $0x50] sm:$0xff] }
 0xb7f   :  { %v6771_v40 = vpop.eup %6770 }
 0xb80   :  { %v6773_v8 = vpop.eup %6772  ;;  %v5718_v7 = vmul.f32 %v6771_v40, %v9558_v30  ;;  %v5688_v39 = vpop.xlane.xlu0 %5687  ;;  %v6207_v40 = vld [vmem:[%s9879_s23 + $0x40] sm:$0xff] }
 0xb81   :  { %v5712_v33 = vmul.f32 %v6773_v8, %v9554_v63  ;;  %6776 = vrcp.f32 %v5688_v39  ;;  %v5685_v17 = vpop.xlane.xlu2 %5684  ;;  %v6206_v8 = vld [vmem:[%s9879_s23 + $0x38] sm:$0xff]  ;;  %v6204_v39 = vld [vmem:[%s9879_s23 + $0x28] sm:$0xff] }
 0xb82   :  { %6778 = vrcp.f32 %v5685_v17  ;;  %6530 = vmatmul.msk.f32.vlgmr.msra.gmra.mxu3 %vm4180_vm12, %v5718_v7  ;;  %v6205_v7 = vld [vmem:[%s9879_s23 + $0x30] sm:$0xff]  ;;  %v6202_v17 = vld [vmem:[%s9879_s23 + $0x18] sm:$0xff] }
 0xb83   :  { %6524 = vmatmul.msk.f32.vlgmr.msra.gmra.mxu0 %vm4180_vm12, %v5712_v33  ;;  %6529 = vmatmul.msk.f32.gmra.mxu2 %vm4180_vm12, %v5717_v52  ;;  %v6203_v33 = vld [vmem:[%s9879_s23 + $0x20] sm:$0xff]  ;;  %v6201_v52 = vld [vmem:[%s9879_s23 + $0x10] sm:$0xff] }
 0xb84   :  { %v6775_v58 = vpop.eup %6774 }
 0xb85   :  { %v5974_v34 = vpop.xlane.xlu1 %5973  ;;  %v5719_v15 = vmul.f32 %v6775_v58, %v9567_v2  ;;  %v6073_v2 = vld [vmem:[%s9877_s21 + $0x18] sm:$0xff]  ;;  %v6200_v58 = vld [vmem:[%s9879_s23 + $0x8] sm:$0xff] }
 0xb86   :  { %v5984_v25 = vmul.f32 %v5974_v34, %v8261_v47  ;;  %6102 = vmatpush.msra.mxu0 %v6073_v2  ;;  %v6199_v34 = vld [vmem:[%s9879_s23] sm:$0xff] }
 0xb87   :  { %v6777_v18 = vpop.eup %6776 }
 0xb88   :  { %v6779_v30 = vpop.eup %6778  ;;  %v5714_v24 = vmul.f32 %v6777_v18, %v9570_v32  ;;  %v5988_v63 = vsub.f32 %v9580_v43, %v5984_v25  ;;  %v5691_v6 = vpop.xlane.xlu0 %5690 }
 0xb89   :  { %6780 = vrcp.f32 %v5691_v6  ;;  %v5713_v35 = vmul.f32 %v6779_v30, %v9574_v21  ;;  %v9669_v43 = vpop.xlane.xlu2 %5976  ;;  %v6072_v21 = vld [vmem:[%s9877_s21 + $0x10] sm:$0xff] }
 0xb8a   :  { %6526 = vmatmul.msk.f32.vlgmr.msra.gmra.mxu1 %vm4180_vm12, %v5714_v24  ;;  %6531 = vmatmul.msk.f32.gmra.mxu3 %vm4180_vm12, %v5719_v15  ;;  %v5992_v51 = vmul.f32 %v5988_v63, %v5988_v63  ;;  %v5985_v2 = vmul.f32 %v9669_v43, %v8261_v47 }
 0xb8b   :  { %6525 = vmatmul.msk.f32.gmra.mxu0 %vm4180_vm12, %v5713_v35  ;;  %6222 = vmatpush.msra.mxu1 %v6214_v41 }
 0xb8c   :  { %v5996_v4 = vsel %vm243_vm0, %v5992_v51, 0.0  ;;  %6103 = vmatpush.msra.mxu0 %v6072_v21 }
 0xb8d   :  { %5997 = vadd.xlane.f32.xlu2 %v5996_v4  ;;  %6223 = vmatpush.msra.mxu1 %v6213_v27 }
 0xb8e   :  { %6104 = vmatpush.msra.mxu0 %v6071_v1 }
 0xb8f   :  { %v6781_v56 = vpop.eup %6780  ;;  %6224 = vmatpush.msra.mxu1 %v6212_v62 }
 0xb90   :  { %v5715_v32 = vmul.f32 %v6781_v56, %v9599_v36  ;;  %v6070_v36 = vld [vmem:[%s9877_s21] sm:$0xff] }
 0xb91   :  { %6105 = vmatpush.msra.mxu0 %v6070_v36  ;;  %6225 = vmatpush.msra.mxu1 %v6211_v48 }
 0xb92   :  { %6527 = vmatmul.msk.f32.gmra.mxu1 %vm4180_vm12, %v5715_v32 }
 0xb93   :  { %6226 = vmatpush.msra.mxu1 %v6210_v49 }
 0xb95   :  { %6227 = vmatpush.msra.mxu1 %v6209_v50 }
 0xb97   :  { %6228 = vmatpush.msra.mxu1 %v6208_v53 }
 0xb99   :  { %6229 = vmatpush.msra.mxu1 %v6207_v40 }
 0xb9b   :  { %6230 = vmatpush.msra.mxu1 %v6206_v8  ;;  %v9788_v8 = vld [vmem:[%s9880_s24] sm:$0x3]  ;;  %s7090_s24 = smov [#allocation17]  }
 0xb9c   :  { %s6361_s6 = sshll.u32 %s7090_s24, 4  ;;  %s6362_s6 = int_to_ptr.vmem [resolvable:$true] %s6361_s6 }
 0xb9d   :  { %6231 = vmatpush.msra.mxu1 %v6205_v7 }
 0xb9f   :  { %6232 = vmatpush.msra.mxu1 %v6204_v39 }
 0xba1   :  { %6233 = vmatpush.msra.mxu1 %v6203_v33  ;;  %v6216_v33 = vperm.slane %v9788_v8, 0 }
 0xba3   :  { %6234 = vmatpush.msra.mxu1 %v6202_v17 }
 0xba5   :  { %6235 = vmatpush.msra.mxu1 %v6201_v52 }
 0xba7   :  { %6236 = vmatpush.msra.mxu1 %v6200_v58 }
 0xba9   :  { %6237 = vmatpush.msra.mxu1 %v6199_v34 }
 0xbfe   :  { %v5801_v55 = vpop.f32.mrf.mxu2 }
 0xbff   :  { %6536 = vmatmul.msk.f32.vlgmr.msrb.gmra.mxu2 %vm1084_vm2, %v5801_v55 }
 0xc00   :  { %v5743_v38 = vpop.f32.mrf.mxu0  ;;  %v5998_v31 = vpop.xlane.xlu2 %5997 }
 0xc01   :  { %v6008_v60 = vmul.f32 %v5998_v31, %v8261_v47  ;;  %6532 = vmatmul.msk.f32.vlgmr.msrb.gmra.mxu0 %vm1084_vm2, %v5743_v38 }
 0xc03   :  { %v6012_v46 = vadd.f32 1e-05, %v6008_v60 }
 0xc05   :  { %6782 = vrsqrt.f32 %v6012_v46  ;;  %v5830_v44 = vpop.f32.mrf.mxu3  ;;  %vm6022_vm6 = vweird.f32 %v6012_v46 }
 0xc06   :  { %v5804_v13 = vpop.f32.mrf.mxu2  ;;  %6538 = vmatmul.msk.f32.vlgmr.msrb.gmra.mxu3 %vm1084_vm2, %v5830_v44  ;;  %v5989_v44 = vsub.f32 %v9604_v23, %v5985_v2 }
 0xc07   :  { %6537 = vmatmul.msk.f32.gmra.mxu2 %vm1084_vm2, %v5804_v13  ;;  %v5772_v9 = vpop.f32.mrf.mxu1 }
 0xc08   :  { %v5746_v37 = vpop.f32.mrf.mxu0  ;;  %6534 = vmatmul.msk.f32.vlgmr.msrb.gmra.mxu1 %vm1084_vm2, %v5772_v9 }
 0xc09   :  { %6533 = vmatmul.msk.f32.gmra.mxu0 %vm1084_vm2, %v5746_v37 }
 0xc0b   :  { %v6783_v16 = vpop.eup %6782 }
 0xc0c   :  { %v6017_v11 = vmul.f32 %v6783_v16, %v6012_v46  ;;  %vm6023_vm1 = vweird.f32 %v6783_v16 }
 0xc0d   :  { %v5833_v57 = vpop.f32.mrf.mxu3  ;;  %vm6024_vm7 = vmor %vm6022_vm6, %vm6023_vm1 }
 0xc0e   :  { %v6018_v0 = vmul.f32 %v6783_v16, %v6017_v11  ;;  %6539 = vmatmul.msk.f32.gmra.mxu3 %vm1084_vm2, %v5833_v57  ;;  %v5993_v57 = vmul.f32 %v5989_v44, %v5989_v44 }
 0xc0f   :  { %v5775_v29 = vpop.f32.mrf.mxu1 }
 0xc10   :  { %v6019_v3 = vmul.f32 0.5, %v6018_v0  ;;  %6535 = vmatmul.msk.f32.gmra.mxu1 %vm1084_vm2, %v5775_v29  ;;  %v9771_v0 = vld [vmem:[#allocation16] ss:$0 sm:$0xff]  ;;  %vm6177_vm2 = vcmp.lt.s32.totalorder %v7598_v61, 64 }
 0xc11   :  { %vm6186_vm5 = vmxor %vm6177_vm2, %vm7089_vm4 }
 0xc12   :  { %v6020_v45 = vsub.f32 1.5, %v6019_v3  ;;  %v5999_v3 = vsel %vm243_vm0, %v5993_v57, 0.0 }
 0xc14   :  { %v6021_v22 = vmul.f32 %v6783_v16, %v6020_v45 }
 0xc16   :  { %v6025_v12 = vsel %vm6024_vm7, %v6783_v16, %v6021_v22 }
 0xc17   :  { %v6056_v10 = vmul.f32 %v6025_v12, %v5988_v63 }
 0xc19   :  { %v6061_v5 = vmul.f32 %v9695_v26, %v6056_v10 }
 0xc1b   :  { %v9704_v28 = vadd.f32 %v9700_v59, %v6061_v5 }
 0xc1d   :  { %6540 = vmatmul.msk.f32.vlgmr.msra.gmra.mxu0 %vm243_vm0, %v9704_v28 }
 0xc7e   :  { %v5859_v25 = vpop.f32.mrf.mxu0 }
 0xc7f   :  { %v5952_v24 = vsel %vm243_vm0, %v5859_v25, 0.0 }
 0xc82   :  { %v5917_v18 = vpop.f32.mrf.mxu2 }
 0xc83   :  { %v5955_v15 = vsel %vm243_vm0, %v5917_v18, 0.0 }
 0xc85   :  { %v5888_v30 = vpop.f32.mrf.mxu1 }
 0xc86   :  { %v5953_v63 = vsel %vm243_vm0, %v5888_v30, 0.0  ;;  %v5862_v56 = vpop.f32.mrf.mxu0 }
 0xc87   :  { %v5954_v6 = vadd.f32 %v5953_v63, %v5952_v24  ;;  %v5959_v36 = vsel %vm243_vm0, %v5862_v56, 0.0 }
 0xc89   :  { %v5946_v35 = vpop.f32.mrf.mxu3  ;;  %v5956_v51 = vadd.f32 %v5955_v15, %v5954_v6 }
 0xc8a   :  { %v5957_v4 = vsel %vm243_vm0, %v5946_v35, 0.0  ;;  %v5920_v21 = vpop.f32.mrf.mxu2 }
 0xc8b   :  { %v5958_v32 = vadd.f32 %v5957_v4, %v5956_v51  ;;  %v5962_v46 = vsel %vm243_vm0, %v5920_v21, 0.0 }
 0xc8d   :  { %v5966_v1 = vadd.f32 %v9561_v54, %v5958_v32  ;;  %v5891_v55 = vpop.f32.mrf.mxu1 }
 0xc8e   :  { %v5960_v38 = vsel %vm243_vm0, %v5891_v55, 0.0 }
 0xc8f   :  { %v5961_v31 = vadd.f32 %v5960_v38, %v5959_v36  ;;  %v5970_v60 = vadd.f32 %v5966_v1, %v8809_v19 }
 0xc91   :  { %v5949_v13 = vpop.f32.mrf.mxu3  ;;  %v5963_v9 = vadd.f32 %v5962_v46, %v5961_v31  ;;  %v5978_v37 = vsel %vm243_vm0, %v5970_v60, 0.0 }
 0xc92   :  { %v5964_v43 = vsel %vm243_vm0, %v5949_v13, 0.0  ;;  %5979 = vadd.xlane.f32.xlu0 %v5978_v37 }
 0xc93   :  { %v5965_v16 = vadd.f32 %v5964_v43, %v5963_v9 }
 0xc95   :  { %v5967_v11 = vadd.f32 %v9561_v54, %v5965_v16 }
 0xc97   :  { %v5971_v29 = vadd.f32 %v5967_v11, %v8818_v14 }
 0xc99   :  { %v5981_v19 = vsel %vm243_vm0, %v5971_v29, 0.0 }
 0xc9a   :  { %v6107_v23 = vpop.f32.mrf.mxu0  ;;  %5982 = vadd.xlane.f32.xlu1 %v5981_v19  ;;  %6000 = vadd.xlane.f32.xlu0 %v5999_v3 }
 0xc9b   :  { %v6108_v45 = vadd.f32 %v9771_v0, %v6107_v23 }
 0xc9d   :  { %v6119_v22 = vmax.f32 %v6108_v45, 0.0 }
 0xc9f   :  { %6544 = vmatmul.msk.f32.vlgmr.msra.gmra.mxu1 %vm6177_vm2, %v6119_v22 }
 0xd05   :  { %v5980_v54 = vpop.xlane.xlu0 %5979 }
 0xd06   :  { %v5986_v12 = vmul.f32 %v5980_v54, %v8261_v47 }
 0xd08   :  { %v5990_v10 = vsub.f32 %v5970_v60, %v5986_v12 }
 0xd0a   :  { %v5994_v14 = vmul.f32 %v5990_v10, %v5990_v10 }
 0xd0c   :  { %v6002_v5 = vsel %vm243_vm0, %v5994_v14, 0.0 }
 0xd0d   :  { %6003 = vadd.xlane.f32.xlu1 %v6002_v5  ;;  %v5983_v41 = vpop.xlane.xlu1 %5982  ;;  %v6001_v27 = vpop.xlane.xlu0 %6000 }
 0xd0e   :  { %v5987_v62 = vmul.f32 %v5983_v41, %v8261_v47  ;;  %v6009_v48 = vmul.f32 %v6001_v27, %v8261_v47  ;;  %v6217_v41 = vperm.slane %v9788_v8, 1 }
 0xd10   :  { %v5991_v49 = vsub.f32 %v5971_v29, %v5987_v62  ;;  %v6013_v50 = vadd.f32 1e-05, %v6009_v48 }
 0xd12   :  { %6784 = vrsqrt.f32 %v6013_v50  ;;  %v5995_v53 = vmul.f32 %v5991_v49, %v5991_v49  ;;  %vm6032_vm9 = vweird.f32 %v6013_v50 }
 0xd14   :  { %v6005_v40 = vsel %vm243_vm0, %v5995_v53, 0.0 }
 0xd15   :  { %6006 = vadd.xlane.f32.xlu2 %v6005_v40 }
 0xd18   :  { %v6785_v7 = vpop.eup %6784 }
 0xd19   :  { %v6027_v39 = vmul.f32 %v6785_v7, %v6013_v50  ;;  %vm6033_vm8 = vweird.f32 %v6785_v7 }
 0xd1a   :  { %vm6034_vm10 = vmor %vm6032_vm9, %vm6033_vm8 }
 0xd1b   :  { %v6028_v17 = vmul.f32 %v6785_v7, %v6027_v39 }
 0xd1c   :  { %v6239_v52 = vpop.f32.mrf.mxu1 }
 0xd1d   :  { %v6029_v58 = vmul.f32 0.5, %v6028_v17  ;;  %v6240_v34 = vadd.f32 %v6239_v52, %v6216_v33 }
 0xd1f   :  { %v6030_v25 = vsub.f32 1.5, %v6029_v58  ;;  %v9794_v18 = vadd.f32 %v6240_v34, %v9704_v28 }
 0xd21   :  { %v6031_v30 = vmul.f32 %v6785_v7, %v6030_v25  ;;  %v6255_v24 = vsel %vm243_vm0, %v9794_v18, 0.0 }
 0xd22   :  { %6256 = vadd.xlane.f32.xlu0 %v6255_v24 }
 0xd23   :  { %v6035_v63 = vsel %vm6034_vm10, %v6785_v7, %v6031_v30 }
 0xd24   :  { %v6057_v6 = vmul.f32 %v6035_v63, %v5989_v44 }
 0xd26   :  { %v6062_v15 = vmul.f32 %v9695_v26, %v6057_v6 }
 0xd28   :  { %v6067_v35 = vadd.f32 %v9700_v59, %v6062_v15 }
 0xd2a   :  { %6541 = vmatmul.msk.f32.gmra.mxu0 %vm243_vm0, %v6067_v35 }
 0xd80   :  { %v6004_v51 = vpop.xlane.xlu1 %6003 }
 0xd81   :  { %v6010_v4 = vmul.f32 %v6004_v51, %v8261_v47 }
 0xd83   :  { %v6014_v28 = vadd.f32 1e-05, %v6010_v4 }
 0xd85   :  { %6786 = vrsqrt.f32 %v6014_v28  ;;  %vm6042_vm12 = vweird.f32 %v6014_v28 }
 0xd88   :  { %v6007_v56 = vpop.xlane.xlu2 %6006 }
 0xd89   :  { %v6011_v32 = vmul.f32 %v6007_v56, %v8261_v47 }
 0xd8b   :  { %v6787_v2 = vpop.eup %6786  ;;  %v6015_v21 = vadd.f32 1e-05, %v6011_v32 }
 0xd8c   :  { %v6037_v1 = vmul.f32 %v6787_v2, %v6014_v28  ;;  %vm6043_vm11 = vweird.f32 %v6787_v2 }
 0xd8d   :  { %6788 = vrsqrt.f32 %v6015_v21  ;;  %vm6044_vm13 = vmor %vm6042_vm12, %vm6043_vm11  ;;  %vm6052_vm15 = vweird.f32 %v6015_v21 }
 0xd8e   :  { %v6038_v55 = vmul.f32 %v6787_v2, %v6037_v1 }
 0xd90   :  { %v6039_v36 = vmul.f32 0.5, %v6038_v55  ;;  %v9832_v55 = vperm.slane %v9697_v20, 2 }
 0xd92   :  { %v6040_v38 = vsub.f32 1.5, %v6039_v36 }
 0xd93   :  { %v6789_v31 = vpop.eup %6788 }
 0xd94   :  { %v6041_v60 = vmul.f32 %v6787_v2, %v6040_v38  ;;  %v6047_v46 = vmul.f32 %v6789_v31, %v6015_v21  ;;  %vm6053_vm14 = vweird.f32 %v6789_v31  ;;  %v9829_v21 = vperm.slane %v9692_v42, 2 }
 0xd95   :  { %vm6054_vm3 = vmor %vm6052_vm15, %vm6053_vm14  ;;  %v6257_v27 = vpop.xlane.xlu0 %6256 }
 0xd96   :  { %v6045_v44 = vsel %vm6044_vm13, %v6787_v2, %v6041_v60  ;;  %v6048_v13 = vmul.f32 %v6789_v31, %v6047_v46  ;;  %v6267_v48 = vmul.f32 %v6257_v27, %v8261_v47 }
 0xd97   :  { %v6058_v9 = vmul.f32 %v6045_v44, %v5990_v10 }
 0xd98   :  { %v6049_v37 = vmul.f32 0.5, %v6048_v13  ;;  %v6271_v53 = vsub.f32 %v9794_v18, %v6267_v48 }
 0xd99   :  { %v6063_v43 = vmul.f32 %v9695_v26, %v6058_v9 }
 0xd9a   :  { %v6050_v16 = vsub.f32 1.5, %v6049_v37  ;;  %v6275_v61 = vmul.f32 %v6271_v53, %v6271_v53 }
 0xd9b   :  { %v6068_v11 = vadd.f32 %v9700_v59, %v6063_v43 }
 0xd9c   :  { %v6051_v57 = vmul.f32 %v6789_v31, %v6050_v16  ;;  %v6279_v7 = vsel %vm243_vm0, %v6275_v61, 0.0 }
 0xd9d   :  { %6542 = vmatmul.msk.f32.gmra.mxu0 %vm243_vm0, %v6068_v11 }
 0xd9e   :  { %v6055_v29 = vsel %vm6054_vm3, %v6789_v31, %v6051_v57 }
 0xd9f   :  { %v6059_v19 = vmul.f32 %v6055_v29, %v5991_v49 }
 0xda1   :  { %v6064_v3 = vmul.f32 %v9695_v26, %v6059_v19 }
 0xda3   :  { %v6069_v23 = vadd.f32 %v9700_v59, %v6064_v3 }
 0xda5   :  { %6543 = vmatmul.msk.f32.gmra.mxu0 %vm243_vm0, %v6069_v23 }
 0xda7   :  { %v6110_v45 = vpop.f32.mrf.mxu0 }
 0xda8   :  { %v6111_v22 = vadd.f32 %v9771_v0, %v6110_v45 }
 0xdaa   :  { %v6120_v54 = vmax.f32 %v6111_v22, 0.0 }
 0xdac   :  { %6545 = vmatmul.msk.f32.gmra.mxu1 %vm6186_vm5, %v6120_v54 }
 0xe1a   :  { %v6113_v12 = vpop.f32.mrf.mxu0 }
 0xe1b   :  { %v6114_v10 = vadd.f32 %v9771_v0, %v6113_v12 }
 0xe1d   :  { %v6121_v14 = vmax.f32 %v6114_v10, 0.0 }
 0xe1f   :  { %6546 = vmatmul.msk.f32.gmra.mxu1 %vm6177_vm2, %v6121_v14 }
 0xe22   :  { %v6116_v26 = vpop.f32.mrf.mxu0 }
 0xe23   :  { %v6117_v59 = vadd.f32 %v9771_v0, %v6116_v26 }
 0xe25   :  { %v6122_v5 = vmax.f32 %v6117_v59, 0.0 }
 0xe27   :  { %6547 = vmatmul.msk.f32.gmra.mxu1 %vm6186_vm5, %v6122_v5 }
 0xe29   :  { %v6242_v62 = vpop.f32.mrf.mxu1 }
 0xe2a   :  { %v6243_v49 = vadd.f32 %v6242_v62, %v6217_v41 }
 0xe2c   :  { %v6252_v50 = vadd.f32 %v6243_v49, %v6067_v35 }
 0xe2e   :  { %v6258_v40 = vsel %vm243_vm0, %v6252_v50, 0.0 }
 0xe2f   :  { %6259 = vadd.xlane.f32.xlu1 %v6258_v40 }
 0xe37   :  { %6280 = vadd.xlane.f32.xlu1 %v6279_v7 }
 0xe9c   :  { %v6245_v0 = vpop.f32.mrf.mxu1 }
 0xe9d   :  { %v6246_v39 = vadd.f32 %v6245_v0, %v6216_v33 }
 0xe9f   :  { %v6253_v17 = vadd.f32 %v6246_v39, %v6068_v11 }
 0xea1   :  { %v6261_v52 = vsel %vm243_vm0, %v6253_v17, 0.0 }
 0xea2   :  { %6262 = vadd.xlane.f32.xlu2 %v6261_v52  ;;  %v6260_v58 = vpop.xlane.xlu1 %6259 }
 0xea3   :  { %v6268_v34 = vmul.f32 %v6260_v58, %v8261_v47 }
 0xea4   :  { %v6248_v25 = vpop.f32.mrf.mxu1 }
 0xea5   :  { %v6272_v18 = vsub.f32 %v6252_v50, %v6268_v34  ;;  %v6249_v30 = vadd.f32 %v6248_v25, %v6217_v41 }
 0xea7   :  { %v6254_v24 = vadd.f32 %v6249_v30, %v6069_v23  ;;  %v6276_v63 = vmul.f32 %v6272_v18, %v6272_v18 }
 0xea9   :  { %v6282_v6 = vsel %vm243_vm0, %v6276_v63, 0.0  ;;  %v6264_v15 = vsel %vm243_vm0, %v6254_v24, 0.0 }
 0xeaa   :  { %6283 = vadd.xlane.f32.xlu2 %v6282_v6  ;;  %v6281_v35 = vpop.xlane.xlu1 %6280  ;;  %6265 = vadd.xlane.f32.xlu0 %v6264_v15 }
 0xeab   :  { %v6291_v8 = vmul.f32 %v6281_v35, %v8261_v47 }
 0xead   :  { %v6295_v33 = vadd.f32 1e-05, %v6291_v8 }
 0xeaf   :  { %6790 = vrsqrt.f32 %v6295_v33  ;;  %vm6305_vm6 = vweird.f32 %v6295_v33 }
 0xeb5   :  { %v6791_v51 = vpop.eup %6790 }
 0xeb6   :  { %v6300_v4 = vmul.f32 %v6791_v51, %v6295_v33  ;;  %vm6306_vm1 = vweird.f32 %v6791_v51 }
 0xeb7   :  { %vm6307_vm7 = vmor %vm6305_vm6, %vm6306_vm1 }
 0xeb8   :  { %v6301_v28 = vmul.f32 %v6791_v51, %v6300_v4 }
 0xeba   :  { %v6302_v56 = vmul.f32 0.5, %v6301_v28 }
 0xebc   :  { %v6303_v32 = vsub.f32 1.5, %v6302_v56 }
 0xebe   :  { %v6304_v2 = vmul.f32 %v6791_v51, %v6303_v32 }
 0xec0   :  { %v6308_v1 = vsel %vm6307_vm7, %v6791_v51, %v6304_v2 }
 0xec1   :  { %v6339_v36 = vmul.f32 %v6308_v1, %v6271_v53 }
 0xec3   :  { %v6344_v38 = vmul.f32 %v9829_v21, %v6339_v36 }
 0xec5   :  { %v6349_v31 = vadd.f32 %v9832_v55, %v6344_v38 }
 0xec7   :  { %6353 = vst.msk [vmem:[#allocation17] sm:$0xff] %vm243_vm0, %v6349_v31 }
 0xf15   :  { %v6263_v60 = vpop.xlane.xlu2 %6262 }
 0xf16   :  { %v6269_v46 = vmul.f32 %v6263_v60, %v8261_v47 }
 0xf18   :  { %v6273_v44 = vsub.f32 %v6253_v17, %v6269_v46 }
 0xf1a   :  { %v6277_v13 = vmul.f32 %v6273_v44, %v6273_v44 }
 0xf1c   :  { %v6285_v42 = vsel %vm243_vm0, %v6277_v13, 0.0 }
 0xf1d   :  { %v6266_v9 = vpop.xlane.xlu0 %6265  ;;  %6286 = vadd.xlane.f32.xlu0 %v6285_v42  ;;  %v6284_v37 = vpop.xlane.xlu2 %6283 }
 0xf1e   :  { %v6270_v20 = vmul.f32 %v6266_v9, %v8261_v47  ;;  %v6292_v43 = vmul.f32 %v6284_v37, %v8261_v47 }
 0xf20   :  { %v6274_v16 = vsub.f32 %v6254_v24, %v6270_v20  ;;  %v6296_v11 = vadd.f32 1e-05, %v6292_v43 }
 0xf22   :  { %6792 = vrsqrt.f32 %v6296_v11  ;;  %v6278_v57 = vmul.f32 %v6274_v16, %v6274_v16  ;;  %vm6315_vm8 = vweird.f32 %v6296_v11 }
 0xf24   :  { %v6288_v29 = vsel %vm243_vm0, %v6278_v57, 0.0 }
 0xf25   :  { %6289 = vadd.xlane.f32.xlu1 %v6288_v29 }
 0xf28   :  { %v6793_v19 = vpop.eup %6792 }
 0xf29   :  { %v6310_v3 = vmul.f32 %v6793_v19, %v6296_v11  ;;  %vm6316_vm2 = vweird.f32 %v6793_v19 }
 0xf2a   :  { %vm6317_vm9 = vmor %vm6315_vm8, %vm6316_vm2 }
 0xf2b   :  { %v6311_v23 = vmul.f32 %v6793_v19, %v6310_v3 }
 0xf2d   :  { %v6312_v45 = vmul.f32 0.5, %v6311_v23 }
 0xf2f   :  { %v6313_v22 = vsub.f32 1.5, %v6312_v45 }
 0xf31   :  { %v6314_v54 = vmul.f32 %v6793_v19, %v6313_v22 }
 0xf33   :  { %v6318_v12 = vsel %vm6317_vm9, %v6793_v19, %v6314_v54 }
 0xf34   :  { %v6340_v10 = vmul.f32 %v6318_v12, %v6272_v18 }
 0xf36   :  { %v6345_v14 = vmul.f32 %v9829_v21, %v6340_v10 }
 0xf38   :  { %v6350_v26 = vadd.f32 %v9832_v55, %v6345_v14 }
 0xf3a   :  { %6354 = vst.msk [vmem:[#allocation17 + $0x8] sm:$0xff] %vm243_vm0, %v6350_v26 }
 0xf90   :  { %v6287_v59 = vpop.xlane.xlu0 %6286 }
 0xf91   :  { %v6293_v5 = vmul.f32 %v6287_v59, %v8261_v47 }
 0xf93   :  { %v6297_v41 = vadd.f32 1e-05, %v6293_v5 }
 0xf95   :  { %6794 = vrsqrt.f32 %v6297_v41  ;;  %vm6325_vm11 = vweird.f32 %v6297_v41 }
 0xf98   :  { %v6290_v27 = vpop.xlane.xlu1 %6289 }
 0xf99   :  { %v6294_v62 = vmul.f32 %v6290_v27, %v8261_v47 }
 0xf9b   :  { %v6795_v48 = vpop.eup %6794  ;;  %v6298_v49 = vadd.f32 1e-05, %v6294_v62 }
 0xf9c   :  { %v6320_v50 = vmul.f32 %v6795_v48, %v6297_v41  ;;  %vm6326_vm10 = vweird.f32 %v6795_v48 }
 0xf9d   :  { %6796 = vrsqrt.f32 %v6298_v49  ;;  %vm6327_vm12 = vmor %vm6325_vm11, %vm6326_vm10  ;;  %vm6335_vm14 = vweird.f32 %v6298_v49 }
 0xf9e   :  { %v6321_v53 = vmul.f32 %v6795_v48, %v6320_v50 }
 0xfa0   :  { %v6322_v40 = vmul.f32 0.5, %v6321_v53 }
 0xfa2   :  { %v6323_v61 = vsub.f32 1.5, %v6322_v40 }
 0xfa3   :  { %v6797_v7 = vpop.eup %6796 }
 0xfa4   :  { %v6324_v0 = vmul.f32 %v6795_v48, %v6323_v61  ;;  %v6330_v39 = vmul.f32 %v6797_v7, %v6298_v49  ;;  %vm6336_vm13 = vweird.f32 %v6797_v7 }
 0xfa5   :  { %vm6337_vm15 = vmor %vm6335_vm14, %vm6336_vm13 }
 0xfa6   :  { %v6328_v17 = vsel %vm6327_vm12, %v6795_v48, %v6324_v0  ;;  %v6331_v52 = vmul.f32 %v6797_v7, %v6330_v39 }
 0xfa7   :  { %v6341_v58 = vmul.f32 %v6328_v17, %v6273_v44 }
 0xfa8   :  { %v6332_v34 = vmul.f32 0.5, %v6331_v52 }
 0xfa9   :  { %v6346_v25 = vmul.f32 %v9829_v21, %v6341_v58 }
 0xfaa   :  { %v6333_v47 = vsub.f32 1.5, %v6332_v34 }
 0xfab   :  { %v6351_v18 = vadd.f32 %v9832_v55, %v6346_v25 }
 0xfac   :  { %v6334_v30 = vmul.f32 %v6797_v7, %v6333_v47 }
 0xfad   :  { %6355 = vst.msk [vmem:[#allocation17 + $0x10] sm:$0xff] %vm243_vm0, %v6351_v18 }
 0xfae   :  { %v6338_v24 = vsel %vm6337_vm15, %v6797_v7, %v6334_v30 }
 0xfaf   :  { %v6342_v63 = vmul.f32 %v6338_v24, %v6274_v16 }
 0xfb1   :  { %v6347_v6 = vmul.f32 %v9829_v21, %v6342_v63 }
 0xfb3   :  { %v6352_v15 = vadd.f32 %v9832_v55, %v6347_v6 }
 0xfb5   :  { %6356 = vst.msk [vmem:[#allocation17 + $0x18] sm:$0xff] %vm243_vm0, %v6352_v15 }
 0xfb6   :  { %6369 = dma.vmem_to_hbm [thread:$0]  %s6362_s6, 512, %s6364_s3, [#allocation4], %s7091_s26, %s7091_s26, %s7092_s16  }
 0xfb7   :  { %7067 = dma.done.wait [#allocation4], 512  }
 0xfb8   :  { %7068 = vsyncadd [#allocation4], 4294966784 }
 0xfb9   :  { %6374 = vsyncpa [#allocation3], 1 }
 0xfba   :  { %6375 = vsyncpa [#allocation6], 1 }
 0xfbb   :  { %6376 = vsyncpa [#allocation9], 1 }
 0xfbc   :  { %6377 = vsyncpa [#allocation12], 1 }
 0xfbd   :  { %6378 = vsyncpa [#allocation15], 1 }
 0xfbe   :  { %6379 = vsyncpa [#allocation4], 1 }

</bundles_post_ra>
